<compile_context>
chip_gen: v5e
topology: v5e:2x2
jax: 0.10.0
libtpu: 0.0.40
codegen_flags: <defaults>
</compile_context>

<pallas_src>
import functools
import math

import jax
import jax.numpy as jnp
from jax.experimental import pallas as pl
from jax.experimental.pallas import tpu as pltpu


def _group_sort_kernel(x_ref, o_ref, *, K):
    """Sort each group of K consecutive lanes of the (block_R, C) tile
    ascending (NaNs last) via an odd-even transposition network.

    Rows of the tile are independent; groups never straddle a row because
    C % K == 0.  Heavy work is VPU compare/select; the two lane rotations per
    round use the otherwise-idle XLU slot.  Cross-group / wrap-around lanes
    are never selected by the left/right masks, so the rotation wrap is safe.
    """
    x = x_ref[...]                                    # (block_R, C)
    C = x.shape[-1]
    pos = jax.lax.broadcasted_iota(jnp.int32, x.shape, 1) % K

    # Parity-dependent masks, hoisted out of the round loop (JAX does not CSE
    # broadcasts inside loops).
    masks = []
    for p in (0, 1):
        is_left = (pos >= p) & (((pos - p) % 2) == 0) & (pos < (K - 1))
        is_right = (pos > p) & (((pos - p) % 2) == 1)
        masks.append((is_left, is_right))

    for rnd in range(K):
        is_left, is_right = masks[rnd % 2]
        up = pltpu.roll(x, C - 1, axis=1)             # lane l <- x[l + 1]
        down = pltpu.roll(x, 1, axis=1)               # lane l <- x[l - 1]
        # Ascending compare-exchange, NaN treated as largest (sorts last).
        swap_l = (x > up) | (jnp.isnan(x) & ~jnp.isnan(up))
        lo = jnp.where(swap_l, up, x)                 # new value for left lane
        swap_r = (down > x) | (jnp.isnan(down) & ~jnp.isnan(x))
        hi = jnp.where(swap_r, down, x)               # new value for right lane
        x = jnp.where(is_left, lo, jnp.where(is_right, hi, x))

    o_ref[...] = x


_SMALL_TOTAL = 1 << 14          # below this a kernel launch is pure overhead
_TARGET_TILE_BYTES = 4 << 20    # ~4 MiB/tile: 2 in + 2 out buffers ~= 16 MiB,
                                # safe for v7x's 64 MiB VMEM and v5e/v6e.


def model_forward(x1):
    """Pallas equivalent of Model.forward.

    TODO(synk): torch.cat(v, 1) on a 2-D tensor is ill-formed in PyTorch
    (iterating a 2-D tensor yields 1-D rows with no dim 1); it is interpreted
    here as the row-major flatten of v.
    """
    N, K = x1.shape
    k_eff = min(5, K)
    total = N * K

    def _reference_path(x):
        s = jnp.sort(x, axis=1)
        if k_eff != K:
            s = s[:, K - k_eff:]
        return jnp.reshape(s, (-1,))

    # --- small-input fast path (the spec shape is (3, 4)) -----------------
    if total < _SMALL_TOTAL:
        return _reference_path(x1)

    # --- lane-interleaved Pallas path --------------------------------------
    # Working lane width: smallest multiple of 128 that holds whole rows.
    C = (128 * K) // math.gcd(128, K)
    if k_eff != K or total % C != 0:
        # TODO(synk): no Pallas path yet for K > 5 (needs top-5 lane
        # compaction) or for flat sizes not divisible by lcm(128, K).
        return _reference_path(x1)

    R = total // C
    itemsize = jnp.dtype(x1.dtype).itemsize
    max_block_R = max(8, (_TARGET_TILE_BYTES // (C * itemsize)) // 8 * 8)

    if R <= max_block_R:
        if R >= 2048 and R % 16 == 0:
            block_R = R // 2          # >= 2 balanced blocks -> both v7x TCs
        else:
            block_R = R               # full extent is always a legal block dim
    else:
        nb = pl.cdiv(R, max_block_R)  # balanced multi-block grid
        block_R = ((-(-R // nb)) + 7) // 8 * 8

    grid = (pl.cdiv(R, block_R),)
    tile_bytes = block_R * C * itemsize
    vmem_limit = int(min(64 << 20, max(24 << 20, 4 * tile_bytes + (4 << 20))))

    xw = jnp.reshape(x1, (R, C))      # free row-major reshape, no HBM pass

    sorted_w = pl.pallas_call(
        functools.partial(_group_sort_kernel, K=K),
        out_shape=jax.ShapeDtypeStruct((R, C), x1.dtype),
        grid=grid,
        in_specs=[pl.BlockSpec((block_R, C), lambda i: (i, 0))],
        out_specs=pl.BlockSpec((block_R, C), lambda i: (i, 0)),
        compiler_params=pltpu.CompilerParams(
            dimension_semantics=("parallel",),
            vmem_limit_bytes=vmem_limit),
    )(xw)

    # Output is already in natural row-major order -> final flatten is free.
    return jnp.reshape(sorted_w, (-1,))


if __name__ == "__main__":
    key = jax.random.PRNGKey(0)
    k1, k2, k3 = jax.random.split(key, 3)

    # 1) Spec shape (3, 4): exercises the small-input fast path.
    x_small = jax.random.normal(k1, (3, 4), dtype=jnp.float32)
    out_small = model_forward(x_small)
    jax.block_until_ready(out_small)
    ref_small = jnp.reshape(jnp.sort(x_small, axis=1), (-1,))
    assert out_small.shape == (12,)
    assert jnp.allclose(out_small, ref_small), (out_small, ref_small)

    # 2) Single-block Pallas path (lane-interleaved kernel, grid=(1,)).
    x_mid = jax.random.normal(k2, (8192, 4), dtype=jnp.float32)
    out_mid = model_forward(x_mid)
    jax.block_until_ready(out_mid)
    ref_mid = jnp.reshape(jnp.sort(x_mid, axis=1), (-1,))
    assert jnp.allclose(out_mid, ref_mid)

    # 3) Multi-block Pallas path: 2 balanced blocks on the "parallel" axis,
    #    last block padded past the array end (discarded writeback).
    x_big = jax.random.normal(k3, (262400, 4), dtype=jnp.float32)
    out_big = model_forward(x_big)
    jax.block_until_ready(out_big)
    ref_big = jnp.reshape(jnp.sort(x_big, axis=1), (-1,))
    assert jnp.allclose(out_big, ref_big)

    print("KERNEL_OK")
</pallas_src>

<mosaic_0001>
module attributes {stable_mosaic.version = 11 : i64} {
  func.func @_group_sort_kernel(%arg0: i32, %arg1: memref<256x128xf32, #tpu.memory_space<vmem>>, %arg2: memref<256x128xf32, #tpu.memory_space<vmem>>) attributes {dimension_semantics = [#tpu.dimension_semantics<parallel>], iteration_bounds = array<i64: 1>, scalar_prefetch = 0 : i64, scratch_operands = 0 : i64, tpu.core_type = #tpu.core_type<tc>, window_params = [{transform_indices = @transform_0, window_bounds = array<i64: 256, 128>}, {transform_indices = @transform_1, window_bounds = array<i64: 256, 128>}]} {
    %c0 = arith.constant 0 : index
    %c0_0 = arith.constant 0 : index
    %0 = vector.load %arg1[%c0, %c0_0] : memref<256x128xf32, #tpu.memory_space<vmem>>, vector<256x128xf32>
    %1 = tpu.iota {dimensions = array<i32: 1>} : vector<256x128xi32>
    %c4_i32 = arith.constant 4 : i32
    %c0_i32 = arith.constant 0 : i32
    %2 = arith.cmpi eq, %c4_i32, %c0_i32 : i32
    %c1_i32 = arith.constant 1 : i32
    %3 = arith.select %2, %c1_i32, %c4_i32 : i32
    %4 = vector.broadcast %3 : i32 to vector<256x128xi32>
    %5 = arith.remsi %1, %4 : vector<256x128xi32>
    %c0_i32_1 = arith.constant 0 : i32
    %6 = vector.broadcast %c0_i32_1 : i32 to vector<256x128xi32>
    %7 = arith.cmpi ne, %5, %6 : vector<256x128xi32>
    %c0_i32_2 = arith.constant 0 : i32
    %8 = vector.broadcast %c0_i32_2 : i32 to vector<256x128xi32>
    %9 = arith.cmpi slt, %5, %8 : vector<256x128xi32>
    %c0_i32_3 = arith.constant 0 : i32
    %10 = arith.cmpi slt, %3, %c0_i32_3 : i32
    %11 = vector.broadcast %10 : i1 to vector<256x128xi1>
    %12 = vector.broadcast %11 : vector<256x128xi1> to vector<256x128xi1>
    %13 = arith.xori %9, %12 : vector<256x128xi1>
    %14 = arith.andi %13, %7 : vector<256x128xi1>
    %15 = vector.broadcast %3 : i32 to vector<256x128xi32>
    %16 = arith.addi %5, %15 : vector<256x128xi32>
    %17 = arith.select %14, %16, %5 : vector<256x128xi1>, vector<256x128xi32>
    %c0_i32_4 = arith.constant 0 : i32
    %18 = vector.broadcast %c0_i32_4 : i32 to vector<256x128xi32>
    %19 = arith.cmpi sge, %17, %18 : vector<256x128xi32>
    %c0_i32_5 = arith.constant 0 : i32
    %20 = vector.broadcast %c0_i32_5 : i32 to vector<256x128xi32>
    %21 = arith.subi %17, %20 : vector<256x128xi32>
    %c2_i32 = arith.constant 2 : i32
    %c0_i32_6 = arith.constant 0 : i32
    %22 = arith.cmpi eq, %c2_i32, %c0_i32_6 : i32
    %c1_i32_7 = arith.constant 1 : i32
    %23 = arith.select %22, %c1_i32_7, %c2_i32 : i32
    %24 = vector.broadcast %23 : i32 to vector<256x128xi32>
    %25 = arith.remsi %21, %24 : vector<256x128xi32>
    %c0_i32_8 = arith.constant 0 : i32
    %26 = vector.broadcast %c0_i32_8 : i32 to vector<256x128xi32>
    %27 = arith.cmpi ne, %25, %26 : vector<256x128xi32>
    %c0_i32_9 = arith.constant 0 : i32
    %28 = vector.broadcast %c0_i32_9 : i32 to vector<256x128xi32>
    %29 = arith.cmpi slt, %25, %28 : vector<256x128xi32>
    %c0_i32_10 = arith.constant 0 : i32
    %30 = arith.cmpi slt, %23, %c0_i32_10 : i32
    %31 = vector.broadcast %30 : i1 to vector<256x128xi1>
    %32 = vector.broadcast %31 : vector<256x128xi1> to vector<256x128xi1>
    %33 = arith.xori %29, %32 : vector<256x128xi1>
    %34 = arith.andi %33, %27 : vector<256x128xi1>
    %35 = vector.broadcast %23 : i32 to vector<256x128xi32>
    %36 = arith.addi %25, %35 : vector<256x128xi32>
    %37 = arith.select %34, %36, %25 : vector<256x128xi1>, vector<256x128xi32>
    %c0_i32_11 = arith.constant 0 : i32
    %38 = vector.broadcast %c0_i32_11 : i32 to vector<256x128xi32>
    %39 = arith.cmpi eq, %37, %38 : vector<256x128xi32>
    %40 = arith.andi %19, %39 : vector<256x128xi1>
    %c3_i32 = arith.constant 3 : i32
    %41 = vector.broadcast %c3_i32 : i32 to vector<256x128xi32>
    %42 = arith.cmpi slt, %17, %41 : vector<256x128xi32>
    %43 = arith.andi %40, %42 : vector<256x128xi1>
    %c0_i32_12 = arith.constant 0 : i32
    %44 = vector.broadcast %c0_i32_12 : i32 to vector<256x128xi32>
    %45 = arith.cmpi sgt, %17, %44 : vector<256x128xi32>
    %c0_i32_13 = arith.constant 0 : i32
    %46 = vector.broadcast %c0_i32_13 : i32 to vector<256x128xi32>
    %47 = arith.subi %17, %46 : vector<256x128xi32>
    %c2_i32_14 = arith.constant 2 : i32
    %c0_i32_15 = arith.constant 0 : i32
    %48 = arith.cmpi eq, %c2_i32_14, %c0_i32_15 : i32
    %c1_i32_16 = arith.constant 1 : i32
    %49 = arith.select %48, %c1_i32_16, %c2_i32_14 : i32
    %50 = vector.broadcast %49 : i32 to vector<256x128xi32>
    %51 = arith.remsi %47, %50 : vector<256x128xi32>
    %c0_i32_17 = arith.constant 0 : i32
    %52 = vector.broadcast %c0_i32_17 : i32 to vector<256x128xi32>
    %53 = arith.cmpi ne, %51, %52 : vector<256x128xi32>
    %c0_i32_18 = arith.constant 0 : i32
    %54 = vector.broadcast %c0_i32_18 : i32 to vector<256x128xi32>
    %55 = arith.cmpi slt, %51, %54 : vector<256x128xi32>
    %c0_i32_19 = arith.constant 0 : i32
    %56 = arith.cmpi slt, %49, %c0_i32_19 : i32
    %57 = vector.broadcast %56 : i1 to vector<256x128xi1>
    %58 = vector.broadcast %57 : vector<256x128xi1> to vector<256x128xi1>
    %59 = arith.xori %55, %58 : vector<256x128xi1>
    %60 = arith.andi %59, %53 : vector<256x128xi1>
    %61 = vector.broadcast %49 : i32 to vector<256x128xi32>
    %62 = arith.addi %51, %61 : vector<256x128xi32>
    %63 = arith.select %60, %62, %51 : vector<256x128xi1>, vector<256x128xi32>
    %c1_i32_20 = arith.constant 1 : i32
    %64 = vector.broadcast %c1_i32_20 : i32 to vector<256x128xi32>
    %65 = arith.cmpi eq, %63, %64 : vector<256x128xi32>
    %66 = arith.andi %45, %65 : vector<256x128xi1>
    %c1_i32_21 = arith.constant 1 : i32
    %67 = vector.broadcast %c1_i32_21 : i32 to vector<256x128xi32>
    %68 = arith.cmpi sge, %17, %67 : vector<256x128xi32>
    %c1_i32_22 = arith.constant 1 : i32
    %69 = vector.broadcast %c1_i32_22 : i32 to vector<256x128xi32>
    %70 = arith.subi %17, %69 : vector<256x128xi32>
    %c2_i32_23 = arith.constant 2 : i32
    %c0_i32_24 = arith.constant 0 : i32
    %71 = arith.cmpi eq, %c2_i32_23, %c0_i32_24 : i32
    %c1_i32_25 = arith.constant 1 : i32
    %72 = arith.select %71, %c1_i32_25, %c2_i32_23 : i32
    %73 = vector.broadcast %72 : i32 to vector<256x128xi32>
    %74 = arith.remsi %70, %73 : vector<256x128xi32>
    %c0_i32_26 = arith.constant 0 : i32
    %75 = vector.broadcast %c0_i32_26 : i32 to vector<256x128xi32>
    %76 = arith.cmpi ne, %74, %75 : vector<256x128xi32>
    %c0_i32_27 = arith.constant 0 : i32
    %77 = vector.broadcast %c0_i32_27 : i32 to vector<256x128xi32>
    %78 = arith.cmpi slt, %74, %77 : vector<256x128xi32>
    %c0_i32_28 = arith.constant 0 : i32
    %79 = arith.cmpi slt, %72, %c0_i32_28 : i32
    %80 = vector.broadcast %79 : i1 to vector<256x128xi1>
    %81 = vector.broadcast %80 : vector<256x128xi1> to vector<256x128xi1>
    %82 = arith.xori %78, %81 : vector<256x128xi1>
    %83 = arith.andi %82, %76 : vector<256x128xi1>
    %84 = vector.broadcast %72 : i32 to vector<256x128xi32>
    %85 = arith.addi %74, %84 : vector<256x128xi32>
    %86 = arith.select %83, %85, %74 : vector<256x128xi1>, vector<256x128xi32>
    %c0_i32_29 = arith.constant 0 : i32
    %87 = vector.broadcast %c0_i32_29 : i32 to vector<256x128xi32>
    %88 = arith.cmpi eq, %86, %87 : vector<256x128xi32>
    %89 = arith.andi %68, %88 : vector<256x128xi1>
    %c3_i32_30 = arith.constant 3 : i32
    %90 = vector.broadcast %c3_i32_30 : i32 to vector<256x128xi32>
    %91 = arith.cmpi slt, %17, %90 : vector<256x128xi32>
    %92 = arith.andi %89, %91 : vector<256x128xi1>
    %c1_i32_31 = arith.constant 1 : i32
    %93 = vector.broadcast %c1_i32_31 : i32 to vector<256x128xi32>
    %94 = arith.cmpi sgt, %17, %93 : vector<256x128xi32>
    %c1_i32_32 = arith.constant 1 : i32
    %95 = vector.broadcast %c1_i32_32 : i32 to vector<256x128xi32>
    %96 = arith.subi %17, %95 : vector<256x128xi32>
    %c2_i32_33 = arith.constant 2 : i32
    %c0_i32_34 = arith.constant 0 : i32
    %97 = arith.cmpi eq, %c2_i32_33, %c0_i32_34 : i32
    %c1_i32_35 = arith.constant 1 : i32
    %98 = arith.select %97, %c1_i32_35, %c2_i32_33 : i32
    %99 = vector.broadcast %98 : i32 to vector<256x128xi32>
    %100 = arith.remsi %96, %99 : vector<256x128xi32>
    %c0_i32_36 = arith.constant 0 : i32
    %101 = vector.broadcast %c0_i32_36 : i32 to vector<256x128xi32>
    %102 = arith.cmpi ne, %100, %101 : vector<256x128xi32>
    %c0_i32_37 = arith.constant 0 : i32
    %103 = vector.broadcast %c0_i32_37 : i32 to vector<256x128xi32>
    %104 = arith.cmpi slt, %100, %103 : vector<256x128xi32>
    %c0_i32_38 = arith.constant 0 : i32
    %105 = arith.cmpi slt, %98, %c0_i32_38 : i32
    %106 = vector.broadcast %105 : i1 to vector<256x128xi1>
    %107 = vector.broadcast %106 : vector<256x128xi1> to vector<256x128xi1>
    %108 = arith.xori %104, %107 : vector<256x128xi1>
    %109 = arith.andi %108, %102 : vector<256x128xi1>
    %110 = vector.broadcast %98 : i32 to vector<256x128xi32>
    %111 = arith.addi %100, %110 : vector<256x128xi32>
    %112 = arith.select %109, %111, %100 : vector<256x128xi1>, vector<256x128xi32>
    %c1_i32_39 = arith.constant 1 : i32
    %113 = vector.broadcast %c1_i32_39 : i32 to vector<256x128xi32>
    %114 = arith.cmpi eq, %112, %113 : vector<256x128xi32>
    %115 = arith.andi %94, %114 : vector<256x128xi1>
    %c127_i32 = arith.constant 127 : i32
    %116 = tpu.dynamic_rotate %0 by %c127_i32 dim 1 : vector<256x128xf32>, i32 -> vector<256x128xf32>
    %c1_i32_40 = arith.constant 1 : i32
    %117 = tpu.dynamic_rotate %0 by %c1_i32_40 dim 1 : vector<256x128xf32>, i32 -> vector<256x128xf32>
    %118 = arith.cmpf ogt, %0, %116 : vector<256x128xf32>
    %119 = arith.cmpf one, %0, %0 : vector<256x128xf32>
    %120 = arith.cmpf one, %116, %116 : vector<256x128xf32>
    %cst = arith.constant dense<true> : vector<256x128xi1>
    %121 = arith.xori %120, %cst : vector<256x128xi1>
    %122 = arith.andi %119, %121 : vector<256x128xi1>
    %123 = arith.ori %118, %122 : vector<256x128xi1>
    %124 = arith.select %123, %116, %0 : vector<256x128xi1>, vector<256x128xf32>
    %125 = arith.cmpf ogt, %117, %0 : vector<256x128xf32>
    %126 = arith.cmpf one, %117, %117 : vector<256x128xf32>
    %127 = arith.cmpf one, %0, %0 : vector<256x128xf32>
    %cst_41 = arith.constant dense<true> : vector<256x128xi1>
    %128 = arith.xori %127, %cst_41 : vector<256x128xi1>
    %129 = arith.andi %126, %128 : vector<256x128xi1>
    %130 = arith.ori %125, %129 : vector<256x128xi1>
    %131 = arith.select %130, %117, %0 : vector<256x128xi1>, vector<256x128xf32>
    %132 = arith.select %66, %131, %0 : vector<256x128xi1>, vector<256x128xf32>
    %133 = arith.select %43, %124, %132 : vector<256x128xi1>, vector<256x128xf32>
    %c127_i32_42 = arith.constant 127 : i32
    %134 = tpu.dynamic_rotate %133 by %c127_i32_42 dim 1 : vector<256x128xf32>, i32 -> vector<256x128xf32>
    %c1_i32_43 = arith.constant 1 : i32
    %135 = tpu.dynamic_rotate %133 by %c1_i32_43 dim 1 : vector<256x128xf32>, i32 -> vector<256x128xf32>
    %136 = arith.cmpf ogt, %133, %134 : vector<256x128xf32>
    %137 = arith.cmpf one, %133, %133 : vector<256x128xf32>
    %138 = arith.cmpf one, %134, %134 : vector<256x128xf32>
    %cst_44 = arith.constant dense<true> : vector<256x128xi1>
    %139 = arith.xori %138, %cst_44 : vector<256x128xi1>
    %140 = arith.andi %137, %139 : vector<256x128xi1>
    %141 = arith.ori %136, %140 : vector<256x128xi1>
    %142 = arith.select %141, %134, %133 : vector<256x128xi1>, vector<256x128xf32>
    %143 = arith.cmpf ogt, %135, %133 : vector<256x128xf32>
    %144 = arith.cmpf one, %135, %135 : vector<256x128xf32>
    %145 = arith.cmpf one, %133, %133 : vector<256x128xf32>
    %cst_45 = arith.constant dense<true> : vector<256x128xi1>
    %146 = arith.xori %145, %cst_45 : vector<256x128xi1>
    %147 = arith.andi %144, %146 : vector<256x128xi1>
    %148 = arith.ori %143, %147 : vector<256x128xi1>
    %149 = arith.select %148, %135, %133 : vector<256x128xi1>, vector<256x128xf32>
    %150 = arith.select %115, %149, %133 : vector<256x128xi1>, vector<256x128xf32>
    %151 = arith.select %92, %142, %150 : vector<256x128xi1>, vector<256x128xf32>
    %c127_i32_46 = arith.constant 127 : i32
    %152 = tpu.dynamic_rotate %151 by %c127_i32_46 dim 1 : vector<256x128xf32>, i32 -> vector<256x128xf32>
    %c1_i32_47 = arith.constant 1 : i32
    %153 = tpu.dynamic_rotate %151 by %c1_i32_47 dim 1 : vector<256x128xf32>, i32 -> vector<256x128xf32>
    %154 = arith.cmpf ogt, %151, %152 : vector<256x128xf32>
    %155 = arith.cmpf one, %151, %151 : vector<256x128xf32>
    %156 = arith.cmpf one, %152, %152 : vector<256x128xf32>
    %cst_48 = arith.constant dense<true> : vector<256x128xi1>
    %157 = arith.xori %156, %cst_48 : vector<256x128xi1>
    %158 = arith.andi %155, %157 : vector<256x128xi1>
    %159 = arith.ori %154, %158 : vector<256x128xi1>
    %160 = arith.select %159, %152, %151 : vector<256x128xi1>, vector<256x128xf32>
    %161 = arith.cmpf ogt, %153, %151 : vector<256x128xf32>
    %162 = arith.cmpf one, %153, %153 : vector<256x128xf32>
    %163 = arith.cmpf one, %151, %151 : vector<256x128xf32>
    %cst_49 = arith.constant dense<true> : vector<256x128xi1>
    %164 = arith.xori %163, %cst_49 : vector<256x128xi1>
    %165 = arith.andi %162, %164 : vector<256x128xi1>
    %166 = arith.ori %161, %165 : vector<256x128xi1>
    %167 = arith.select %166, %153, %151 : vector<256x128xi1>, vector<256x128xf32>
    %168 = arith.select %66, %167, %151 : vector<256x128xi1>, vector<256x128xf32>
    %169 = arith.select %43, %160, %168 : vector<256x128xi1>, vector<256x128xf32>
    %c127_i32_50 = arith.constant 127 : i32
    %170 = tpu.dynamic_rotate %169 by %c127_i32_50 dim 1 : vector<256x128xf32>, i32 -> vector<256x128xf32>
    %c1_i32_51 = arith.constant 1 : i32
    %171 = tpu.dynamic_rotate %169 by %c1_i32_51 dim 1 : vector<256x128xf32>, i32 -> vector<256x128xf32>
    %172 = arith.cmpf ogt, %169, %170 : vector<256x128xf32>
    %173 = arith.cmpf one, %169, %169 : vector<256x128xf32>
    %174 = arith.cmpf one, %170, %170 : vector<256x128xf32>
    %cst_52 = arith.constant dense<true> : vector<256x128xi1>
    %175 = arith.xori %174, %cst_52 : vector<256x128xi1>
    %176 = arith.andi %173, %175 : vector<256x128xi1>
    %177 = arith.ori %172, %176 : vector<256x128xi1>
    %178 = arith.select %177, %170, %169 : vector<256x128xi1>, vector<256x128xf32>
    %179 = arith.cmpf ogt, %171, %169 : vector<256x128xf32>
    %180 = arith.cmpf one, %171, %171 : vector<256x128xf32>
    %181 = arith.cmpf one, %169, %169 : vector<256x128xf32>
    %cst_53 = arith.constant dense<true> : vector<256x128xi1>
    %182 = arith.xori %181, %cst_53 : vector<256x128xi1>
    %183 = arith.andi %180, %182 : vector<256x128xi1>
    %184 = arith.ori %179, %183 : vector<256x128xi1>
    %185 = arith.select %184, %171, %169 : vector<256x128xi1>, vector<256x128xf32>
    %186 = arith.select %115, %185, %169 : vector<256x128xi1>, vector<256x128xf32>
    %187 = arith.select %92, %178, %186 : vector<256x128xi1>, vector<256x128xf32>
    %c0_54 = arith.constant 0 : index
    %c0_55 = arith.constant 0 : index
    %188 = vector.load %arg2[%c0_54, %c0_55] : memref<256x128xf32, #tpu.memory_space<vmem>>, vector<256x128xf32>
    tpu.vector_store %arg2[%c0_54, %c0_55], %187 {strides = array<i32>} : memref<256x128xf32, #tpu.memory_space<vmem>>, vector<256x128xf32>,
    return
  }
  func.func @transform_0(%arg0: i32) -> (i32, i32) {
    %c0_i32 = arith.constant 0 : i32
    %c0_i32_0 = arith.constant 0 : i32
    return %arg0, %c0_i32 : i32, i32
  }
  func.func @transform_1(%arg0: i32) -> (i32, i32) {
    %c0_i32 = arith.constant 0 : i32
    %c0_i32_0 = arith.constant 0 : i32
    return %arg0, %c0_i32 : i32, i32
  }
}

</mosaic_0001>

<bundles_post_ra>
// kernel: tpu_custom_call.1
= control target key start
LH: loop header
LB: loop body
LE: loop exit
PB: predicated region body
PF: predicated region fallthrough
CT: control target
= control target key end

     0   :  { %6 = vsyncpa [#allocation3], 0  ;;  %s9879_s0 = inlined_call_operand.hbm [shape: f32[256,128], index: 0, kind: input, shape index: {}]   ;;  %s9880_s1 = inlined_call_operand.hbm [shape: f32[256,128], index: 1, kind: output, shape index: {}]  }
   0x1   :  { %7 = vsyncpa [#allocation4], 0  ;;  %s12_s8 = sshll.u32 %s9879_s0, 4  ;;  %s2665_s9 = smov [#allocation2]   ;;  %s13_s8 = int_to_ptr.hbm [resolvable:$true] %s12_s8 }
   0x2   :  { %s14_s10 = sshll.u32 %s2665_s9, 4  ;;  %s2666_s11 = smov 128   ;;  %s15_s10 = int_to_ptr.vmem [resolvable:$true] %s14_s10 }
   0x3   :  { %s2667_s12 = smov 8  }
   0x4   :  { %20 = dma.hbm_to_vmem [thread:$0]  %s13_s8, 4096, %s15_s10, [#allocation3], %s2666_s11, %s2666_s11, %s2667_s12  }
   0x5   :  { %2661 = dma.done.wait [#allocation3], 4096  }
   0x6   :  { %2662 = vsyncadd [#allocation3], 4294963200  ;;  %v2688_v0 = vld [vmem:[#allocation2 + $0x20] sm:$0xff]  ;;  %v2690_v1 = vld [vmem:[#allocation2 + $0x10] sm:$0xff]  ;;  %s2668_s13 = smov 127   ;;  %s2669_s0 = smov 1   ;;  %v57_v56 = vlaneseq }
   0x7   :  { %v2692_v2 = vld [vmem:[#allocation2] sm:$0xff]  ;;  %119 = vrot.lane.b32.xlu2 %v2688_v0, %s2668_s13  ;;  %115 = vrot.lane.b32.xlu1 %v2690_v1, %s2668_s13  ;;  %v2700_v3 = vld [vmem:[#allocation2 + $0x28] sm:$0xff]  ;;  %v2702_v4 = vld [vmem:[#allocation2 + $0x18] sm:$0xff]  ;;  %vm9908_vm2 = vmmov 1   ;;  %s2671_s14 = smov [#allocation5]   ;;  %s2581_s18 = sshll.u32 %s9880_s1, 4  ;;  %s2582_s18 = int_to_ptr.hbm [resolvable:$true] %s2581_s18 }
   0x8   :  { %111 = vrot.lane.b32.xlu0 %v2692_v2, %s2668_s13  ;;  %v2704_v5 = vld [vmem:[#allocation2 + $0x8] sm:$0xff]  ;;  %v2712_v6 = vld [vmem:[#allocation2 + $0x40] sm:$0xff]  ;;  %v2714_v7 = vld [vmem:[#allocation2 + $0x38] sm:$0xff]  ;;  %v58_v57 = vand.u32 127, %v57_v56  ;;  %vm271_vm1 = vcmp.ne.f32.partialorder %v2692_v2, %v2692_v2  ;;  %s2579_s15 = sshll.u32 %s2671_s14, 4  ;;  %s2580_s15 = int_to_ptr.vmem [resolvable:$true] %s2579_s15 }
   0x9   :  { %v2716_v8 = vld [vmem:[#allocation2 + $0x30] sm:$0xff]  ;;  %v2724_v9 = vld [vmem:[#allocation2 + $0x58] sm:$0xff]  ;;  %v2728_v11 = vld [vmem:[#allocation2 + $0x48] sm:$0xff] }
   0xa   :  { %v2726_v10 = vld [vmem:[#allocation2 + $0x50] sm:$0xff]  ;;  %v2738_v13 = vld [vmem:[#allocation2 + $0x68] sm:$0xff]  ;;  %v2740_v14 = vld [vmem:[#allocation2 + $0x60] sm:$0xff]  ;;  %v2924_v60 = vand.u32 3, %v58_v57  ;;  %v10148_v57 = vmov 0 }
   0xb   :  { %v2736_v12 = vld [vmem:[#allocation2 + $0x70] sm:$0xff]  ;;  %v2748_v15 = vld [vmem:[#allocation2 + $0x88] sm:$0xff]  ;;  %v2750_v16 = vld [vmem:[#allocation2 + $0x80] sm:$0xff] }
   0xc   :  { %v2752_v17 = vld [vmem:[#allocation2 + $0x78] sm:$0xff]  ;;  %v2760_v18 = vld [vmem:[#allocation2 + $0xa0] sm:$0xff]  ;;  %v2764_v20 = vld [vmem:[#allocation2 + $0x90] sm:$0xff]  ;;  %10124 = vst [vmem:[#allocation19_spill] sm:$0xff] %v2924_v60  ;;  %v76_v62 = vand.u32 1, %v2924_v60  ;;  %vm9892_vm8 = vcmp.lt.s32.totalorder %v2924_v60, 3 }
   0xd   :  { %10113 = vst [vmem:[#allocation8_spill] sm:$0xff] %v2760_v18  ;;  %v2762_v19 = vld [vmem:[#allocation2 + $0x98] sm:$0xff]  ;;  %v2774_v22 = vld [vmem:[#allocation2 + $0xb0] sm:$0xff]  ;;  %v2776_v23 = vld [vmem:[#allocation2 + $0xa8] sm:$0xff]  ;;  %vm88_vm10 = vcmp.gt.s32.totalorder %v2924_v60, 0 }
   0xe   :  { %10114 = vst [vmem:[#allocation9_spill] sm:$0xff] %v2762_v19  ;;  %v2772_v21 = vld [vmem:[#allocation2 + $0xb8] sm:$0xff]  ;;  %v2784_v24 = vld [vmem:[#allocation2 + $0xd0] sm:$0xff]  ;;  %v2786_v25 = vld [vmem:[#allocation2 + $0xc8] sm:$0xff]  ;;  %vm84_vm7 = vcmp.eq.s32.totalorder %v76_v62, 0  ;;  %vm89_vm11 = vcmp.eq.s32.totalorder %v76_v62, 1 }
   0xf   :  { %121 = vrot.lane.b32.xlu2 %v2700_v3, %s2668_s13  ;;  %117 = vrot.lane.b32.xlu1 %v2702_v4, %s2668_s13  ;;  %10115 = vst [vmem:[#allocation10_spill] sm:$0xff] %v2772_v21  ;;  %v2788_v26 = vld [vmem:[#allocation2 + $0xc0] sm:$0xff]  ;;  %v2796_v27 = vld [vmem:[#allocation2 + $0xe8] sm:$0xff]  ;;  %v2798_v29 = vld [vmem:[#allocation2 + $0xd8] sm:$0xff] }
  0x10   :  { %113 = vrot.lane.b32.xlu0 %v2704_v5, %s2668_s13  ;;  %10116 = vst [vmem:[#allocation11_spill] sm:$0xff] %v2774_v22  ;;  %v53_v28 = vld [vmem:[#allocation2 + $0xe0] sm:$0xff]  ;;  %v56_v30 = vld [vmem:[#allocation2 + $0xf8] sm:$0xff]  ;;  %v2805_v31 = vld [vmem:[#allocation2 + $0xf0] sm:$0xff] }
  0x11   :  { %10117 = vst [vmem:[#allocation12_spill] sm:$0xff] %v2784_v24  ;;  %vm2956_vm13 = vmand %vm84_vm7, %vm9892_vm8 }
  0x12   :  { %10118 = vst [vmem:[#allocation13_spill] sm:$0xff] %v2786_v25  ;;  %vm2960_vm15 = vmand %vm88_vm10, %vm89_vm11 }
  0x13   :  { %10119 = vst [vmem:[#allocation14_spill] sm:$0xff] %v2796_v27 }
  0x14   :  { %10120 = vst [vmem:[#allocation15_spill] sm:$0xff] %v2805_v31 }
  0x17   :  { %127 = vrot.lane.b32.xlu2 %v2712_v6, %s2668_s13  ;;  %125 = vrot.lane.b32.xlu1 %v2714_v7, %s2668_s13 }
  0x18   :  { %123 = vrot.lane.b32.xlu0 %v2716_v8, %s2668_s13 }
  0x1f   :  { %133 = vrot.lane.b32.xlu2 %v2724_v9, %s2668_s13  ;;  %131 = vrot.lane.b32.xlu1 %v2726_v10, %s2668_s13 }
  0x20   :  { %129 = vrot.lane.b32.xlu0 %v2728_v11, %s2668_s13 }
  0x27   :  { %139 = vrot.lane.b32.xlu2 %v2736_v12, %s2668_s13  ;;  %137 = vrot.lane.b32.xlu1 %v2738_v13, %s2668_s13 }
  0x28   :  { %135 = vrot.lane.b32.xlu0 %v2740_v14, %s2668_s13 }
  0x2f   :  { %145 = vrot.lane.b32.xlu2 %v2748_v15, %s2668_s13  ;;  %143 = vrot.lane.b32.xlu1 %v2750_v16, %s2668_s13 }
  0x30   :  { %141 = vrot.lane.b32.xlu0 %v2752_v17, %s2668_s13 }
  0x37   :  { %151 = vrot.lane.b32.xlu2 %v2760_v18, %s2668_s13  ;;  %149 = vrot.lane.b32.xlu1 %v2762_v19, %s2668_s13 }
  0x38   :  { %147 = vrot.lane.b32.xlu0 %v2764_v20, %s2668_s13 }
  0x3f   :  { %157 = vrot.lane.b32.xlu2 %v2772_v21, %s2668_s13  ;;  %155 = vrot.lane.b32.xlu1 %v2774_v22, %s2668_s13 }
  0x40   :  { %153 = vrot.lane.b32.xlu0 %v2776_v23, %s2668_s13 }
  0x47   :  { %163 = vrot.lane.b32.xlu2 %v2784_v24, %s2668_s13  ;;  %161 = vrot.lane.b32.xlu1 %v2786_v25, %s2668_s13 }
  0x48   :  { %159 = vrot.lane.b32.xlu0 %v2788_v26, %s2668_s13 }
  0x4f   :  { %169 = vrot.lane.b32.xlu2 %v2796_v27, %s2668_s13  ;;  %167 = vrot.lane.b32.xlu1 %v53_v28, %s2668_s13 }
  0x50   :  { %165 = vrot.lane.b32.xlu0 %v2798_v29, %s2668_s13 }
  0x57   :  { %173 = vrot.lane.b32.xlu1 %v56_v30, %s2668_s13  ;;  %175 = vrot.lane.b32.xlu2 %v2692_v2, %s2669_s0 }
  0x58   :  { %171 = vrot.lane.b32.xlu0 %v2805_v31, %s2668_s13 }
  0x5f   :  { %179 = vrot.lane.b32.xlu1 %v2690_v1, %s2669_s0  ;;  %181 = vrot.lane.b32.xlu2 %v2702_v4, %s2669_s0 }
  0x60   :  { %177 = vrot.lane.b32.xlu0 %v2704_v5, %s2669_s0 }
  0x61   :  { %v2818_v32 = vpop.permute.xlu2 %119 }
  0x67   :  { %185 = vrot.lane.b32.xlu1 %v2700_v3, %s2669_s0  ;;  %187 = vrot.lane.b32.xlu2 %v2716_v8, %s2669_s0 }
  0x68   :  { %183 = vrot.lane.b32.xlu0 %v2688_v0, %s2669_s0 }
  0x69   :  { %v2826_v33 = vpop.permute.xlu2 %121 }
  0x6f   :  { %191 = vrot.lane.b32.xlu1 %v2712_v6, %s2669_s0  ;;  %193 = vrot.lane.b32.xlu2 %v2728_v11, %s2669_s0 }
  0x70   :  { %189 = vrot.lane.b32.xlu0 %v2714_v7, %s2669_s0 }
  0x71   :  { %v2834_v34 = vpop.permute.xlu2 %127 }
  0x77   :  { %197 = vrot.lane.b32.xlu1 %v2724_v9, %s2669_s0  ;;  %199 = vrot.lane.b32.xlu2 %v2740_v14, %s2669_s0 }
  0x78   :  { %195 = vrot.lane.b32.xlu0 %v2726_v10, %s2669_s0 }
  0x79   :  { %v2842_v35 = vpop.permute.xlu2 %133  ;;  %v2844_v36 = vpop.permute.xlu1 %115 }
  0x7a   :  { %v2846_v37 = vpop.permute.xlu0 %111  ;;  %vm305_vm7 = vcmp.ne.f32.partialorder %v2844_v36, %v2844_v36 }
  0x7b   :  { %vm303_vm0 = vcmp.ne.f32.partialorder %v2846_v37, %v2846_v37  ;;  %vm239_vm6 = vcmp.gt.f32.partialorder %v2692_v2, %v2846_v37 }
  0x7c   :  { %vm335_vm3 = vmxor %vm303_vm0, %vm9908_vm2 }
  0x7d   :  { %vm367_vm4 = vmand %vm271_vm1, %vm335_vm3 }
  0x7e   :  { %vm2944_vm9 = vmor %vm239_vm6, %vm367_vm4  ;;  %vm274_vm4 = vcmp.ne.f32.partialorder %v2702_v4, %v2702_v4 }
  0x7f   :  { %203 = vrot.lane.b32.xlu1 %v2736_v12, %s2669_s0  ;;  %205 = vrot.lane.b32.xlu2 %v2752_v17, %s2669_s0  ;;  %vm527_vm3 = vmxor %vm271_vm1, %vm9908_vm2 }
  0x80   :  { %201 = vrot.lane.b32.xlu0 %v2738_v13, %s2669_s0 }
  0x81   :  { %v2854_v38 = vpop.permute.xlu2 %139  ;;  %v2856_v39 = vpop.permute.xlu1 %117 }
  0x82   :  { %v2858_v40 = vpop.permute.xlu0 %113  ;;  %vm306_vm5 = vcmp.ne.f32.partialorder %v2856_v39, %v2856_v39  ;;  %vm242_vm1 = vcmp.gt.f32.partialorder %v2702_v4, %v2856_v39 }
  0x83   :  { %vm2950_vm12 = vmxor %vm306_vm5, %vm9908_vm2 }
  0x84   :  { %vm370_vm10 = vmand %vm274_vm4, %vm2950_vm12 }
  0x85   :  { %vm3005_vm12 = vmor %vm242_vm1, %vm370_vm10  ;;  %vm9896_vm10 = vcmp.ne.f32.partialorder %v2690_v1, %v2690_v1 }
  0x87   :  { %209 = vrot.lane.b32.xlu1 %v2748_v15, %s2669_s0  ;;  %211 = vrot.lane.b32.xlu2 %v2764_v20, %s2669_s0 }
  0x88   :  { %207 = vrot.lane.b32.xlu0 %v2750_v16, %s2669_s0 }
  0x89   :  { %v2866_v41 = vpop.permute.xlu2 %145  ;;  %v2868_v42 = vpop.permute.xlu1 %125 }
  0x8a   :  { %v2870_v43 = vpop.permute.xlu0 %123 }
  0x8b   :  { %vm309_vm11 = vcmp.ne.f32.partialorder %v2870_v43, %v2870_v43 }
  0x8f   :  { %215 = vrot.lane.b32.xlu1 %v2760_v18, %s2669_s0  ;;  %217 = vrot.lane.b32.xlu2 %v2776_v23, %s2669_s0  ;;  %v10221_v18 = vmov 0 }
  0x90   :  { %213 = vrot.lane.b32.xlu0 %v2762_v19, %s2669_s0  ;;  %v10181_v19 = vmov 0 }
  0x91   :  { %v2878_v44 = vpop.permute.xlu2 %151  ;;  %v2880_v45 = vpop.permute.xlu1 %131 }
  0x92   :  { %v2882_v46 = vpop.permute.xlu0 %129 }
  0x97   :  { %221 = vrot.lane.b32.xlu1 %v2772_v21, %s2669_s0  ;;  %223 = vrot.lane.b32.xlu2 %v2788_v26, %s2669_s0 }
  0x98   :  { %219 = vrot.lane.b32.xlu0 %v2774_v22, %s2669_s0  ;;  %v431_v22 = vsel %vm2944_vm9, %v2846_v37, %v2692_v2  ;;  %vm2999_vm9 = vmxor %vm305_vm7, %vm9908_vm2  ;;  %vm9897_vm7 = vcmp.ne.f32.partialorder %v2716_v8, %v2716_v8 }
  0x99   :  { %v2890_v47 = vpop.permute.xlu2 %157  ;;  %v2892_v48 = vpop.permute.xlu1 %137 }
  0x9a   :  { %v2894_v49 = vpop.permute.xlu0 %135 }
  0x9f   :  { %227 = vrot.lane.b32.xlu1 %v2784_v24, %s2669_s0  ;;  %229 = vrot.lane.b32.xlu2 %v2798_v29, %s2669_s0 }
  0xa0   :  { %225 = vrot.lane.b32.xlu0 %v2786_v25, %s2669_s0  ;;  %v10133_v25 = vmov 0 }
  0xa1   :  { %v2902_v50 = vpop.permute.xlu2 %163  ;;  %v2904_v51 = vpop.permute.xlu1 %143  ;;  %v10134_v25 = vsel %vm2960_vm15, 4294967295, %v10133_v25 }
  0xa2   :  { %10121 = vst [vmem:[#allocation16_spill] sm:$0xff] %v2902_v50  ;;  %v2906_v52 = vpop.permute.xlu0 %141  ;;  %v10183_v50 = vmov 0 }
  0xa3   :  { %10135 = vst [vmem:[#allocation22_spill] sm:$0xff] %v10134_v25 }
  0xa7   :  { %233 = vrot.lane.b32.xlu1 %v2796_v27, %s2669_s0  ;;  %235 = vrot.lane.b32.xlu2 %v2805_v31, %s2669_s0  ;;  %v10130_v27 = vmov 0 }
  0xa8   :  { %231 = vrot.lane.b32.xlu0 %v53_v28, %s2669_s0  ;;  %v10131_v27 = vsel %vm2956_vm13, 4294967295, %v10130_v27 }
  0xa9   :  { %v2913_v53 = vpop.permute.xlu2 %169  ;;  %v2915_v54 = vpop.permute.xlu1 %149  ;;  %10132 = vst [vmem:[#allocation21_spill] sm:$0xff] %v10131_v27 }
  0xaa   :  { %10122 = vst [vmem:[#allocation17_spill] sm:$0xff] %v2913_v53  ;;  %v2917_v55 = vpop.permute.xlu0 %147 }
  0xb0   :  { %237 = vrot.lane.b32.xlu0 %v56_v30, %s2669_s0 }
  0xb1   :  { %v2920_v58 = vpop.permute.xlu1 %155  ;;  %v176_v59 = vpop.permute.xlu2 %175 }
  0xb2   :  { %10123 = vst [vmem:[#allocation18_spill] sm:$0xff] %v2920_v58  ;;  %v2926_v61 = vpop.permute.xlu0 %153  ;;  %vm495_vm14 = vcmp.ne.f32.partialorder %v176_v59, %v176_v59  ;;  %vm463_vm0 = vcmp.gt.f32.partialorder %v176_v59, %v2692_v2 }
  0xb3   :  { %vm559_vm5 = vmand %vm495_vm14, %vm527_vm3 }
  0xb4   :  { %vm591_vm6 = vmor %vm463_vm0, %vm559_vm5  ;;  %vm308_vm5 = vcmp.ne.f32.partialorder %v2826_v33, %v2826_v33 }
  0xb5   :  { %v623_v60 = vsel %vm591_vm6, %v176_v59, %v2692_v2  ;;  %vm341_vm0 = vmxor %vm309_vm11, %vm9908_vm2 }
  0xb6   :  { %v655_v59 = vsel %vm2960_vm15, %v623_v60, %v2692_v2  ;;  %vm530_vm6 = vmxor %vm274_vm4, %vm9908_vm2  ;;  %v10143_v60 = vmov 0  ;;  %vm304_vm4 = vcmp.ne.f32.partialorder %v2858_v40, %v2858_v40 }
  0xb7   :  { %v2996_v56 = vsel %vm2956_vm13, %v431_v22, %v655_v59  ;;  %vm3026_vm8 = vmxor %vm308_vm5, %vm9908_vm2  ;;  %vm245_vm5 = vcmp.gt.f32.partialorder %v2716_v8, %v2870_v43 }
  0xb8   :  { %10137 = vst [vmem:[#allocation24_spill] sm:$0xff] %v2996_v56  ;;  %719 = vrot.lane.b32.xlu1 %v2996_v56, %s2668_s13  ;;  %v10144_v60 = vsel %vm3026_vm8, 4294967295, %v10143_v60  ;;  %v434_v56 = vsel %vm3005_vm12, %v2856_v39, %v2702_v4  ;;  %vm312_vm12 = vcmp.ne.f32.partialorder %v2882_v46, %v2882_v46 }
  0xb9   :  { %v2937_v63 = vpop.permute.xlu1 %161  ;;  %v182_v28 = vpop.permute.xlu2 %181 }
  0xba   :  { %10125 = vst [vmem:[#allocation20_spill] sm:$0xff] %v2937_v63  ;;  %v2942_v30 = vpop.permute.xlu0 %159  ;;  %vm498_vm14 = vcmp.ne.f32.partialorder %v182_v28, %v182_v28  ;;  %vm466_vm3 = vcmp.gt.f32.partialorder %v182_v28, %v2702_v4 }
  0xbb   :  { %vm562_vm1 = vmand %vm498_vm14, %vm530_vm6 }
  0xbc   :  { %vm594_vm11 = vmor %vm466_vm3, %vm562_vm1 }
  0xbd   :  { %v626_v59 = vsel %vm594_vm11, %v182_v28, %v2702_v4  ;;  %vm373_vm14 = vmand %vm9897_vm7, %vm341_vm0  ;;  %v10145_v28 = vmov 0  ;;  %vm9906_vm7 = vcmp.ne.f32.partialorder %v2700_v3, %v2700_v3 }
  0xbe   :  { %vm3048_vm3 = vmand %vm9896_vm10, %vm2999_vm9  ;;  %vm307_vm9 = vcmp.ne.f32.partialorder %v2818_v32, %v2818_v32  ;;  %vm311_vm10 = vcmp.ne.f32.partialorder %v2834_v34, %v2834_v34 }
  0xbf   :  { %v10146_v28 = vsel %vm3048_vm3, 4294967295, %v10145_v28  ;;  %vm3059_vm0 = vmxor %vm304_vm4, %vm9908_vm2  ;;  %vm10152_vm3 = vcmp.ne.f32.partialorder %v2716_v8, %v2716_v8 }
  0xc0   :  { %v10149_v57 = vsel %vm3059_vm0, 4294967295, %v10148_v57  ;;  %vm3069_vm6 = vmor %vm245_vm5, %vm373_vm14  ;;  %vm9907_vm0 = vcmp.ne.f32.partialorder %v2704_v5, %v2704_v5 }
  0xc1   :  { %v2971_v62 = vpop.permute.xlu1 %167  ;;  %v188_v37 = vpop.permute.xlu2 %187  ;;  %vm344_vm11 = vmxor %vm312_vm12, %vm9908_vm2  ;;  %vm315_vm12 = vcmp.ne.f32.partialorder %v2894_v49, %v2894_v49  ;;  %v437_v63 = vsel %vm3069_vm6, %v2870_v43, %v2716_v8  ;;  %vm10161_vm6 = vnez %v10149_v57  ;;  %v10162_v43 = vmov 0 }
  0xc2   :  { %10136 = vst [vmem:[#allocation23_spill] sm:$0xff] %v2971_v62  ;;  %v2976_v24 = vpop.permute.xlu0 %165  ;;  %vm501_vm1 = vcmp.ne.f32.partialorder %v188_v37, %v188_v37  ;;  %vm469_vm4 = vcmp.gt.f32.partialorder %v188_v37, %v2716_v8  ;;  %vm3086_vm14 = vmxor %vm307_vm9, %vm9908_vm2  ;;  %vm10157_vm9 = vcmp.ne.f32.partialorder %v2728_v11, %v2728_v11 }
  0xc3   :  { %vm3099_vm8 = vmxor %vm311_vm10, %vm9908_vm2  ;;  %vm9910_vm10 = vcmp.ne.f32.partialorder %v2740_v14, %v2740_v14 }
  0xc9   :  { %v3019_v2 = vpop.permute.xlu1 %173 }
  0xca   :  { %10142 = vst [vmem:[#allocation25_spill] sm:$0xff] %v3019_v2  ;;  %v3023_v22 = vpop.permute.xlu0 %171  ;;  %v658_v2 = vsel %vm2960_vm15, %v626_v59, %v2702_v4  ;;  %v194_v4 = vpop.permute.xlu2 %193 }
  0xcb   :  { %v3056_v39 = vsel %vm2956_vm13, %v434_v56, %v658_v2  ;;  %vm533_vm13 = vmxor %vm10152_vm3, %vm9908_vm2  ;;  %v10153_v2 = vmov 0 }
  0xcc   :  { %10147 = vst [vmem:[#allocation26_spill] sm:$0xff] %v3056_v39  ;;  %725 = vrot.lane.b32.xlu1 %v3056_v39, %s2668_s13  ;;  %v10154_v2 = vsel %vm3086_vm14, 4294967295, %v10153_v2  ;;  %vm565_vm5 = vmand %vm501_vm1, %vm533_vm13  ;;  %v10155_v39 = vmov 0  ;;  %vm241_vm13 = vcmp.gt.f32.partialorder %v2690_v1, %v2844_v36 }
  0xcd   :  { %vm597_vm3 = vmor %vm469_vm4, %vm565_vm5  ;;  %v10156_v39 = vsel %vm3099_vm8, 4294967295, %v10155_v39  ;;  %vm251_vm8 = vcmp.gt.f32.partialorder %v2740_v14, %v2894_v49 }
  0xce   :  { %vm376_vm14 = vmand %vm10157_vm9, %vm344_vm11  ;;  %v629_v53 = vsel %vm597_vm3, %v188_v37, %v2716_v8  ;;  %vm10158_vm11 = vnez %v10144_v60  ;;  %v10159_v37 = vmov 0  ;;  %vm318_vm3 = vcmp.ne.f32.partialorder %v2906_v52, %v2906_v52 }
  0xcf   :  { %vm347_vm1 = vmxor %vm315_vm12, %vm9908_vm2  ;;  %v661_v21 = vsel %vm2960_vm15, %v629_v53, %v2716_v8  ;;  %vm248_vm12 = vcmp.gt.f32.partialorder %v2728_v11, %v2882_v46  ;;  %vm10164_vm9 = vnez %v10131_v27  ;;  %v10169_v60 = vmov 0 }
  0xd0   :  { %vm3124_vm4 = vmand %vm9906_vm7, %vm10158_vm11  ;;  %v3143_v8 = vsel %vm10164_vm9, %v437_v63, %v661_v21  ;;  %vm9923_vm9 = vcmp.ne.f32.partialorder %v2752_v17, %v2752_v17  ;;  %v10195_v53 = vmov 0 }
  0xd1   :  { %v3083_v56 = vpop.permute.xlu1 %179  ;;  %v10160_v37 = vsel %vm3124_vm4, 4294967295, %v10159_v37  ;;  %vm3133_vm5 = vmand %vm9907_vm0, %vm10161_vm6  ;;  %10165 = vst [vmem:[#allocation27_spill] sm:$0xff] %v3143_v8  ;;  %vm10168_vm6 = vnez %v10146_v28  ;;  %vm310_vm0 = vcmp.ne.f32.partialorder %v2868_v42, %v2868_v42  ;;  %v10174_v28 = vmov 0 }
  0xd2   :  { %v3092_v59 = vpop.permute.xlu0 %177  ;;  %v10163_v43 = vsel %vm3133_vm5, 4294967295, %v10162_v43  ;;  %vm3145_vm11 = vmor %vm248_vm12, %vm376_vm14  ;;  %vm504_vm14 = vcmp.ne.f32.partialorder %v194_v4, %v194_v4  ;;  %v3166_v63 = vpop.permute.xlu2 %199  ;;  %vm10173_vm12 = vmmov 1  }
  0xd3   :  { %vm3153_vm7 = vmor %vm241_vm13, %vm10168_vm6  ;;  %vm472_vm13 = vcmp.gt.f32.partialorder %v194_v4, %v2728_v11  ;;  %vm9924_vm6 = vcmp.ne.f32.partialorder %v2712_v6, %v2712_v6  ;;  %v440_v58 = vsel %vm3145_vm11, %v2882_v46, %v2728_v11  ;;  %vm10191_vm11 = vnez %v10156_v39 }
  0xd4   :  { %731 = vrot.lane.b32.xlu1 %v3143_v8, %s2668_s13  ;;  %v10170_v60 = vsel %vm3153_vm7, 4294967295, %v10169_v60  ;;  %vm3162_vm2 = vmand %vm9910_vm10, %vm347_vm1  ;;  %vm314_vm1 = vcmp.ne.f32.partialorder %v2842_v35, %v2842_v35  ;;  %vm10176_vm10 = vcmp.ne.f32.partialorder %v2728_v11, %v2728_v11  ;;  %v10177_v8 = vmov 0 }
  0xd5   :  { %vm3169_vm4 = vmxor %vm318_vm3, %vm10173_vm12  ;;  %v10192_v46 = vmov 0  ;;  %v10257_v39 = vmov 0 }
  0xd6   :  { %v10175_v28 = vsel %vm3169_vm4, 4294967295, %v10174_v28  ;;  %vm536_vm7 = vmxor %vm10176_vm10, %vm10173_vm12  ;;  %vm321_vm10 = vcmp.ne.f32.partialorder %v2917_v55, %v2917_v55  ;;  %vm10179_vm4 = vnez %v10154_v2  ;;  %v10185_v2 = vmov 0 }
  0xd7   :  { %vm3187_vm3 = vmxor %vm310_vm0, %vm10173_vm12  ;;  %vm10180_vm0 = vcmp.ne.f32.partialorder %v2688_v0, %v2688_v0 }
  0xd8   :  { %v10178_v8 = vsel %vm3187_vm3, 4294967295, %v10177_v8  ;;  %vm568_vm5 = vmand %vm504_vm14, %vm536_vm7 }
  0xd9   :  { %v3174_v57 = vpop.permute.xlu1 %185  ;;  %vm600_vm15 = vmor %vm472_vm13, %vm568_vm5  ;;  %vm240_vm5 = vcmp.gt.f32.partialorder %v2704_v5, %v2858_v40 }
  0xda   :  { %v3184_v62 = vpop.permute.xlu0 %183  ;;  %vm3204_vm3 = vmand %vm10180_vm0, %vm10179_vm4  ;;  %v632_v31 = vsel %vm600_vm15, %v194_v4, %v2728_v11  ;;  %vm10187_vm4 = vnez %v10175_v28  ;;  %vm497_vm15 = vcmp.ne.f32.partialorder %v3083_v56, %v3083_v56 }
  0xdb   :  { %v10182_v19 = vsel %vm3204_vm3, 4294967295, %v10181_v19  ;;  %vm3211_vm14 = vmxor %vm314_vm1, %vm10173_vm12 }
  0xdc   :  { %v10184_v50 = vsel %vm3211_vm14, 4294967295, %v10183_v50  ;;  %vm3219_vm13 = vmor %vm251_vm8, %vm3162_vm2  ;;  %vm324_vm2 = vcmp.ne.f32.partialorder %v2926_v61, %v2926_v61  ;;  %vm10190_vm8 = vnez %v10134_v25  ;;  %vm10199_vm14 = vnez %v10131_v27 }
  0xdd   :  { %v10186_v2 = vsel %vm3219_vm13, 4294967295, %v10185_v2  ;;  %vm3233_vm1 = vmand %vm9923_vm9, %vm10187_vm4  ;;  %v664_v4 = vsel %vm10190_vm8, %v632_v31, %v2728_v11  ;;  %vm10194_vm4 = vnez %v10163_v43  ;;  %v3303_v43 = vpop.permute.xlu2 %205 }
  0xde   :  { %vm3249_vm0 = vmand %vm9924_vm6, %vm10191_vm11  ;;  %v3269_v31 = vsel %vm10199_vm14, %v440_v58, %v664_v4  ;;  %vm465_vm11 = vcmp.gt.f32.partialorder %v3083_v56, %v2690_v1  ;;  %vm10202_vm6 = vnez %v10160_v37  ;;  %v10254_v58 = vmov 0 }
  0xdf   :  { %v10193_v46 = vsel %vm3249_vm0, 4294967295, %v10192_v46  ;;  %vm3255_vm9 = vmor %vm240_vm5, %vm10194_vm4  ;;  %10200 = vst [vmem:[#allocation28_spill] sm:$0xff] %v3269_v31  ;;  %737 = vrot.lane.b32.xlu1 %v3269_v31, %s2668_s13  ;;  %vm313_vm5 = vcmp.ne.f32.partialorder %v2880_v45, %v2880_v45 }
  0xe0   :  { %v10196_v53 = vsel %vm3255_vm9, 4294967295, %v10195_v53  ;;  %vm3263_vm7 = vmxor %vm321_vm10, %vm10173_vm12  ;;  %vm10201_vm10 = vcmp.ne.f32.partialorder %v2690_v1, %v2690_v1  ;;  %vm10203_vm9 = vcmp.gt.f32.partialorder %v2700_v3, %v2826_v33 }
  0xe1   :  { %vm529_vm4 = vmxor %vm10201_vm10, %vm10173_vm12  ;;  %vm507_vm10 = vcmp.ne.f32.partialorder %v3166_v63, %v3166_v63  ;;  %v3299_v37 = vpop.permute.xlu1 %191 }
  0xe2   :  { %vm3286_vm0 = vmor %vm10203_vm9, %vm10202_vm6  ;;  %v3305_v21 = vpop.permute.xlu0 %189  ;;  %vm10208_vm6 = vnez %v10170_v60  ;;  %v10215_v60 = vmov 0  ;;  %vm10217_vm9 = vnez %v10131_v27 }
  0xe3   :  { %vm3293_vm3 = vmxor %vm324_vm2, %vm10173_vm12  ;;  %v433_v28 = vsel %vm10208_vm6, %v2844_v36, %v2690_v1  ;;  %v10213_v36 = vmov 0 }
  0xe4   :  { %vm561_vm13 = vmand %vm497_vm15, %vm529_vm4 }
  0xe5   :  { %vm593_vm14 = vmor %vm465_vm11, %vm561_vm13  ;;  %vm10209_vm13 = vcmp.ne.f32.partialorder %v2764_v20, %v2764_v20  ;;  %vm10212_vm11 = vcmp.ne.f32.partialorder %v2740_v14, %v2740_v14 }
  0xe6   :  { %vm3318_vm15 = vmand %vm10209_vm13, %vm3263_vm7  ;;  %v625_v31 = vsel %vm593_vm14, %v3083_v56, %v2690_v1  ;;  %vm254_vm7 = vcmp.gt.f32.partialorder %v2752_v17, %v2906_v52  ;;  %vm10219_vm13 = vnez %v10178_v8  ;;  %v10225_v8 = vmov 0 }
  0xe7   :  { %vm539_vm4 = vmxor %vm10212_vm11, %vm10173_vm12  ;;  %v657_v56 = vsel %vm10190_vm8, %v625_v31, %v2690_v1  ;;  %vm10224_vm11 = vcmp.ne.f32.partialorder %v2854_v38, %v2854_v38 }
  0xe8   :  { %vm3334_vm2 = vmxor %vm313_vm5, %vm10173_vm12  ;;  %v3360_v1 = vsel %vm10217_vm9, %v433_v28, %v657_v56 }
  0xe9   :  { %v10214_v36 = vsel %vm3334_vm2, 4294967295, %v10213_v36  ;;  %vm571_vm14 = vmand %vm507_vm10, %vm539_vm4  ;;  %vm10218_vm10 = vcmp.gt.f32.partialorder %v3166_v63, %v2740_v14  ;;  %723 = vrot.lane.b32.xlu0 %v3360_v1, %s2668_s13 }
  0xea   :  { %vm3354_vm6 = vmor %vm254_vm7, %vm3233_vm1  ;;  %vm10220_vm1 = vcmp.ne.f32.partialorder %v2714_v7, %v2714_v7 }
  0xeb   :  { %v10216_v60 = vsel %vm3354_vm6, 4294967295, %v10215_v60  ;;  %vm603_vm4 = vmor %vm10218_vm10, %vm571_vm14  ;;  %vm10223_vm14 = vcmp.ne.f32.partialorder %v2704_v5, %v2704_v5  ;;  %vm10234_vm6 = vcmp.ne.f32.partialorder %v2724_v9, %v2724_v9 }
  0xec   :  { %vm3374_vm7 = vmand %vm10220_vm1, %vm10219_vm13  ;;  %v635_v11 = vsel %vm603_vm4, %v3166_v63, %v2740_v14  ;;  %vm10227_vm13 = vnez %v10186_v2  ;;  %vm10228_vm1 = vcmp.ne.f32.partialorder %v3092_v59, %v3092_v59  ;;  %vm10233_vm4 = vnez %v10184_v50 }
  0xed   :  { %v10222_v18 = vsel %vm3374_vm7, 4294967295, %v10221_v18  ;;  %vm528_vm10 = vmxor %vm10223_vm14, %vm10173_vm12  ;;  %v443_v63 = vsel %vm10227_vm13, %v2894_v49, %v2740_v14  ;;  %v667_v31 = vsel %vm10190_vm8, %v635_v11, %v2740_v14  ;;  %vm10230_vm7 = vcmp.gt.f32.partialorder %v2688_v0, %v2818_v32 }
  0xee   :  { %vm3390_vm5 = vmxor %vm10224_vm11, %vm10173_vm12  ;;  %v3428_v2 = vsel %vm10217_vm9, %v443_v63, %v667_v31  ;;  %vm10239_vm11 = vnez %v10193_v46  ;;  %v10245_v46 = vmov 0  ;;  %v10302_v11 = vmov 0 }
  0xef   :  { %v10226_v8 = vsel %vm3390_vm5, 4294967295, %v10225_v8  ;;  %vm560_vm14 = vmand %vm10228_vm1, %vm528_vm10  ;;  %vm10229_vm5 = vnez %v10182_v19  ;;  %vm10237_vm10 = vcmp.gt.f32.partialorder %v3092_v59, %v2704_v5  ;;  %743 = vrot.lane.b32.xlu1 %v3428_v2, %s2668_s13 }
  0xf0   :  { %vm3413_vm13 = vmor %vm10230_vm7, %vm10229_vm5 }
  0xf1   :  { %vm3422_vm2 = vmand %vm10234_vm6, %vm10233_vm4  ;;  %vm10238_vm6 = vcmp.ne.f32.partialorder %v2700_v3, %v2700_v3 }
  0xf2   :  { %vm592_vm5 = vmor %vm10237_vm10, %vm560_vm14  ;;  %vm10240_vm14 = vcmp.gt.f32.partialorder %v2712_v6, %v2834_v34 }
  0xf3   :  { %v624_v19 = vsel %vm592_vm5, %v3092_v59, %v2704_v5  ;;  %vm532_vm4 = vmxor %vm10238_vm6, %vm10173_vm12  ;;  %vm10243_vm5 = vnez %v10196_v53  ;;  %vm10244_vm6 = vcmp.ne.f32.partialorder %v2942_v30, %v2942_v30  ;;  %v3478_v53 = vpop.permute.xlu0 %195 }
  0xf4   :  { %vm3450_vm10 = vmor %vm10240_vm14, %vm10239_vm11  ;;  %v432_v59 = vsel %vm10243_vm5, %v2858_v40, %v2704_v5  ;;  %v656_v28 = vsel %vm10190_vm8, %v624_v19, %v2704_v5  ;;  %vm10247_vm11 = vcmp.ne.f32.partialorder %v3174_v57, %v3174_v57  ;;  %v3476_v40 = vpop.permute.xlu1 %197  ;;  %v436_v5 = vsel %vm3286_vm0, %v2826_v33, %v2700_v3  ;;  %v3512_v33 = vpop.permute.xlu2 %211 }
  0xf5   :  { %vm3464_vm7 = vmxor %vm10244_vm6, %vm10173_vm12  ;;  %v3482_v56 = vsel %vm10217_vm9, %v432_v59, %v656_v28  ;;  %vm10248_vm6 = vcmp.gt.f32.partialorder %v3174_v57, %v2700_v3  ;;  %vm10252_vm0 = vcmp.ne.f32.partialorder %v2752_v17, %v2752_v17  ;;  %v435_v59 = vsel %vm3413_vm13, %v2818_v32, %v2688_v0 }
  0xf6   :  { %v10246_v46 = vsel %vm3464_vm7, 4294967295, %v10245_v46  ;;  %vm564_vm14 = vmand %vm10247_vm11, %vm532_vm4  ;;  %vm10249_vm11 = vcmp.ne.f32.partialorder %v2776_v23, %v2776_v23  ;;  %721 = vrot.lane.b32.xlu2 %v3482_v56, %s2668_s13  ;;  %v10285_v28 = vmov 0 }
  0xf7   :  { %vm596_vm1 = vmor %vm10248_vm6, %vm564_vm14  ;;  %vm10261_vm6 = vcmp.ne.f32.partialorder %v2726_v10, %v2726_v10 }
  0xf8   :  { %vm3500_vm5 = vmand %vm10249_vm11, %vm3293_vm3  ;;  %v628_v63 = vsel %vm596_vm1, %v3174_v57, %v2700_v3  ;;  %vm10253_vm3 = vcmp.ne.f32.partialorder %v2892_v48, %v2892_v48  ;;  %vm257_vm1 = vcmp.gt.f32.partialorder %v2764_v20, %v2917_v55 }
  0xf9   :  { %vm542_vm14 = vmxor %vm10252_vm0, %vm10173_vm12  ;;  %v660_v57 = vsel %vm10190_vm8, %v628_v63, %v2700_v3  ;;  %vm10256_vm0 = vcmp.ne.f32.partialorder %v3303_v43, %v3303_v43  ;;  %v10262_v3 = vmov 0 }
  0xfa   :  { %vm3520_vm11 = vmxor %vm10253_vm3, %vm10173_vm12  ;;  %v3544_v31 = vsel %vm10217_vm9, %v436_v5, %v660_v57  ;;  %vm10265_vm3 = vcmp.ne.f32.partialorder %v2866_v41, %v2866_v41 }
  0xfb   :  { %v10255_v58 = vsel %vm3520_vm11, 4294967295, %v10254_v58  ;;  %vm574_vm4 = vmand %vm10256_vm0, %vm542_vm14  ;;  %vm10259_vm11 = vcmp.gt.f32.partialorder %v3303_v43, %v2752_v17  ;;  %729 = vrot.lane.b32.xlu0 %v3544_v31, %s2668_s13  ;;  %vm10270_vm0 = vnez %v10222_v18 }
  0xfc   :  { %vm3538_vm7 = vmor %vm257_vm1, %vm3318_vm15  ;;  %vm10260_vm1 = vnez %v10214_v36  ;;  %v10266_v36 = vmov 0  ;;  %v3673_v14 = vpop.permute.xlu1 %203  ;;  %v3718_v50 = vpop.permute.xlu2 %217 }
  0xfd   :  { %v10258_v39 = vsel %vm3538_vm7, 4294967295, %v10257_v39  ;;  %vm606_vm14 = vmor %vm10259_vm11, %vm574_vm4  ;;  %vm10264_vm4 = vcmp.ne.f32.partialorder %v2688_v0, %v2688_v0 }
  0xfe   :  { %vm3560_vm7 = vmand %vm10261_vm6, %vm10260_vm1  ;;  %v638_v4 = vsel %vm606_vm14, %v3303_v43, %v2752_v17  ;;  %vm10268_vm6 = vnez %v10216_v60  ;;  %vm10269_vm1 = vcmp.ne.f32.partialorder %v3184_v62, %v3184_v62  ;;  %vm10275_vm14 = vcmp.gt.f32.partialorder %v3184_v62, %v2688_v0 }
  0xff   :  { %v10263_v3 = vsel %vm3560_vm7, 4294967295, %v10262_v3  ;;  %vm531_vm11 = vmxor %vm10264_vm4, %vm10173_vm12  ;;  %v446_v43 = vsel %vm10268_vm6, %v2906_v52, %v2752_v17  ;;  %v670_v19 = vsel %vm10190_vm8, %v638_v4, %v2752_v17  ;;  %vm10277_vm7 = vcmp.ne.f32.partialorder %v2736_v12, %v2736_v12 }
 0x100   :  { %vm3576_vm15 = vmxor %vm10265_vm3, %vm10173_vm12  ;;  %v3605_v60 = vsel %vm10217_vm9, %v446_v43, %v670_v19  ;;  %vm10276_vm3 = vnez %v10226_v8  ;;  %v3631_v8 = vpop.permute.xlu0 %201  ;;  %v10388_v17 = vmov 0 }
 0x101   :  { %v10267_v36 = vsel %vm3576_vm15, 4294967295, %v10266_v36  ;;  %vm563_vm4 = vmand %vm10269_vm1, %vm531_vm11  ;;  %vm10271_vm15 = vcmp.gt.f32.partialorder %v2714_v7, %v2868_v42  ;;  %10274 = vst [vmem:[#allocation29_spill] sm:$0xff] %v3605_v60  ;;  %vm471_vm1 = vcmp.gt.f32.partialorder %v3299_v37, %v2712_v6  ;;  %749 = vrot.lane.b32.xlu1 %v3605_v60, %s2668_s13 }
 0x102   :  { %vm3599_vm6 = vmor %vm10271_vm15, %vm10270_vm0 }
 0x103   :  { %vm595_vm11 = vmor %vm10275_vm14, %vm563_vm4  ;;  %vm10280_vm14 = vcmp.ne.f32.partialorder %v2712_v6, %v2712_v6  ;;  %v438_v43 = vsel %vm3599_vm6, %v2868_v42, %v2714_v7  ;;  %v10326_v42 = vmov 0  ;;  %vm10329_vm6 = vcmp.ne.f32.partialorder %v2798_v29, %v2798_v29 }
 0x104   :  { %vm3617_vm0 = vmand %vm10277_vm7, %vm10276_vm3  ;;  %v627_v18 = vsel %vm595_vm11, %v3184_v62, %v2688_v0  ;;  %vm10281_vm7 = vcmp.gt.f32.partialorder %v2724_v9, %v2842_v35  ;;  %v10337_v62 = vmov 0 }
 0x105   :  { %vm535_vm4 = vmxor %vm10280_vm14, %vm10173_vm12  ;;  %vm10284_vm14 = vcmp.ne.f32.partialorder %v2976_v24, %v2976_v24  ;;  %v659_v32 = vsel %vm10190_vm8, %v627_v18, %v2688_v0  ;;  %v439_v0 = vsel %vm3450_vm10, %v2834_v34, %v2712_v6  ;;  %vm10292_vm10 = vcmp.ne.f32.partialorder %v2764_v20, %v2764_v20 }
 0x106   :  { %vm3642_vm3 = vmor %vm10281_vm7, %vm3422_vm2  ;;  %vm10287_vm2 = vcmp.ne.f32.partialorder %v3299_v37, %v3299_v37  ;;  %v3666_v49 = vsel %vm10217_vm9, %v435_v59, %v659_v32  ;;  %vm10289_vm7 = vcmp.ne.f32.partialorder %v2788_v26, %v2788_v26  ;;  %v10294_v34 = vmov 0  ;;  %v10340_v32 = vld [vmem:[#allocation8_spill] sm:$0xff] }
 0x107   :  { %vm3652_vm15 = vmxor %vm10284_vm14, %vm10173_vm12  ;;  %727 = vrot.lane.b32.xlu2 %v3666_v49, %s2668_s13  ;;  %v10334_v59 = vmov 0 }
 0x108   :  { %v10286_v28 = vsel %vm3652_vm15, 4294967295, %v10285_v28  ;;  %vm567_vm13 = vmand %vm10287_vm2, %vm535_vm4  ;;  %vm10288_vm2 = vnez %v10246_v46  ;;  %vm260_vm4 = vcmp.gt.f32.partialorder %v2776_v23, %v2926_v61  ;;  %v10297_v46 = vmov 0 }
 0x109   :  { %vm599_vm14 = vmor %vm471_vm1, %vm567_vm13 }
 0x10a   :  { %vm3686_vm15 = vmand %vm10289_vm7, %vm10288_vm2  ;;  %v631_v63 = vsel %vm599_vm14, %v3299_v37, %v2712_v6  ;;  %vm10293_vm7 = vcmp.ne.f32.partialorder %v2904_v51, %v2904_v51  ;;  %vm10296_vm14 = vcmp.ne.f32.partialorder %v3512_v33, %v3512_v33 }
 0x10b   :  { %vm545_vm1 = vmxor %vm10292_vm10, %vm10173_vm12  ;;  %v663_v37 = vsel %vm10190_vm8, %v631_v63, %v2712_v6  ;;  %v10347_v63 = vmov 0 }
 0x10c   :  { %vm3704_vm2 = vmxor %vm10293_vm7, %vm10173_vm12  ;;  %v3730_v6 = vsel %vm10217_vm9, %v439_v0, %v663_v37  ;;  %vm10305_vm7 = vcmp.ne.f32.partialorder %v2878_v44, %v2878_v44  ;;  %v10343_v0 = vmov 0 }
 0x10d   :  { %v10295_v34 = vsel %vm3704_vm2, 4294967295, %v10294_v34  ;;  %vm577_vm10 = vmand %vm10296_vm14, %vm545_vm1  ;;  %vm10299_vm1 = vcmp.gt.f32.partialorder %v3512_v33, %v2764_v20  ;;  %vm10300_vm2 = vnez %v10255_v58  ;;  %735 = vrot.lane.b32.xlu0 %v3730_v6, %s2668_s13  ;;  %v10306_v58 = vmov 0 }
 0x10e   :  { %vm3724_vm11 = vmor %vm260_vm4, %vm3500_vm5  ;;  %vm10301_vm5 = vcmp.ne.f32.partialorder %v2738_v13, %v2738_v13 }
 0x10f   :  { %v10298_v46 = vsel %vm3724_vm11, 4294967295, %v10297_v46  ;;  %vm609_vm14 = vmor %vm10299_vm1, %vm577_vm10  ;;  %vm10304_vm10 = vcmp.ne.f32.partialorder %v2714_v7, %v2714_v7  ;;  %vm10317_vm11 = vcmp.ne.f32.partialorder %v2748_v15, %v2748_v15 }
 0x110   :  { %vm3744_vm4 = vmand %vm10301_vm5, %vm10300_vm2  ;;  %v641_v57 = vsel %vm609_vm14, %v3512_v33, %v2764_v20  ;;  %vm10308_vm2 = vnez %v10258_v39  ;;  %vm10309_vm5 = vcmp.ne.f32.partialorder %v3305_v21, %v3305_v21  ;;  %v10374_v39 = vmov 0 }
 0x111   :  { %v10303_v11 = vsel %vm3744_vm4, 4294967295, %v10302_v11  ;;  %vm534_vm1 = vmxor %vm10304_vm10, %vm10173_vm12  ;;  %v449_v33 = vsel %vm10308_vm2, %v2917_v55, %v2764_v20  ;;  %v673_v4 = vsel %vm10190_vm8, %v641_v57, %v2764_v20  ;;  %vm10310_vm4 = vnez %v10263_v3 }
 0x112   :  { %vm3760_vm13 = vmxor %vm10305_vm7, %vm10173_vm12  ;;  %vm10311_vm2 = vcmp.gt.f32.partialorder %v2726_v10, %v2880_v45  ;;  %v3791_v20 = vsel %vm10217_vm9, %v449_v33, %v673_v4  ;;  %vm10316_vm7 = vnez %v10267_v36  ;;  %v3817_v36 = vpop.permute.xlu0 %207  ;;  %v10364_v33 = vld [vmem:[#allocation16_spill] sm:$0xff]  ;;  %v10428_v55 = vmov 0 }
 0x113   :  { %v10307_v58 = vsel %vm3760_vm13, 4294967295, %v10306_v58  ;;  %vm566_vm10 = vmand %vm10309_vm5, %vm534_vm1  ;;  %10314 = vst [vmem:[#allocation30_spill] sm:$0xff] %v3791_v20  ;;  %vm10315_vm1 = vcmp.gt.f32.partialorder %v3305_v21, %v2714_v7  ;;  %vm474_vm13 = vcmp.gt.f32.partialorder %v3476_v40, %v2724_v9  ;;  %755 = vrot.lane.b32.xlu1 %v3791_v20, %s2668_s13 }
 0x114   :  { %vm3785_vm14 = vmor %vm10311_vm2, %vm10310_vm4 }
 0x115   :  { %vm598_vm5 = vmor %vm10315_vm1, %vm566_vm10  ;;  %vm10320_vm10 = vcmp.ne.f32.partialorder %v2724_v9, %v2724_v9 }
 0x116   :  { %vm3803_vm4 = vmand %vm10317_vm11, %vm10316_vm7  ;;  %v630_v3 = vsel %vm598_vm5, %v3305_v21, %v2714_v7  ;;  %vm10321_vm7 = vcmp.ne.f32.partialorder %v3023_v22, %v3023_v22  ;;  %vm10325_vm11 = vcmp.gt.f32.partialorder %v2736_v12, %v2854_v38 }
 0x117   :  { %vm538_vm1 = vmxor %vm10320_vm10, %vm10173_vm12  ;;  %v662_v19 = vsel %vm10190_vm8, %v630_v3, %v2714_v7  ;;  %vm10324_vm10 = vcmp.ne.f32.partialorder %v3476_v40, %v3476_v40  ;;  %v442_v7 = vsel %vm3642_vm3, %v2842_v35, %v2724_v9  ;;  %vm10332_vm3 = vcmp.ne.f32.partialorder %v2776_v23, %v2776_v23  ;;  %v3882_v35 = vpop.permute.xlu1 %209 }
 0x118   :  { %vm3829_vm5 = vmxor %vm10321_vm7, %vm10173_vm12  ;;  %v3852_v52 = vsel %vm10217_vm9, %v438_v43, %v662_v19  ;;  %v10379_v19 = vmov 0 }
 0x119   :  { %vm570_vm2 = vmand %vm10324_vm10, %vm538_vm1  ;;  %733 = vrot.lane.b32.xlu2 %v3852_v52, %s2668_s13 }
 0x11a   :  { %vm3846_vm7 = vmor %vm10325_vm11, %vm3617_vm0  ;;  %vm10328_vm11 = vnez %v10286_v28 }
 0x11b   :  { %v10327_v42 = vsel %vm3846_vm7, 4294967295, %v10326_v42  ;;  %vm602_vm1 = vmor %vm474_vm13, %vm570_vm2 }
 0x11c   :  { %vm3870_vm7 = vmand %vm10329_vm6, %vm10328_vm11  ;;  %v634_v18 = vsel %vm602_vm1, %v3476_v40, %v2724_v9  ;;  %vm10333_vm6 = vcmp.ne.f32.partialorder %v2915_v54, %v2915_v54  ;;  %vm263_vm1 = vcmp.gt.f32.partialorder %v2788_v26, %v2942_v30 }
 0x11d   :  { %vm548_vm13 = vmxor %vm10332_vm3, %vm10173_vm12  ;;  %v666_v40 = vsel %vm10190_vm8, %v634_v18, %v2724_v9  ;;  %vm10336_vm3 = vcmp.ne.f32.partialorder %v3718_v50, %v3718_v50  ;;  %v224_v9 = vpop.permute.xlu2 %223  ;;  %v10390_v18 = vld [vmem:[#allocation20_spill] sm:$0xff] }
 0x11e   :  { %vm3890_vm11 = vmxor %vm10333_vm6, %vm10173_vm12  ;;  %v3914_v28 = vsel %vm10217_vm9, %v442_v7, %v666_v40  ;;  %vm10346_vm6 = vcmp.ne.f32.partialorder %v2890_v47, %v2890_v47 }
 0x11f   :  { %v10335_v59 = vsel %vm3890_vm11, 4294967295, %v10334_v59  ;;  %vm580_vm0 = vmand %vm10336_vm3, %vm548_vm13  ;;  %vm10339_vm11 = vcmp.gt.f32.partialorder %v3718_v50, %v2776_v23  ;;  %741 = vrot.lane.b32.xlu0 %v3914_v28, %s2668_s13 }
 0x120   :  { %vm3908_vm10 = vmor %vm263_vm1, %vm3686_vm15  ;;  %vm10341_vm15 = vnez %v10295_v34  ;;  %vm10342_vm1 = vcmp.ne.f32.partialorder %v2750_v16, %v2750_v16  ;;  %v10349_v34 = vld [vmem:[#allocation18_spill] sm:$0xff] }
 0x121   :  { %v10338_v62 = vsel %vm3908_vm10, 4294967295, %v10337_v62  ;;  %vm612_vm13 = vmor %vm10339_vm11, %vm580_vm0  ;;  %vm10345_vm0 = vcmp.ne.f32.partialorder %v2726_v10, %v2726_v10  ;;  %vm10359_vm10 = vcmp.ne.f32.partialorder %v10340_v32, %v10340_v32 }
 0x122   :  { %vm3928_vm2 = vmand %vm10342_vm1, %vm10341_vm15  ;;  %v644_v5 = vsel %vm612_vm13, %v3718_v50, %v2776_v23  ;;  %vm10350_vm13 = vnez %v10298_v46  ;;  %vm10351_vm1 = vcmp.ne.f32.partialorder %v3478_v53, %v3478_v53  ;;  %vm10352_vm15 = vnez %v10303_v11  ;;  %v10362_v11 = vld [vmem:[#allocation15_spill] sm:$0xff] }
 0x123   :  { %v10344_v0 = vsel %vm3928_vm2, 4294967295, %v10343_v0  ;;  %vm537_vm11 = vmxor %vm10345_vm0, %vm10173_vm12  ;;  %v452_v37 = vsel %vm10350_vm13, %v2926_v61, %v2776_v23  ;;  %v676_v50 = vsel %vm10190_vm8, %v644_v5, %v2776_v23  ;;  %vm10353_vm2 = vcmp.gt.f32.partialorder %v2738_v13, %v2892_v48  ;;  %v10414_v61 = vld [vmem:[#allocation12_spill] sm:$0xff]  ;;  %v2606_v46 = vld [vmem:[#allocation2 + $0x98] sm:$0xff] }
 0x124   :  { %vm3944_vm3 = vmxor %vm10346_vm6, %vm10173_vm12  ;;  %v3975_v23 = vsel %vm10217_vm9, %v452_v37, %v676_v50  ;;  %vm10358_vm6 = vnez %v10307_v58  ;;  %v441_v58 = vsel %vm3785_vm14, %v2880_v45, %v2726_v10  ;;  %v4021_v45 = vpop.permute.xlu0 %213  ;;  %vm10377_vm14 = vnez %v10327_v42 }
 0x125   :  { %v10348_v63 = vsel %vm3944_vm3, 4294967295, %v10347_v63  ;;  %vm569_vm0 = vmand %vm10351_vm1, %vm537_vm11  ;;  %10356 = vst [vmem:[#allocation8_spill] sm:$0xff] %v3975_v23  ;;  %vm10357_vm11 = vcmp.gt.f32.partialorder %v3478_v53, %v2726_v10  ;;  %vm477_vm3 = vcmp.gt.f32.partialorder %v3673_v14, %v2736_v12  ;;  %761 = vrot.lane.b32.xlu1 %v3975_v23, %s2668_s13  ;;  %v445_v21 = vsel %vm10377_vm14, %v2854_v38, %v2736_v12  ;;  %v4079_v38 = vpop.permute.xlu1 %215 }
 0x126   :  { %vm3969_vm13 = vmor %vm10353_vm2, %vm10352_vm15  ;;  %v10382_v42 = vmov 0  ;;  %vm10395_vm14 = vcmp.gt.f32.partialorder %v2750_v16, %v2904_v51  ;;  %v10407_v50 = vmov 0 }
 0x127   :  { %vm601_vm1 = vmor %vm10357_vm11, %vm569_vm0  ;;  %vm10363_vm0 = vcmp.ne.f32.partialorder %v2736_v12, %v2736_v12 }
 0x128   :  { %vm3987_vm2 = vmand %vm10359_vm10, %vm10358_vm6  ;;  %v633_v57 = vsel %vm601_vm1, %v3478_v53, %v2726_v10  ;;  %vm10365_vm6 = vcmp.ne.f32.partialorder %v10349_v34, %v10349_v34  ;;  %vm10369_vm10 = vcmp.gt.f32.partialorder %v2748_v15, %v2866_v41 }
 0x129   :  { %vm541_vm11 = vmxor %vm10363_vm0, %vm10173_vm12  ;;  %v665_v4 = vsel %vm10190_vm8, %v633_v57, %v2726_v10  ;;  %vm10368_vm0 = vcmp.ne.f32.partialorder %v3673_v14, %v3673_v14  ;;  %v10372_v10 = vld [vmem:[#allocation9_spill] sm:$0xff]  ;;  %v444_v57 = vsel %vm3969_vm13, %v2892_v48, %v2738_v13 }
 0x12a   :  { %vm4011_vm1 = vmxor %vm10365_vm6, %vm10173_vm12  ;;  %v4034_v3 = vsel %vm10217_vm9, %v441_v58, %v665_v4  ;;  %v10419_v4 = vmov 0 }
 0x12b   :  { %vm573_vm15 = vmand %vm10368_vm0, %vm541_vm11  ;;  %739 = vrot.lane.b32.xlu2 %v4034_v3, %s2668_s13 }
 0x12c   :  { %vm4028_vm6 = vmor %vm10369_vm10, %vm3803_vm4  ;;  %vm10373_vm4 = vcmp.ne.f32.partialorder %v10362_v11, %v10362_v11 }
 0x12d   :  { %vm605_vm11 = vmor %vm477_vm3, %vm573_vm15  ;;  %vm10376_vm3 = vcmp.ne.f32.partialorder %v2788_v26, %v2788_v26  ;;  %v448_v53 = vsel %vm4028_vm6, %v2866_v41, %v2748_v15 }
 0x12e   :  { %vm4047_vm10 = vmand %vm10373_vm4, %vm3829_vm5  ;;  %v637_v43 = vsel %vm605_vm11, %v3673_v14, %v2736_v12  ;;  %vm10378_vm5 = vcmp.ne.f32.partialorder %v10364_v33, %v10364_v33  ;;  %vm266_vm11 = vcmp.gt.f32.partialorder %v2798_v29, %v2976_v24 }
 0x12f   :  { %v10375_v39 = vsel %vm4047_vm10, 4294967295, %v10374_v39  ;;  %vm551_vm15 = vmxor %vm10376_vm3, %vm10173_vm12  ;;  %v669_v14 = vsel %vm10190_vm8, %v637_v43, %v2736_v12  ;;  %vm10381_vm3 = vcmp.ne.f32.partialorder %v224_v9, %v224_v9  ;;  %v10385_v12 = vld [vmem:[#allocation10_spill] sm:$0xff]  ;;  %vm10394_vm10 = vnez %v10344_v0  ;;  %v10405_v0 = vld [vmem:[#allocation11_spill] sm:$0xff] }
 0x130   :  { %vm4067_vm4 = vmxor %vm10378_vm5, %vm10173_vm12  ;;  %v4091_v7 = vsel %vm10217_vm9, %v445_v21, %v669_v14  ;;  %vm10386_vm5 = vnez %v10335_v59  ;;  %v230_v59 = vpop.permute.xlu2 %229 }
 0x131   :  { %v10380_v19 = vsel %vm4067_vm4, 4294967295, %v10379_v19  ;;  %vm583_vm0 = vmand %vm10381_vm3, %vm551_vm15  ;;  %vm10384_vm15 = vcmp.gt.f32.partialorder %v224_v9, %v2788_v26  ;;  %747 = vrot.lane.b32.xlu0 %v4091_v7, %s2668_s13  ;;  %vm10425_vm6 = vcmp.gt.f32.partialorder %v230_v59, %v2798_v29 }
 0x132   :  { %vm4085_vm4 = vmor %vm266_vm11, %vm3870_vm7  ;;  %vm10387_vm7 = vcmp.ne.f32.partialorder %v10372_v10, %v10372_v10 }
 0x133   :  { %v10383_v42 = vsel %vm4085_vm4, 4294967295, %v10382_v42  ;;  %vm615_vm3 = vmor %vm10384_vm15, %vm583_vm0  ;;  %vm10391_vm0 = vcmp.ne.f32.partialorder %v2738_v13, %v2738_v13  ;;  %vm480_vm4 = vcmp.gt.f32.partialorder %v3882_v35, %v2748_v15 }
 0x134   :  { %vm4104_vm11 = vmand %vm10387_vm7, %vm10386_vm5  ;;  %v647_v40 = vsel %vm615_vm3, %v224_v9, %v2788_v26  ;;  %vm10392_vm5 = vnez %v10338_v62  ;;  %vm10393_vm3 = vcmp.ne.f32.partialorder %v3631_v8, %v3631_v8  ;;  %v10404_v9 = vld [vmem:[#allocation17_spill] sm:$0xff] }
 0x135   :  { %v10389_v17 = vsel %vm4104_vm11, 4294967295, %v10388_v17  ;;  %vm540_vm15 = vmxor %vm10391_vm0, %vm10173_vm12  ;;  %v455_v5 = vsel %vm10392_vm5, %v2942_v30, %v2788_v26  ;;  %v679_v37 = vsel %vm10190_vm8, %v647_v40, %v2788_v26  ;;  %v10396_v30 = vmov 0 }
 0x136   :  { %vm572_vm7 = vmand %vm10393_vm3, %vm540_vm15  ;;  %v4142_v26 = vsel %vm10217_vm9, %v455_v5, %v679_v37  ;;  %vm10399_vm15 = vcmp.gt.f32.partialorder %v3631_v8, %v2738_v13  ;;  %vm10400_vm0 = vnez %v10348_v63  ;;  %vm10401_vm11 = vcmp.ne.f32.partialorder %v10385_v12, %v10385_v12 }
 0x137   :  { %vm4136_vm5 = vmor %vm10395_vm14, %vm10394_vm10  ;;  %10398 = vst [vmem:[#allocation18_spill] sm:$0xff] %v4142_v26  ;;  %767 = vrot.lane.b32.xlu1 %v4142_v26, %s2668_s13  ;;  %vm10411_vm14 = vcmp.gt.f32.partialorder %v10340_v32, %v2878_v44 }
 0x138   :  { %v10397_v30 = vsel %vm4136_vm5, 4294967295, %v10396_v30  ;;  %vm604_vm3 = vmor %vm10399_vm15, %vm572_vm7  ;;  %vm10406_vm7 = vcmp.ne.f32.partialorder %v10390_v18, %v10390_v18  ;;  %vm522_vm5 = vcmp.ne.f32.partialorder %v230_v59, %v230_v59  ;;  %v236_v40 = vpop.permute.xlu2 %235 }
 0x139   :  { %vm4154_vm10 = vmand %vm10401_vm11, %vm10400_vm0  ;;  %v636_v63 = vsel %vm604_vm3, %v3631_v8, %v2738_v13  ;;  %vm10409_vm11 = vcmp.ne.f32.partialorder %v2748_v15, %v2748_v15  ;;  %vm10410_vm3 = vcmp.ne.f32.partialorder %v3882_v35, %v3882_v35 }
 0x13a   :  { %vm4166_vm15 = vmxor %vm10406_vm7, %vm10173_vm12  ;;  %v668_v58 = vsel %vm10190_vm8, %v636_v63, %v2738_v13  ;;  %v4202_v13 = vpop.permute.xlu0 %219  ;;  %v10449_v63 = vld [vmem:[#allocation23_spill] sm:$0xff] }
 0x13b   :  { %v10408_v50 = vsel %vm4166_vm15, 4294967295, %v10407_v50  ;;  %vm544_vm0 = vmxor %vm10409_vm11, %vm10173_vm12  ;;  %v4199_v48 = vsel %vm10217_vm9, %v444_v57, %v668_v58 }
 0x13c   :  { %vm576_vm7 = vmand %vm10410_vm3, %vm544_vm0  ;;  %vm10415_vm3 = vcmp.ne.f32.partialorder %v10404_v9, %v10404_v9  ;;  %745 = vrot.lane.b32.xlu2 %v4199_v48, %s2668_s13  ;;  %vm10422_vm0 = vnez %v10375_v39 }
 0x13d   :  { %vm4193_vm11 = vmor %vm10411_vm14, %vm3987_vm2 }
 0x13e   :  { %vm608_vm13 = vmor %vm480_vm4, %vm576_vm7  ;;  %vm10418_vm4 = vcmp.ne.f32.partialorder %v10405_v0, %v10405_v0  ;;  %vm10421_vm7 = vcmp.ne.f32.partialorder %v2798_v29, %v2798_v29 }
 0x13f   :  { %vm4210_vm2 = vmxor %vm10415_vm3, %vm10173_vm12  ;;  %v640_v43 = vsel %vm608_vm13, %v3882_v35, %v2748_v15  ;;  %vm511_vm13 = vcmp.ne.f32.partialorder %v3817_v36, %v3817_v36  ;;  %v2608_v35 = vld [vmem:[#allocation2 + $0xb8] sm:$0xff] }
 0x140   :  { %vm4219_vm14 = vmand %vm10418_vm4, %vm4011_vm1  ;;  %vm269_vm1 = vcmp.gt.f32.partialorder %v10362_v11, %v3023_v22  ;;  %v672_v21 = vsel %vm10190_vm8, %v640_v43, %v2748_v15  ;;  %v4259_v15 = vpop.permute.xlu1 %221 }
 0x141   :  { %v10420_v4 = vsel %vm4219_vm14, 4294967295, %v10419_v4  ;;  %vm554_vm3 = vmxor %vm10421_vm7, %vm10173_vm12  ;;  %vm258_vm7 = vcmp.gt.f32.partialorder %v10372_v10, %v2915_v54  ;;  %v4253_v41 = vsel %vm10217_vm9, %v448_v53, %v672_v21  ;;  %v2607_v21 = vld [vmem:[#allocation2 + $0xf0] sm:$0xff] }
 0x142   :  { %vm586_vm4 = vmand %vm522_vm5, %vm554_vm3  ;;  %vm10426_vm3 = vnez %v10380_v19  ;;  %753 = vrot.lane.b32.xlu0 %v4253_v41, %s2668_s13  ;;  %vm10431_vm5 = vnez %v10383_v42  ;;  %v4362_v57 = vpop.permute.xlu0 %225 }
 0x143   :  { %vm4247_vm15 = vmor %vm269_vm1, %vm10422_vm0  ;;  %vm10427_vm0 = vcmp.ne.f32.partialorder %v10414_v61, %v10414_v61  ;;  %v458_v19 = vsel %vm10431_vm5, %v2976_v24, %v2798_v29  ;;  %v10435_v24 = vld [vmem:[#allocation13_spill] sm:$0xff]  ;;  %vm10439_vm5 = vnez %v10397_v30 }
 0x144   :  { %vm618_vm14 = vmor %vm10425_vm6, %vm586_vm4  ;;  %vm10430_vm4 = vcmp.ne.f32.partialorder %v2750_v16, %v2750_v16 }
 0x145   :  { %vm4266_vm1 = vmand %vm10427_vm0, %vm10426_vm3  ;;  %v650_v39 = vsel %vm618_vm14, %v230_v59, %v2798_v29  ;;  %vm515_vm14 = vcmp.ne.f32.partialorder %v4079_v38, %v4079_v38  ;;  %v2602_v59 = vld [vmem:[#allocation2 + $0xa0] sm:$0xff] }
 0x146   :  { %v10429_v55 = vsel %vm4266_vm1, 4294967295, %v10428_v55  ;;  %vm543_vm6 = vmxor %vm10430_vm4, %vm10173_vm12  ;;  %v682_v14 = vsel %vm10190_vm8, %v650_v39, %v2798_v29  ;;  %vm10432_vm4 = vnez %v10389_v17  ;;  %v2603_v17 = vld [vmem:[#allocation2 + $0x80] sm:$0xff]  ;;  %v451_v58 = vsel %vm4193_vm11, %v2878_v44, %v2602_v59 }
 0x147   :  { %vm575_vm3 = vmand %vm511_vm13, %vm543_vm6  ;;  %v4301_v29 = vsel %vm10217_vm9, %v458_v19, %v682_v14  ;;  %vm10437_vm13 = vcmp.gt.f32.partialorder %v3817_v36, %v2750_v16  ;;  %v447_v37 = vsel %vm10439_vm5, %v2904_v51, %v2603_v17  ;;  %v4333_v51 = vld [vmem:[#allocation2 + $0xb0] sm:$0xff]  ;;  %v10453_v44 = vmov 0 }
 0x148   :  { %vm4293_vm1 = vmor %vm258_vm7, %vm10432_vm4  ;;  %10436 = vst [vmem:[#allocation15_spill] sm:$0xff] %v4301_v29  ;;  %773 = vrot.lane.b32.xlu1 %v4301_v29, %s2668_s13  ;;  %vm10438_vm7 = vcmp.ne.f32.partialorder %v10340_v32, %v10340_v32  ;;  %v10443_v32 = vld [vmem:[#allocation14_spill] sm:$0xff]  ;;  %vm10455_vm11 = vnez %v10420_v4  ;;  %v10461_v4 = vmov 0  ;;  %v461_v19 = vsel %vm4247_vm15, %v3023_v22, %v2607_v21 }
 0x149   :  { %vm607_vm6 = vmor %vm10437_vm13, %vm575_vm3 }
 0x14a   :  { %v639_v5 = vsel %vm607_vm6, %v3817_v36, %v2603_v17  ;;  %vm547_vm4 = vmxor %vm10438_vm7, %vm10173_vm12  ;;  %vm10440_vm6 = vcmp.gt.f32.partialorder %v10385_v12, %v2890_v47 }
 0x14b   :  { %v671_v16 = vsel %vm10190_vm8, %v639_v5, %v2603_v17  ;;  %vm579_vm3 = vmand %vm515_vm14, %vm547_vm4  ;;  %vm10444_vm14 = vnez %v10408_v50  ;;  %vm10445_vm4 = vcmp.ne.f32.partialorder %v10435_v24, %v10435_v24  ;;  %v4473_v17 = vld [vmem:[#allocation2 + $0xe8] sm:$0xff]  ;;  %v10495_v5 = vld [vmem:[#allocation27_spill] sm:$0xff] }
 0x14c   :  { %vm4327_vm0 = vmor %vm10440_vm6, %vm4154_vm10  ;;  %v4348_v62 = vsel %vm10217_vm9, %v447_v37, %v671_v16  ;;  %vm10448_vm10 = vcmp.gt.f32.partialorder %v4079_v38, %v2602_v59  ;;  %v4485_v37 = vld [vmem:[#allocation2 + $0xe0] sm:$0xff] }
 0x14d   :  { %vm4342_vm13 = vmand %vm10445_vm4, %vm10444_vm14  ;;  %751 = vrot.lane.b32.xlu2 %v4348_v62, %s2668_s13  ;;  %vm10450_vm14 = vcmp.ne.f32.partialorder %v10362_v11, %v10362_v11  ;;  %v454_v42 = vsel %vm4327_vm0, %v2890_v47, %v2608_v35 }
 0x14e   :  { %vm611_vm6 = vmor %vm10448_vm10, %vm579_vm3  ;;  %vm10451_vm3 = vcmp.ne.f32.partialorder %v236_v40, %v236_v40 }
 0x14f   :  { %v643_v50 = vsel %vm611_vm6, %v4079_v38, %v2602_v59  ;;  %vm557_vm4 = vmxor %vm10450_vm14, %vm10173_vm12  ;;  %v4372_v38 = vld [vmem:[#allocation2 + $0xd0] sm:$0xff]  ;;  %vm10452_vm14 = vcmp.ne.f32.partialorder %v10443_v32, %v10443_v32  ;;  %vm10459_vm6 = vcmp.gt.f32.partialorder %v236_v40, %v10362_v11  ;;  %v228_v11 = vpop.permute.xlu1 %227 }
 0x150   :  { %v675_v43 = vsel %vm10190_vm8, %v643_v50, %v2602_v59  ;;  %vm589_vm10 = vmand %vm10451_vm3, %vm557_vm4  ;;  %vm10456_vm4 = vcmp.gt.f32.partialorder %v4333_v51, %v10349_v34  ;;  %v4449_v59 = vld [vmem:[#allocation2 + $0xc8] sm:$0xff] }
 0x151   :  { %vm4381_vm5 = vmand %vm10452_vm14, %vm4210_vm2  ;;  %v4396_v53 = vsel %vm10217_vm9, %v451_v58, %v675_v43  ;;  %vm482_vm2 = vcmp.gt.f32.partialorder %v4021_v45, %v2606_v46  ;;  %vm10460_vm14 = vcmp.ne.f32.partialorder %v10449_v63, %v10449_v63 }
 0x152   :  { %v10454_v44 = vsel %vm4381_vm5, 4294967295, %v10453_v44  ;;  %vm4390_vm3 = vmor %vm10456_vm4, %vm10455_vm11  ;;  %vm10463_vm11 = vcmp.ne.f32.partialorder %v10372_v10, %v10372_v10  ;;  %759 = vrot.lane.b32.xlu0 %v4396_v53, %s2668_s13 }
 0x153   :  { %vm621_vm7 = vmor %vm10459_vm6, %vm589_vm10  ;;  %vm10464_vm10 = vcmp.ne.f32.partialorder %v4021_v45, %v4021_v45  ;;  %vm518_vm6 = vcmp.ne.f32.partialorder %v4259_v15, %v4259_v15  ;;  %v453_v30 = vsel %vm4390_vm3, %v10349_v34, %v4333_v51 }
 0x154   :  { %vm4405_vm5 = vmxor %vm10460_vm14, %vm10173_vm12  ;;  %v653_v39 = vsel %vm621_vm7, %v236_v40, %v2607_v21  ;;  %vm10465_vm14 = vnez %v10429_v55  ;;  %v450_v55 = vsel %vm4293_vm1, %v2915_v54, %v2606_v46  ;;  %vm485_vm1 = vcmp.gt.f32.partialorder %v4202_v13, %v4333_v51 }
 0x155   :  { %v10462_v4 = vsel %vm4405_vm5, 4294967295, %v10461_v4  ;;  %vm546_vm4 = vmxor %vm10463_vm11, %vm10173_vm12  ;;  %v685_v14 = vsel %vm10190_vm8, %v653_v39, %v2607_v21  ;;  %vm10466_vm11 = vcmp.gt.f32.partialorder %v4372_v38, %v10364_v33  ;;  %v10489_v39 = vld [vmem:[#allocation25_spill] sm:$0xff] }
 0x156   :  { %vm578_vm7 = vmand %vm10464_vm10, %vm546_vm4  ;;  %v4436_v22 = vsel %vm10217_vm9, %v461_v19, %v685_v14  ;;  %vm486_vm4 = vcmp.gt.f32.partialorder %v4259_v15, %v2608_v35  ;;  %vm10470_vm10 = vcmp.ne.f32.partialorder %v10385_v12, %v10385_v12 }
 0x157   :  { %vm4430_vm5 = vmor %vm10466_vm11, %vm10465_vm14  ;;  %10469 = vst [vmem:[#allocation16_spill] sm:$0xff] %v4436_v22  ;;  %779 = vrot.lane.b32.xlu1 %v4436_v22, %s2668_s13  ;;  %vm517_vm11 = vcmp.ne.f32.partialorder %v4202_v13, %v4202_v13 }
 0x158   :  { %vm610_vm15 = vmor %vm482_vm2, %vm578_vm7  ;;  %vm264_vm2 = vcmp.gt.f32.partialorder %v4449_v59, %v10390_v18  ;;  %v457_v58 = vsel %vm4430_vm5, %v10364_v33, %v4372_v38  ;;  %vm10486_vm5 = vcmp.ne.f32.partialorder %v10443_v32, %v10443_v32 }
 0x159   :  { %v642_v40 = vsel %vm610_vm15, %v4021_v45, %v2606_v46  ;;  %vm550_vm14 = vmxor %vm10470_vm10, %vm10173_vm12 }
 0x15a   :  { %v674_v45 = vsel %vm10190_vm8, %v642_v40, %v2606_v46  ;;  %vm582_vm7 = vmand %vm518_vm6, %vm550_vm14  ;;  %vm10471_vm6 = vcmp.ne.f32.partialorder %v10405_v0, %v10405_v0  ;;  %v232_v0 = vpop.permute.xlu0 %231  ;;  %v2612_v46 = vld [vmem:[#allocation2 + $0xf8] sm:$0xff]  ;;  %v10492_v40 = vld [vmem:[#allocation24_spill] sm:$0xff] }
 0x15b   :  { %v4459_v12 = vsel %vm10217_vm9, %v450_v55, %v674_v45  ;;  %vm614_vm15 = vmor %vm486_vm4, %vm582_vm7  ;;  %vm268_vm4 = vcmp.gt.f32.partialorder %v4473_v17, %v10404_v9 }
 0x15c   :  { %757 = vrot.lane.b32.xlu2 %v4459_v12, %s2668_s13  ;;  %v646_v54 = vsel %vm614_vm15, %v4259_v15, %v2608_v35  ;;  %vm549_vm10 = vmxor %vm10471_vm6, %vm10173_vm12  ;;  %vm521_vm15 = vcmp.ne.f32.partialorder %v228_v11, %v228_v11 }
 0x15d   :  { %vm4479_vm14 = vmor %vm264_vm2, %vm4342_vm13  ;;  %v678_v15 = vsel %vm10190_vm8, %v646_v54, %v2608_v35  ;;  %vm489_vm2 = vcmp.gt.f32.partialorder %v228_v11, %v4372_v38  ;;  %v10494_v54 = vld [vmem:[#allocation26_spill] sm:$0xff] }
 0x15e   :  { %vm581_vm7 = vmand %vm517_vm11, %vm549_vm10  ;;  %v4491_v47 = vsel %vm10217_vm9, %v454_v42, %v678_v15  ;;  %vm10475_vm11 = vcmp.ne.f32.partialorder %v10414_v61, %v10414_v61  ;;  %vm10476_vm10 = vnez %v10454_v44  ;;  %v234_v61 = vpop.permute.xlu1 %233  ;;  %v4642_v42 = vpop.permute.xlu2 %721 }
 0x15f   :  { %10474 = vst [vmem:[#allocation9_spill] sm:$0xff] %v4491_v47  ;;  %vm613_vm13 = vmor %vm485_vm1, %vm581_vm7  ;;  %765 = vrot.lane.b32.xlu0 %v4491_v47, %s2668_s13  ;;  %vm520_vm7 = vcmp.ne.f32.partialorder %v4362_v57, %v4362_v57  ;;  %785 = vrot.lane.b32.xlu1 %v3482_v56, %s2669_s0 }
 0x160   :  { %v645_v16 = vsel %vm613_vm13, %v4202_v13, %v4333_v51  ;;  %vm553_vm6 = vmxor %vm10475_vm11, %vm10173_vm12  ;;  %vm10479_vm13 = vnez %v10462_v4 }
 0x161   :  { %vm4507_vm0 = vmor %vm268_vm4, %vm10476_vm10  ;;  %v677_v13 = vsel %vm10190_vm8, %v645_v16, %v4333_v51  ;;  %vm10480_vm4 = vcmp.ne.f32.partialorder %v4485_v37, %v4485_v37 }
 0x162   :  { %vm585_vm1 = vmand %vm521_vm15, %vm553_vm6  ;;  %v4531_v34 = vsel %vm10217_vm9, %v453_v30, %v677_v13  ;;  %vm488_vm15 = vcmp.gt.f32.partialorder %v4362_v57, %v4449_v59  ;;  %vm10484_vm6 = vcmp.ne.f32.partialorder %v10435_v24, %v10435_v24  ;;  %v460_v4 = vsel %vm4507_vm0, %v10404_v9, %v4473_v17 }
 0x163   :  { %vm4525_vm11 = vmand %vm10480_vm4, %vm10479_vm13  ;;  %10483 = vst [vmem:[#allocation10_spill] sm:$0xff] %v4531_v34  ;;  %vm492_vm4 = vcmp.gt.f32.partialorder %v234_v61, %v4473_v17 }
 0x164   :  { %vm617_vm3 = vmor %vm489_vm2, %vm585_vm1  ;;  %vm524_vm1 = vcmp.ne.f32.partialorder %v234_v61, %v234_v61  ;;  %763 = vrot.lane.b32.xlu2 %v4531_v34, %s2668_s13 }
 0x165   :  { %v649_v51 = vsel %vm617_vm3, %v228_v11, %v4372_v38  ;;  %vm552_vm10 = vmxor %vm10484_vm6, %vm10173_vm12  ;;  %vm523_vm6 = vcmp.ne.f32.partialorder %v232_v0, %v232_v0 }
 0x166   :  { %v681_v43 = vsel %vm10190_vm8, %v649_v51, %v4372_v38  ;;  %vm584_vm2 = vmand %vm520_vm7, %vm552_vm10  ;;  %vm491_vm10 = vcmp.gt.f32.partialorder %v232_v0, %v4485_v37  ;;  %v238_v38 = vpop.permute.xlu0 %237  ;;  %v4619_v10 = vpop.permute.xlu1 %719 }
 0x167   :  { %v4553_v44 = vsel %vm10217_vm9, %v457_v58, %v681_v43  ;;  %vm616_vm13 = vmor %vm488_vm15, %vm584_vm2  ;;  %vm10487_vm2 = vcmp.ne.f32.partialorder %v4485_v37, %v4485_v37  ;;  %791 = vrot.lane.b32.xlu1 %v3666_v49, %s2669_s0  ;;  %v4654_v15 = vpop.permute.xlu2 %727 }
 0x168   :  { %10485 = vst [vmem:[#allocation20_spill] sm:$0xff] %v4553_v44  ;;  %v648_v24 = vsel %vm616_vm13, %v4362_v57, %v4449_v59  ;;  %vm556_vm3 = vmxor %vm10486_vm5, %vm10173_vm12  ;;  %771 = vrot.lane.b32.xlu0 %v4553_v44, %s2668_s13  ;;  %v456_v57 = vsel %vm4479_vm14, %v10390_v18, %v4449_v59  ;;  %vm267_vm13 = vcmp.gt.f32.partialorder %v4485_v37, %v10449_v63 }
 0x169   :  { %v680_v33 = vsel %vm10190_vm8, %v648_v24, %v4449_v59  ;;  %vm588_vm7 = vmand %vm524_vm1, %vm556_vm3  ;;  %vm526_vm3 = vcmp.ne.f32.partialorder %v238_v38, %v238_v38 }
 0x16a   :  { %vm620_vm15 = vmor %vm492_vm4, %vm588_vm7  ;;  %v4581_v8 = vsel %vm10217_vm9, %v456_v57, %v680_v33  ;;  %vm302_vm4 = vcmp.ne.f32.partialorder %v2612_v46, %v2612_v46 }
 0x16b   :  { %v652_v32 = vsel %vm620_vm15, %v234_v61, %v4473_v17  ;;  %vm555_vm1 = vmxor %vm10487_vm2, %vm10173_vm12  ;;  %10488 = vst [vmem:[#allocation17_spill] sm:$0xff] %v4581_v8 }
 0x16c   :  { %v684_v18 = vsel %vm10190_vm8, %v652_v32, %v4473_v17  ;;  %vm587_vm14 = vmand %vm523_vm6, %vm555_vm1  ;;  %vm334_vm6 = vcmp.ne.f32.partialorder %v10489_v39, %v10489_v39  ;;  %769 = vrot.lane.b32.xlu2 %v4581_v8, %s2668_s13  ;;  %vm270_vm1 = vcmp.gt.f32.partialorder %v2612_v46, %v10489_v39 }
 0x16d   :  { %vm619_vm5 = vmor %vm491_vm10, %vm587_vm14  ;;  %v4603_v11 = vsel %vm10217_vm9, %v460_v4, %v684_v18  ;;  %vm494_vm10 = vcmp.gt.f32.partialorder %v238_v38, %v2612_v46 }
 0x16e   :  { %v651_v21 = vsel %vm619_vm5, %v232_v0, %v4485_v37  ;;  %vm558_vm7 = vmxor %vm302_vm4, %vm10173_vm12  ;;  %10490 = vst [vmem:[#allocation11_spill] sm:$0xff] %v4603_v11  ;;  %v4636_v45 = vpop.permute.xlu1 %725  ;;  %v4666_v36 = vpop.permute.xlu0 %723  ;;  %vm912_vm5 = vcmp.ne.f32.partialorder %v4642_v42, %v4642_v42 }
 0x16f   :  { %vm427_vm15 = vmor %vm267_vm13, %vm4525_vm11  ;;  %v683_v9 = vsel %vm10190_vm8, %v651_v21, %v4485_v37  ;;  %797 = vrot.lane.b32.xlu1 %v3852_v52, %s2669_s0 }
 0x170   :  { %vm590_vm0 = vmand %vm526_vm3, %vm558_vm7  ;;  %777 = vrot.lane.b32.xlu0 %v4603_v11, %s2668_s13  ;;  %v459_v19 = vsel %vm427_vm15, %v10449_v63, %v4485_v37  ;;  %v10496_v37 = vld [vmem:[#allocation28_spill] sm:$0xff]  ;;  %vm915_vm3 = vcmp.ne.f32.partialorder %v4654_v15, %v4654_v15  ;;  %vm913_vm7 = vcmp.ne.f32.partialorder %v4666_v36, %v4666_v36  ;;  %vm911_vm15 = vcmp.ne.f32.partialorder %v4619_v10, %v4619_v10 }
 0x171   :  { %vm366_vm2 = vmxor %vm334_vm6, %vm10173_vm12  ;;  %v4615_v14 = vsel %vm10217_vm9, %v459_v19, %v683_v9  ;;  %vm880_vm6 = vcmp.ne.f32.partialorder %v3482_v56, %v3482_v56 }
 0x172   :  { %vm622_vm11 = vmor %vm494_vm10, %vm590_vm0  ;;  %10491 = vst [vmem:[#allocation12_spill] sm:$0xff] %v4615_v14 }
 0x173   :  { %vm398_vm13 = vmand %vm302_vm4, %vm366_vm2  ;;  %v654_v35 = vsel %vm622_vm11, %v238_v38, %v2612_v46  ;;  %v4664_v16 = vpop.permute.xlu2 %733 }
 0x174   :  { %775 = vrot.lane.b32.xlu2 %v4615_v14, %s2668_s13  ;;  %vm430_vm14 = vmor %vm270_vm1, %vm398_vm13  ;;  %v686_v63 = vsel %vm10190_vm8, %v654_v35, %v2612_v46  ;;  %vm9946_vm13 = vcmp.ne.f32.partialorder %v3666_v49, %v3666_v49 }
 0x175   :  { %v462_v55 = vsel %vm430_vm14, %v10489_v39, %v2612_v46  ;;  %v10501_v39 = vld [vmem:[#allocation19_spill] sm:$0xff]  ;;  %vm944_vm10 = vmxor %vm912_vm5, %vm10173_vm12 }
 0x176   :  { %v4632_v59 = vsel %vm10217_vm9, %v462_v55, %v686_v63  ;;  %v4646_v17 = vpop.permute.xlu1 %731  ;;  %v4678_v61 = vpop.permute.xlu0 %729  ;;  %v2594_v9 = vadd.s32 4294967295, %v10501_v39  ;;  %vm947_vm0 = vmxor %vm915_vm3, %vm10173_vm12  ;;  %vm914_vm9 = vcmp.ne.f32.partialorder %v4636_v45, %v4636_v45 }
 0x177   :  { %10493 = vst [vmem:[#allocation13_spill] sm:$0xff] %v4632_v59  ;;  %803 = vrot.lane.b32.xlu1 %v4034_v3, %s2669_s0  ;;  %vm945_vm2 = vmxor %vm913_vm7, %vm10173_vm12  ;;  %vm916_vm14 = vcmp.ne.f32.partialorder %v4678_v61, %v4678_v61  ;;  %vm918_vm7 = vcmp.ne.f32.partialorder %v4664_v16, %v4664_v16 }
 0x178   :  { %783 = vrot.lane.b32.xlu0 %v10492_v40, %s2669_s0  ;;  %v94_v35 = vsub.s32 0, %v2594_v9  ;;  %vm9939_vm4 = vcmp.lt.s32.totalorder %v2594_v9, 0  ;;  %vm4766_vm11 = vmxor %vm911_vm15, %vm10173_vm12  ;;  %vm9952_vm15 = vcmp.ne.f32.partialorder %v3360_v1, %v3360_v1 }
 0x179   :  { %vm976_vm1 = vmand %vm880_vm6, %vm944_vm10  ;;  %vm848_vm10 = vcmp.gt.f32.partialorder %v3482_v56, %v4642_v42 }
 0x17a   :  { %v95_v27 = vsel %vm9939_vm4, %v94_v35, %v2594_v9  ;;  %vm4775_vm5 = vmxor %vm880_vm6, %vm10173_vm12 }
 0x17b   :  { %vm4782_vm3 = vmand %vm9946_vm13, %vm947_vm0  ;;  %vm10514_vm0 = vcmp.lt.s32.totalorder %v2594_v9, 0 }
 0x17c   :  { %781 = vrot.lane.b32.xlu2 %v4632_v59, %s2668_s13  ;;  %vm4797_vm4 = vmand %vm9952_vm15, %vm945_vm2  ;;  %vm9963_vm2 = vcmp.ne.f32.partialorder %v3544_v31, %v3544_v31 }
 0x17d   :  { %vm4804_vm13 = vmor %vm848_vm10, %vm976_vm1  ;;  %vm849_vm10 = vcmp.gt.f32.partialorder %v3360_v1, %v4666_v36 }
 0x17e   :  { %v4658_v0 = vpop.permute.xlu1 %737  ;;  %vm948_vm8 = vmxor %vm916_vm14, %vm10173_vm12  ;;  %vm9964_vm14 = vcmp.ne.f32.partialorder %v3852_v52, %v3852_v52 }
 0x17f   :  { %809 = vrot.lane.b32.xlu1 %v4199_v48, %s2669_s0  ;;  %v4692_v58 = vpop.permute.xlu0 %735  ;;  %vm4846_vm15 = vmor %vm849_vm10, %vm4797_vm4 }
 0x180   :  { %789 = vrot.lane.b32.xlu0 %v10494_v54, %s2669_s0 }
 0x184   :  { %787 = vrot.lane.b32.xlu2 %v3360_v1, %s2669_s0 }
 0x185   :  { %v4676_v13 = vpop.permute.xlu2 %739 }
 0x186   :  { %v4670_v30 = vpop.permute.xlu1 %743  ;;  %vm921_vm6 = vcmp.ne.f32.partialorder %v4676_v13, %v4676_v13 }
 0x187   :  { %815 = vrot.lane.b32.xlu1 %v4348_v62, %s2669_s0  ;;  %vm4821_vm1 = vmxor %vm921_vm6, %vm10173_vm12 }
 0x188   :  { %795 = vrot.lane.b32.xlu0 %v10495_v5, %s2669_s0  ;;  %vm4838_vm6 = vmxor %vm914_vm9, %vm10173_vm12 }
 0x18c   :  { %793 = vrot.lane.b32.xlu2 %v3544_v31, %s2669_s0 }
 0x18e   :  { %v4682_v50 = vpop.permute.xlu1 %749 }
 0x18f   :  { %821 = vrot.lane.b32.xlu1 %v4459_v12, %s2669_s0 }
 0x190   :  { %801 = vrot.lane.b32.xlu0 %v10496_v37, %s2669_s0 }
 0x191   :  { %v4704_v33 = vpop.permute.xlu0 %741 }
 0x194   :  { %799 = vrot.lane.b32.xlu2 %v3730_v6, %s2669_s0 }
 0x196   :  { %v4690_v51 = vpop.permute.xlu2 %745  ;;  %v4696_v43 = vpop.permute.xlu1 %755 }
 0x197   :  { %827 = vrot.lane.b32.xlu1 %v4531_v34, %s2669_s0  ;;  %10497 = vst [vmem:[#allocation14_spill] sm:$0xff] %v4696_v43  ;;  %v10548_v43 = vmov 0  ;;  %v10561_v34 = vmov 0 }
 0x198   :  { %807 = vrot.lane.b32.xlu0 %v3428_v2, %s2669_s0 }
 0x19c   :  { %805 = vrot.lane.b32.xlu2 %v3914_v28, %s2669_s0 }
 0x19e   :  { %v4708_v38 = vpop.permute.xlu1 %761 }
 0x19f   :  { %833 = vrot.lane.b32.xlu1 %v4581_v8, %s2669_s0  ;;  %10498 = vst [vmem:[#allocation23_spill] sm:$0xff] %v4708_v38  ;;  %v10533_v8 = vmov 0  ;;  %v10566_v38 = vmov 0 }
 0x1a0   :  { %813 = vrot.lane.b32.xlu0 %v3605_v60, %s2669_s0 }
 0x1a3   :  { %v4716_v32 = vpop.permute.xlu0 %747 }
 0x1a4   :  { %811 = vrot.lane.b32.xlu2 %v4091_v7, %s2669_s0 }
 0x1a7   :  { %839 = vrot.lane.b32.xlu1 %v4615_v14, %s2669_s0  ;;  %v4702_v24 = vpop.permute.xlu2 %751  ;;  %v10515_v14 = vmov 0 }
 0x1a8   :  { %819 = vrot.lane.b32.xlu0 %v3791_v20, %s2669_s0  ;;  %v10516_v14 = vsel %vm4804_vm13, 4294967295, %v10515_v14 }
 0x1a9   :  { %v4720_v18 = vpop.permute.xlu1 %767 }
 0x1aa   :  { %10499 = vst [vmem:[#allocation25_spill] sm:$0xff] %v4720_v18 }
 0x1ac   :  { %817 = vrot.lane.b32.xlu2 %v4253_v41, %s2669_s0 }
 0x1af   :  { %845 = vrot.lane.b32.xlu1 %v4632_v59, %s2669_s0  ;;  %v10531_v59 = vmov 0 }
 0x1b0   :  { %825 = vrot.lane.b32.xlu0 %v3975_v23, %s2669_s0 }
 0x1b4   :  { %823 = vrot.lane.b32.xlu2 %v4396_v53, %s2669_s0  ;;  %v4728_v4 = vpop.permute.xlu0 %753 }
 0x1b6   :  { %v4714_v57 = vpop.permute.xlu2 %757 }
 0x1b8   :  { %831 = vrot.lane.b32.xlu0 %v4142_v26, %s2669_s0  ;;  %v10509_v26 = vmov 0 }
 0x1b9   :  { %v10510_v26 = vsel %vm4782_vm3, 4294967295, %v10509_v26  ;;  %vm4812_vm3 = vmxor %vm918_vm7, %vm10173_vm12  ;;  %vm10521_vm7 = vcmp.ne.f32.partialorder %v3360_v1, %v3360_v1 }
 0x1ba   :  { %v4730_v21 = vpop.permute.xlu1 %773  ;;  %vm4831_vm13 = vmxor %vm10521_vm7, %vm10173_vm12 }
 0x1bb   :  { %10500 = vst [vmem:[#allocation24_spill] sm:$0xff] %v4730_v21  ;;  %vm4853_vm7 = vmand %vm9963_vm2, %vm948_vm8  ;;  %vm91_vm2 = vcmp.ge.s32.totalorder %v10501_v39, 1 }
 0x1bc   :  { %829 = vrot.lane.b32.xlu2 %v4491_v47, %s2669_s0 }
 0x1be   :  { %v4724_v46 = vpop.permute.xlu2 %763 }
 0x1c0   :  { %837 = vrot.lane.b32.xlu0 %v4301_v29, %s2669_s0  ;;  %v97_v29 = vand.u32 1, %v95_v27 }
 0x1c4   :  { %835 = vrot.lane.b32.xlu2 %v4553_v44, %s2669_s0  ;;  %v4739_v63 = vpop.permute.xlu0 %759  ;;  %v10527_v44 = vmov 0 }
 0x1c5   :  { %v10528_v44 = vsel %vm4846_vm15, 4294967295, %v10527_v44 }
 0x1c6   :  { %v4735_v19 = vpop.permute.xlu2 %769 }
 0x1c7   :  { %10502 = vst [vmem:[#allocation26_spill] sm:$0xff] %v4735_v19 }
 0x1c8   :  { %843 = vrot.lane.b32.xlu0 %v4436_v22, %s2669_s0  ;;  %v10551_v22 = vmov 0 }
 0x1c9   :  { %v4741_v55 = vpop.permute.xlu1 %779 }
 0x1ca   :  { %10503 = vst [vmem:[#allocation27_spill] sm:$0xff] %v4741_v55  ;;  %v98_v55 = vsub.s32 0, %v97_v29 }
 0x1cc   :  { %841 = vrot.lane.b32.xlu2 %v4603_v11, %s2669_s0  ;;  %v99_v11 = vsel %vm10514_vm0, %v98_v55, %v97_v29  ;;  %vm919_vm0 = vcmp.ne.f32.partialorder %v4692_v58, %v4692_v58  ;;  %v10522_v55 = vmov 0 }
 0x1cd   :  { %v103_v9 = vadd.s32 2, %v99_v11  ;;  %v10523_v55 = vsel %vm4831_vm13, 4294967295, %v10522_v55  ;;  %vm4869_vm4 = vmxor %vm919_vm0, %vm10173_vm12  ;;  %vm10535_vm15 = vcmp.ne.s32.totalorder %v99_v11, 0 }
 0x1ce   :  { %v4748_v25 = vpop.permute.xlu2 %775  ;;  %v10534_v8 = vsel %vm4869_vm4, 4294967295, %v10533_v8  ;;  %vm851_vm4 = vcmp.gt.f32.partialorder %v3666_v49, %v4654_v15 }
 0x1cf   :  { %10504 = vst [vmem:[#allocation28_spill] sm:$0xff] %v4748_v25  ;;  %v10603_v25 = vmov 0 }
 0x1d1   :  { %v4759_v35 = vpop.permute.xlu0 %765  ;;  %v4763_v27 = vpop.permute.xlu1 %785 }
 0x1d2   :  { %vm1104_vm9 = vcmp.ne.f32.partialorder %v4763_v27, %v4763_v27  ;;  %vm1072_vm8 = vcmp.gt.f32.partialorder %v4763_v27, %v3482_v56 }
 0x1d3   :  { %vm1168_vm0 = vmand %vm1104_vm9, %vm4775_vm5  ;;  %vm10544_vm9 = vnez %v10510_v26 }
 0x1d4   :  { %vm4889_vm10 = vmor %vm1072_vm8, %vm1168_vm0 }
 0x1d5   :  { %vm4912_vm8 = vmor %vm851_vm4, %vm10544_vm9  ;;  %v1232_v26 = vsel %vm4889_vm10, %v4763_v27, %v3482_v56  ;;  %vm852_vm9 = vcmp.gt.f32.partialorder %v3544_v31, %v4678_v61  ;;  %v10557_v27 = vmov 0 }
 0x1d6   :  { %v4801_v23 = vpop.permute.xlu2 %781 }
 0x1d7   :  { %10513 = vst [vmem:[#allocation19_spill] sm:$0xff] %v4801_v23  ;;  %v10525_v23 = vmov 0 }
 0x1d8   :  { %v10526_v23 = vsel %vm4838_vm6, 4294967295, %v10525_v23  ;;  %vm4864_vm6 = vmand %vm9964_vm14, %vm4812_vm3  ;;  %vm10536_vm3 = vcmp.lt.s32.totalorder %v99_v11, 0 }
 0x1d9   :  { %v10532_v59 = vsel %vm4864_vm6, 4294967295, %v10531_v59  ;;  %v4875_v60 = vpop.permute.xlu1 %791  ;;  %vm102_vm14 = vmand %vm10536_vm3, %vm10535_vm15  ;;  %vm9969_vm6 = vcmp.ne.f32.partialorder %v10492_v40, %v10492_v40  ;;  %vm10539_vm15 = vcmp.ne.f32.partialorder %v3666_v49, %v3666_v49  ;;  %vm10547_vm3 = vcmp.ne.f32.partialorder %v4690_v51, %v4690_v51 }
 0x1da   :  { %v4835_v20 = vpop.permute.xlu0 %771  ;;  %v104_v18 = vsel %vm102_vm14, %v103_v9, %v99_v11  ;;  %vm4897_vm14 = vmxor %vm10539_vm15, %vm10173_vm12  ;;  %vm917_vm15 = vcmp.ne.f32.partialorder %v4646_v17, %v4646_v17  ;;  %v10594_v11 = vmov 0  ;;  %v10612_v9 = vmov 0 }
 0x1db   :  { %10524 = vst [vmem:[#allocation31_spill] sm:$0xff] %v4835_v20  ;;  %vm105_vm13 = vcmp.eq.s32.totalorder %v104_v18, 0  ;;  %vm4906_vm5 = vmand %vm9969_vm6, %vm4766_vm11 }
 0x1dc   :  { %vm4920_vm0 = vmxor %vm10547_vm3, %vm10173_vm12  ;;  %vm10550_vm3 = vcmp.lt.s32.totalorder %v10501_v39, 3 }
 0x1dd   :  { %v10549_v43 = vsel %vm4920_vm0, 4294967295, %v10548_v43  ;;  %vm106_vm11 = vmand %vm91_vm2, %vm105_vm13  ;;  %vm10554_vm2 = vcmp.ne.f32.partialorder %v3544_v31, %v3544_v31 }
 0x1de   :  { %v788_v47 = vpop.permute.xlu2 %787  ;;  %vm4936_vm6 = vmand %vm106_vm11, %vm10550_vm3  ;;  %vm10559_vm11 = vcmp.eq.s32.totalorder %v104_v18, 1  ;;  %vm10560_vm3 = vcmp.gt.s32.totalorder %v10501_v39, 1 }
 0x1df   :  { %vm1105_vm4 = vcmp.ne.f32.partialorder %v788_v47, %v788_v47  ;;  %v10552_v22 = vsel %vm4936_vm6, 4294967295, %v10551_v22  ;;  %vm4945_vm10 = vmxor %vm10554_vm2, %vm10173_vm12  ;;  %vm10564_vm2 = vnez %v10516_v14  ;;  %v10569_v14 = vmov 0 }
 0x1e0   :  { %10553 = vst [vmem:[#allocation32_spill] sm:$0xff] %v10552_v22  ;;  %vm4953_vm0 = vmor %vm852_vm9, %vm4853_vm7  ;;  %v1040_v19 = vsel %vm10564_vm2, %v4642_v42, %v3482_v56  ;;  %vm10565_vm7 = vcmp.ne.f32.partialorder %v4034_v3, %v4034_v3 }
 0x1e1   :  { %v10558_v27 = vsel %vm4953_vm0, 4294967295, %v10557_v27  ;;  %vm4960_vm13 = vmand %vm10560_vm3, %vm10559_vm11  ;;  %vm10568_vm3 = vnez %v10523_v55  ;;  %vm10571_vm11 = vcmp.gt.f32.partialorder %v788_v47, %v3360_v1 }
 0x1e2   :  { %v10562_v34 = vsel %vm4960_vm13, 4294967295, %v10561_v34  ;;  %v4964_v20 = vpop.permute.xlu0 %777  ;;  %vm4975_vm9 = vmand %vm10565_vm7, %vm4821_vm1  ;;  %v1264_v39 = vsel %vm4960_vm13, %v1232_v26, %v3482_v56  ;;  %vm9974_vm1 = vcmp.ne.f32.partialorder %v3730_v6, %v3730_v6  ;;  %v5001_v56 = vpop.permute.xlu1 %797 }
 0x1e3   :  { %10563 = vst [vmem:[#allocation33_spill] sm:$0xff] %v10562_v34  ;;  %v10567_v38 = vsel %vm4975_vm9, 4294967295, %v10566_v38  ;;  %vm1169_vm0 = vmand %vm1105_vm4, %vm10568_vm3  ;;  %v4997_v42 = vsel %vm4936_vm6, %v1040_v19, %v1264_v39  ;;  %vm9975_vm4 = vcmp.ne.f32.partialorder %v10494_v54, %v10494_v54 }
 0x1e4   :  { %vm4987_vm2 = vmxor %vm917_vm15, %vm10173_vm12  ;;  %vm10572_vm15 = vnez %v10534_v8  ;;  %1329 = vrot.lane.b32.xlu0 %v4997_v42, %s2668_s13  ;;  %v10576_v8 = vmov 0 }
 0x1e5   :  { %v10570_v14 = vsel %vm4987_vm2, 4294967295, %v10569_v14  ;;  %vm1201_vm9 = vmor %vm10571_vm11, %vm1169_vm0  ;;  %vm1107_vm0 = vcmp.ne.f32.partialorder %v4875_v60, %v4875_v60  ;;  %vm10575_vm11 = vnez %v10526_v23  ;;  %v10580_v23 = vmov 0 }
 0x1e6   :  { %vm5010_vm3 = vmand %vm9974_vm1, %vm10572_vm15  ;;  %v1233_v19 = vsel %vm1201_vm9, %v788_v47, %v3360_v1  ;;  %vm854_vm15 = vcmp.gt.f32.partialorder %v3852_v52, %v4664_v16  ;;  %vm10578_vm1 = vnez %v10528_v44  ;;  %vm10579_vm9 = vcmp.ne.f32.partialorder %v4704_v33, %v4704_v33  ;;  %v794_v26 = vpop.permute.xlu2 %793 }
 0x1e7   :  { %vm5024_vm7 = vmand %vm9975_vm4, %vm10575_vm11  ;;  %v1041_v47 = vsel %vm10578_vm1, %v4666_v36, %v3360_v1  ;;  %v1265_v55 = vsel %vm4960_vm13, %v1233_v19, %v3360_v1  ;;  %vm10582_vm4 = vcmp.ne.f32.partialorder %v3852_v52, %v3852_v52  ;;  %v10583_v44 = vmov 0 }
 0x1e8   :  { %v10577_v8 = vsel %vm5024_vm7, 4294967295, %v10576_v8  ;;  %vm5038_vm2 = vmxor %vm10579_vm9, %vm10173_vm12  ;;  %vm10585_vm9 = vnez %v10532_v59  ;;  %v10586_v36 = vmov 0  ;;  %v10589_v1 = vmov 0 }
 0x1e9   :  { %v10581_v23 = vsel %vm5038_vm2, 4294967295, %v10580_v23  ;;  %vm5051_vm1 = vmxor %vm10582_vm4, %vm10173_vm12  ;;  %vm10588_vm2 = vcmp.ne.f32.partialorder %v4716_v32, %v4716_v32  ;;  %v5071_v18 = vsel %vm4936_vm6, %v1041_v47, %v1265_v55  ;;  %vm855_vm4 = vcmp.gt.f32.partialorder %v3730_v6, %v4692_v58 }
 0x1ea   :  { %v10584_v44 = vsel %vm5051_vm1, 4294967295, %v10583_v44  ;;  %vm5057_vm7 = vmor %vm854_vm15, %vm10585_vm9  ;;  %1331 = vrot.lane.b32.xlu1 %v5071_v18, %s2668_s13  ;;  %vm10591_vm11 = vcmp.ne.f32.partialorder %v3730_v6, %v3730_v6  ;;  %v10592_v59 = vmov 0  ;;  %vm10596_vm9 = vcmp.gt.f32.partialorder %v4875_v60, %v3666_v49  ;;  %v5111_v29 = vpop.permute.xlu0 %783  ;;  %v5174_v55 = vpop.permute.xlu1 %803 }
 0x1eb   :  { %v10587_v36 = vsel %vm5057_vm7, 4294967295, %v10586_v36  ;;  %vm5065_vm13 = vmxor %vm10588_vm2, %vm10173_vm12  ;;  %vm1108_vm2 = vcmp.ne.f32.partialorder %v794_v26, %v794_v26  ;;  %vm9978_vm1 = vcmp.ne.f32.partialorder %v4199_v48, %v4199_v48  ;;  %v10598_v19 = vmov 0 }
 0x1ec   :  { %v10590_v1 = vsel %vm5065_vm13, 4294967295, %v10589_v1  ;;  %vm1171_vm15 = vmand %vm1107_vm0, %vm4897_vm14  ;;  %vm9979_vm0 = vcmp.ne.f32.partialorder %v3914_v28, %v3914_v28  ;;  %v10600_v47 = vmov 0 }
 0x1ed   :  { %vm5084_vm7 = vmxor %vm10591_vm11, %vm10173_vm12  ;;  %vm847_vm11 = vcmp.gt.f32.partialorder %v10492_v40, %v4619_v10 }
 0x1ee   :  { %v10593_v59 = vsel %vm5084_vm7, 4294967295, %v10592_v59  ;;  %vm5092_vm14 = vmor %vm855_vm4, %vm5010_vm3  ;;  %vm920_vm7 = vcmp.ne.f32.partialorder %v4658_v0, %v4658_v0  ;;  %vm10597_vm4 = vcmp.ne.f32.partialorder %v10492_v40, %v10492_v40 }
 0x1ef   :  { %v10595_v11 = vsel %vm5092_vm14, 4294967295, %v10594_v11  ;;  %vm1203_vm13 = vmor %vm10596_vm9, %vm1171_vm15  ;;  %vm931_vm14 = vcmp.ne.f32.partialorder %v4739_v63, %v4739_v63 }
 0x1f0   :  { %v1235_v39 = vsel %vm1203_vm13, %v4875_v60, %v3666_v49  ;;  %vm1172_vm3 = vmand %vm1108_vm2, %vm4945_vm10  ;;  %v1043_v60 = vsel %vm4912_vm8, %v4654_v15, %v3666_v49  ;;  %vm10602_vm13 = vnez %v10549_v43  ;;  %vm10606_vm8 = vcmp.gt.f32.partialorder %v794_v26, %v3544_v31 }
 0x1f1   :  { %vm5117_vm15 = vmxor %vm10597_vm4, %vm10173_vm12  ;;  %v10608_v15 = vmov 0 }
 0x1f2   :  { %v10599_v19 = vsel %vm5117_vm15, 4294967295, %v10598_v19  ;;  %vm5123_vm9 = vmor %vm847_vm11, %vm4906_vm5  ;;  %vm10605_vm11 = vnez %v10562_v34 }
 0x1f3   :  { %v10601_v47 = vsel %vm5123_vm9, 4294967295, %v10600_v47  ;;  %vm5136_vm10 = vmand %vm9978_vm1, %vm10602_vm13  ;;  %v1267_v21 = vsel %vm10605_vm11, %v1235_v39, %v3666_v49  ;;  %vm10607_vm13 = vcmp.ne.f32.partialorder %v4702_v24, %v4702_v24  ;;  %v10614_v39 = vmov 0 }
 0x1f4   :  { %v10604_v25 = vsel %vm5136_vm10, 4294967295, %v10603_v25  ;;  %vm1204_vm4 = vmor %vm10606_vm8, %vm1172_vm3  ;;  %v5161_v43 = vsel %vm4936_vm6, %v1043_v60, %v1267_v21  ;;  %vm10611_vm8 = vcmp.ne.f32.partialorder %v4034_v3, %v4034_v3  ;;  %vm10617_vm3 = vnez %v10581_v23 }
 0x1f5   :  { %vm5153_vm1 = vmxor %vm10607_vm13, %vm10173_vm12  ;;  %10610 = vst [vmem:[#allocation34_spill] sm:$0xff] %v5161_v43  ;;  %v1236_v49 = vsel %vm1204_vm4, %v794_v26, %v3544_v31  ;;  %vm857_vm4 = vcmp.gt.f32.partialorder %v4034_v3, %v4676_v13  ;;  %1335 = vrot.lane.b32.xlu0 %v5161_v43, %s2668_s13  ;;  %vm10626_vm9 = vnez %v10590_v1  ;;  %v10634_v1 = vmov 0 }
 0x1f6   :  { %v10609_v15 = vsel %vm5153_vm1, 4294967295, %v10608_v15  ;;  %vm5170_vm13 = vmxor %vm10611_vm8, %vm10173_vm12  ;;  %vm10616_vm8 = vnez %v10558_v27  ;;  %v1268_v21 = vsel %vm10605_vm11, %v1236_v49, %v3544_v31  ;;  %v10624_v27 = vmov 0 }
 0x1f7   :  { %v10613_v9 = vsel %vm5170_vm13, 4294967295, %v10612_v9  ;;  %vm5180_vm2 = vmxor %vm920_vm7, %vm10173_vm12  ;;  %v1044_v26 = vsel %vm10616_vm8, %v4678_v61, %v3544_v31  ;;  %vm1078_vm7 = vcmp.gt.f32.partialorder %v5001_v56, %v3852_v52  ;;  %v10621_v61 = vmov 0 }
 0x1f8   :  { %v10615_v39 = vsel %vm5180_vm2, 4294967295, %v10614_v39  ;;  %vm5195_vm5 = vmand %vm9979_vm0, %vm10617_vm3  ;;  %vm10620_vm2 = vnez %v10567_v38  ;;  %vm10623_vm3 = vcmp.ne.f32.partialorder %v4714_v57, %v4714_v57  ;;  %vm10627_vm13 = vcmp.ne.f32.partialorder %v4091_v7, %v4091_v7 }
 0x1f9   :  { %vm5210_vm10 = vmor %vm857_vm4, %vm10620_vm2  ;;  %v10628_v31 = vmov 0  ;;  %vm10630_vm2 = vcmp.ne.f32.partialorder %v4728_v4, %v4728_v4  ;;  %v10631_v38 = vmov 0  ;;  %v5241_v23 = vsel %vm4936_vm6, %v1044_v26, %v1268_v21  ;;  %v800_v26 = vpop.permute.xlu2 %799 }
 0x1fa   :  { %v10622_v61 = vsel %vm5210_vm10, 4294967295, %v10621_v61  ;;  %vm5218_vm0 = vmxor %vm10623_vm3, %vm10173_vm12  ;;  %vm10633_vm3 = vcmp.ne.f32.partialorder %v10494_v54, %v10494_v54  ;;  %v10638_v49 = vmov 0  ;;  %vm858_vm10 = vcmp.gt.f32.partialorder %v3914_v28, %v4704_v33  ;;  %1337 = vrot.lane.b32.xlu1 %v5241_v23, %s2668_s13 }
 0x1fb   :  { %v10625_v27 = vsel %vm5218_vm0, 4294967295, %v10624_v27  ;;  %vm5227_vm8 = vmand %vm10627_vm13, %vm10626_vm9  ;;  %vm850_vm13 = vcmp.gt.f32.partialorder %v10494_v54, %v4636_v45  ;;  %vm10642_vm6 = vcmp.ne.f32.partialorder %v3914_v28, %v3914_v28  ;;  %v10648_v21 = vmov 0 }
 0x1fc   :  { %v10629_v31 = vsel %vm5227_vm8, 4294967295, %v10628_v31  ;;  %vm5235_vm4 = vmxor %vm10630_vm2, %vm10173_vm12  ;;  %vm10636_vm2 = vnez %v10570_v14  ;;  %vm10637_vm8 = vcmp.ne.f32.partialorder %v10495_v5, %v10495_v5 }
 0x1fd   :  { %v10632_v38 = vsel %vm5235_vm4, 4294967295, %v10631_v38  ;;  %vm5247_vm9 = vmxor %vm10633_vm3, %vm10173_vm12  ;;  %vm10640_vm3 = vnez %v10584_v44 }
 0x1fe   :  { %v10635_v1 = vsel %vm5247_vm9, 4294967295, %v10634_v1  ;;  %vm5258_vm0 = vmand %vm10637_vm8, %vm10636_vm2  ;;  %vm10641_vm9 = vcmp.ne.f32.partialorder %v5001_v56, %v5001_v56  ;;  %vm1079_vm8 = vcmp.gt.f32.partialorder %v800_v26, %v3730_v6  ;;  %vm1111_vm2 = vcmp.ne.f32.partialorder %v800_v26, %v800_v26 }
 0x1ff   :  { %v10639_v49 = vsel %vm5258_vm0, 4294967295, %v10638_v49  ;;  %vm1174_vm4 = vmand %vm10641_vm9, %vm10640_vm3  ;;  %vm10645_vm9 = vnez %v10577_v8 }
 0x200   :  { %vm1206_vm15 = vmor %vm1078_vm7, %vm1174_vm4  ;;  %vm10658_vm4 = vnez %v10599_v19  ;;  %v10716_v19 = vld [vmem:[#allocation26_spill] sm:$0xff] }
 0x201   :  { %vm5280_vm1 = vmxor %vm10642_vm6, %vm10173_vm12  ;;  %v1238_v43 = vsel %vm1206_vm15, %v5001_v56, %v3852_v52  ;;  %vm10650_vm6 = vnez %v10593_v59  ;;  %v790_v56 = vpop.permute.xlu0 %789  ;;  %vm10666_vm15 = vcmp.ne.f32.partialorder %v4670_v30, %v4670_v30 }
 0x202   :  { %vm5286_vm7 = vmor %vm850_vm13, %vm10645_vm9  ;;  %vm1071_vm13 = vcmp.gt.f32.partialorder %v5111_v29, %v10492_v40  ;;  %vm10651_vm9 = vnez %v10587_v36  ;;  %v1270_v60 = vsel %vm10605_vm11, %v1238_v43, %v3852_v52 }
 0x203   :  { %vm5294_vm3 = vmor %vm858_vm10, %vm5195_vm5  ;;  %v1046_v8 = vsel %vm10651_vm9, %v4664_v16, %v3852_v52  ;;  %vm9984_vm10 = vcmp.ne.f32.partialorder %v4348_v62, %v4348_v62  ;;  %v10653_v16 = vmov 0  ;;  %v10655_v52 = vmov 0 }
 0x204   :  { %v10649_v21 = vsel %vm5294_vm3, 4294967295, %v10648_v21  ;;  %vm1175_vm0 = vmand %vm1111_vm2, %vm10650_vm6  ;;  %vm10652_vm6 = vnez %v10609_v15  ;;  %vm10665_vm2 = vnez %v10601_v47 }
 0x205   :  { %vm1207_vm5 = vmor %vm1079_vm8, %vm1175_vm0  ;;  %vm10657_vm8 = vnez %v10552_v22 }
 0x206   :  { %vm5322_vm9 = vmand %vm9984_vm10, %vm10652_vm6  ;;  %v5336_v36 = vsel %vm10657_vm8, %v1046_v8, %v1270_v60  ;;  %v1239_v59 = vsel %vm1207_vm5, %v800_v26, %v3730_v6  ;;  %vm10659_vm6 = vcmp.ne.f32.partialorder %v5111_v29, %v5111_v29  ;;  %v5362_v26 = vpop.permute.xlu1 %809  ;;  %v10667_v8 = vmov 0 }
 0x207   :  { %v10654_v16 = vsel %vm5322_vm9, 4294967295, %v10653_v16  ;;  %vm5330_vm0 = vmxor %vm931_vm14, %vm10173_vm12  ;;  %vm10660_vm14 = vnez %v10595_v11  ;;  %v1271_v43 = vsel %vm10605_vm11, %v1239_v59, %v3730_v6  ;;  %1341 = vrot.lane.b32.xlu0 %v5336_v36, %s2668_s13  ;;  %v1039_v11 = vsel %vm10665_vm2, %v4619_v10, %v10492_v40 }
 0x208   :  { %v10656_v52 = vsel %vm5330_vm0, 4294967295, %v10655_v52  ;;  %vm1167_vm10 = vmand %vm10659_vm6, %vm10658_vm4  ;;  %v1047_v15 = vsel %vm10660_vm14, %v4692_v58, %v3730_v6  ;;  %vm860_vm6 = vcmp.gt.f32.partialorder %v4199_v48, %v4690_v51  ;;  %v10674_v10 = vmov 0 }
 0x209   :  { %vm5358_vm5 = vmor %vm1071_vm13, %vm1167_vm10  ;;  %v5370_v58 = vsel %vm10657_vm8, %v1047_v15, %v1271_v43  ;;  %vm10663_vm13 = vnez %v10613_v9  ;;  %vm10664_vm10 = vcmp.ne.f32.partialorder %v5174_v55, %v5174_v55  ;;  %v10702_v15 = vmov 0 }
 0x20a   :  { %v1231_v6 = vsel %vm5358_vm5, %v5111_v29, %v10492_v40  ;;  %vm1177_vm14 = vmand %vm10664_vm10, %vm10663_vm13  ;;  %vm10669_vm5 = vnez %v10604_v25  ;;  %v10670_v29 = vmov 0  ;;  %vm10672_vm10 = vnez %v10632_v38  ;;  %v806_v38 = vpop.permute.xlu2 %805  ;;  %1343 = vrot.lane.b32.xlu1 %v5370_v58, %s2668_s13 }
 0x20b   :  { %vm5390_vm0 = vmxor %vm10666_vm15, %vm10173_vm12  ;;  %vm10673_vm15 = vcmp.ne.f32.partialorder %v4253_v41, %v4253_v41  ;;  %v1263_v47 = vsel %vm10605_vm11, %v1231_v6, %v10492_v40  ;;  %v10681_v40 = vmov 0 }
 0x20c   :  { %v10668_v8 = vsel %vm5390_vm0, 4294967295, %v10667_v8  ;;  %vm5396_vm9 = vmor %vm860_vm6, %vm10669_vm5  ;;  %vm10676_vm6 = vcmp.gt.f32.partialorder %v5174_v55, %v4034_v3  ;;  %v5425_v25 = vsel %vm10657_vm8, %v1039_v11, %v1263_v47  ;;  %vm10689_vm0 = vcmp.ne.f32.partialorder %v4724_v46, %v4724_v46 }
 0x20d   :  { %v10671_v29 = vsel %vm5396_vm9, 4294967295, %v10670_v29  ;;  %vm5409_vm4 = vmand %vm10673_vm15, %vm10672_vm10  ;;  %vm10677_vm10 = vnez %v10635_v1  ;;  %vm10678_vm15 = vcmp.ne.f32.partialorder %v790_v56, %v790_v56  ;;  %1327 = vrot.lane.b32.xlu2 %v5425_v25, %s2668_s13  ;;  %v10690_v1 = vmov 0 }
 0x20e   :  { %v10675_v10 = vsel %vm5409_vm4, 4294967295, %v10674_v10  ;;  %vm1209_vm5 = vmor %vm10676_vm6, %vm1177_vm14  ;;  %vm10679_vm14 = vnez %v10615_v39  ;;  %vm10680_vm6 = vcmp.ne.f32.partialorder %v10496_v37, %v10496_v37  ;;  %v10687_v39 = vmov 0 }
 0x20f   :  { %v1241_v9 = vsel %vm1209_vm5, %v5174_v55, %v4034_v3  ;;  %vm1170_vm4 = vmand %vm10678_vm15, %vm10677_vm10  ;;  %vm1082_vm5 = vcmp.gt.f32.partialorder %v806_v38, %v3914_v28  ;;  %vm1114_vm10 = vcmp.ne.f32.partialorder %v806_v38, %v806_v38  ;;  %vm10683_vm15 = vcmp.gt.f32.partialorder %v790_v56, %v10494_v54 }
 0x210   :  { %vm5437_vm2 = vmand %vm10680_vm6, %vm10679_vm14  ;;  %v1273_v60 = vsel %vm10605_vm11, %v1241_v9, %v4034_v3  ;;  %vm10684_vm14 = vnez %v10622_v61  ;;  %vm10685_vm6 = vnez %v10625_v27  ;;  %v10698_v61 = vmov 0 }
 0x211   :  { %v10682_v40 = vsel %vm5437_vm2, 4294967295, %v10681_v40  ;;  %vm1202_vm13 = vmor %vm10683_vm15, %vm1170_vm4  ;;  %v1049_v55 = vsel %vm10684_vm14, %v4676_v13, %v4034_v3  ;;  %vm10686_vm2 = vcmp.ne.f32.partialorder %v4459_v12, %v4459_v12  ;;  %vm10692_vm4 = vnez %v10629_v31 }
 0x212   :  { %vm5460_vm9 = vmand %vm10686_vm2, %vm10685_vm6  ;;  %vm10693_vm15 = vcmp.gt.f32.partialorder %v4091_v7, %v4716_v32  ;;  %vm934_vm2 = vcmp.ne.f32.partialorder %v4759_v35, %v4759_v35  ;;  %v1234_v13 = vsel %vm1202_vm13, %v790_v56, %v10494_v54  ;;  %v5499_v27 = vsel %vm10657_vm8, %v1049_v55, %v1273_v60  ;;  %v812_v6 = vpop.permute.xlu2 %811  ;;  %v10736_v60 = vld [vmem:[#allocation10_spill] sm:$0xff] }
 0x213   :  { %v10688_v39 = vsel %vm5460_vm9, 4294967295, %v10687_v39  ;;  %vm5468_vm3 = vmxor %vm10689_vm0, %vm10173_vm12  ;;  %vm1116_vm0 = vcmp.ne.f32.partialorder %v5362_v26, %v5362_v26  ;;  %vm10697_vm9 = vcmp.gt.f32.partialorder %v10495_v5, %v4646_v17  ;;  %v1266_v31 = vsel %vm10605_vm11, %v1234_v13, %v10494_v54  ;;  %1347 = vrot.lane.b32.xlu0 %v5499_v27, %s2668_s13 }
 0x214   :  { %v10691_v1 = vsel %vm5468_vm3, 4294967295, %v10690_v1  ;;  %vm5477_vm14 = vmor %vm10693_vm15, %vm10692_vm4  ;;  %vm10696_vm3 = vnez %v10639_v49  ;;  %v5506_v49 = vpop.permute.xlu0 %795  ;;  %v1042_v56 = vsel %vm5286_vm7, %v4636_v45, %v10494_v54  ;;  %v5539_v54 = vpop.permute.xlu1 %815  ;;  %v10723_v47 = vmov 0 }
 0x215   :  { %vm1178_vm6 = vmand %vm1114_vm10, %vm5280_vm1  ;;  %vm1084_vm1 = vcmp.gt.f32.partialorder %v5362_v26, %v4199_v48  ;;  %vm10701_vm10 = vnez %v10649_v21  ;;  %v5551_v44 = vsel %vm10657_vm8, %v1042_v56, %v1266_v31  ;;  %v10708_v21 = vmov 0 }
 0x216   :  { %vm5493_vm4 = vmor %vm10697_vm9, %vm10696_vm3  ;;  %vm9985_vm3 = vcmp.ne.f32.partialorder %v4396_v53, %v4396_v53  ;;  %vm10700_vm9 = vcmp.ne.f32.partialorder %v4199_v48, %v4199_v48  ;;  %v1050_v59 = vsel %vm10701_vm10, %v4704_v33, %v3914_v28  ;;  %vm10707_vm10 = vnez %v10656_v52  ;;  %1333 = vrot.lane.b32.xlu2 %v5551_v44, %s2668_s13 }
 0x217   :  { %v10699_v61 = vsel %vm5493_vm4, 4294967295, %v10698_v61  ;;  %vm1210_vm15 = vmor %vm1082_vm5, %vm1178_vm6  ;;  %v10714_v52 = vmov 0  ;;  %vm10726_vm4 = vnez %v10675_v10  ;;  %v10734_v10 = vmov 0 }
 0x218   :  { %v1242_v14 = vsel %vm1210_vm15, %v806_v38, %v3914_v28  ;;  %vm1148_vm13 = vmxor %vm10700_vm9, %vm10173_vm12  ;;  %vm863_vm15 = vcmp.gt.f32.partialorder %v4348_v62, %v4702_v24  ;;  %vm10704_vm9 = vnez %v10654_v16  ;;  %v10742_v13 = vmov 0  ;;  %v10761_v16 = vld [vmem:[#allocation29_spill] sm:$0xff] }
 0x219   :  { %vm5529_vm6 = vmxor %vm934_vm2, %vm10173_vm12  ;;  %v1274_v45 = vsel %vm10605_vm11, %v1242_v14, %v3914_v28  ;;  %v10705_v28 = vmov 0  ;;  %v1053_v31 = vsel %vm5477_vm14, %v4716_v32, %v4091_v7  ;;  %v10746_v32 = vld [vmem:[#allocation14_spill] sm:$0xff]  ;;  %v10776_v11 = vmov 0 }
 0x21a   :  { %v10703_v15 = vsel %vm5529_vm6, 4294967295, %v10702_v15  ;;  %vm1180_vm7 = vmand %vm1116_vm0, %vm1148_vm13  ;;  %v5547_v33 = vsel %vm10657_vm8, %v1050_v59, %v1274_v45  ;;  %vm10725_vm0 = vnez %v10671_v29  ;;  %v10752_v59 = vld [vmem:[#allocation28_spill] sm:$0xff] }
 0x21b   :  { %vm1212_vm2 = vmor %vm1084_vm1, %vm1180_vm7  ;;  %vm10710_vm1 = vcmp.ne.f32.partialorder %v4091_v7, %v4091_v7  ;;  %1349 = vrot.lane.b32.xlu1 %v5547_v33, %s2668_s13  ;;  %v1052_v9 = vsel %vm10725_vm0, %v4690_v51, %v4199_v48 }
 0x21c   :  { %vm5560_vm13 = vmor %vm863_vm15, %vm10704_vm9  ;;  %v1244_v43 = vsel %vm1212_vm2, %v5362_v26, %v4199_v48  ;;  %vm10713_vm9 = vcmp.ne.f32.partialorder %v4682_v50, %v4682_v50  ;;  %vm1117_vm2 = vcmp.ne.f32.partialorder %v812_v6, %v812_v6  ;;  %v5657_v29 = vpop.permute.xlu0 %801 }
 0x21d   :  { %v10706_v28 = vsel %vm5560_vm13, 4294967295, %v10705_v28  ;;  %vm5569_vm5 = vmand %vm9985_vm3, %vm10707_vm10  ;;  %v1276_v26 = vsel %vm10605_vm11, %v1244_v43, %v4199_v48  ;;  %vm10717_vm3 = vcmp.ne.f32.partialorder %v10495_v5, %v10495_v5  ;;  %vm10722_vm13 = vcmp.ne.f32.partialorder %v3428_v2, %v3428_v2  ;;  %v10732_v48 = vld [vmem:[#allocation31_spill] sm:$0xff]  ;;  %v818_v43 = vpop.permute.xlu2 %817 }
 0x21e   :  { %v10709_v21 = vsel %vm5569_vm5, 4294967295, %v10708_v21  ;;  %vm5579_vm7 = vmxor %vm10710_vm1, %vm10173_vm12  ;;  %vm864_vm1 = vcmp.gt.f32.partialorder %v4253_v41, %v4728_v4  ;;  %v5653_v51 = vsel %vm10657_vm8, %v1052_v9, %v1276_v26  ;;  %vm10762_vm14 = vnez %v10706_v28  ;;  %v10778_v9 = vld [vmem:[#allocation17_spill] sm:$0xff] }
 0x21f   :  { %vm5589_vm10 = vmxor %vm10713_vm9, %vm10173_vm12  ;;  %vm1085_vm9 = vcmp.gt.f32.partialorder %v812_v6, %v4091_v7  ;;  %1353 = vrot.lane.b32.xlu0 %v5653_v51, %s2668_s13  ;;  %v1055_v26 = vsel %vm10762_vm14, %v4702_v24, %v4348_v62 }
 0x220   :  { %v10715_v52 = vsel %vm5589_vm10, 4294967295, %v10714_v52  ;;  %vm1141_vm15 = vmxor %vm10717_vm3, %vm10173_vm12  ;;  %vm10718_vm10 = vcmp.ne.f32.partialorder %v5506_v49, %v5506_v49  ;;  %vm10721_vm3 = vnez %v10668_v8  ;;  %v10730_v8 = vmov 0 }
 0x221   :  { %vm5614_vm5 = vmand %vm10718_vm10, %vm1141_vm15 }
 0x222   :  { %vm5623_vm6 = vmand %vm10722_vm13, %vm10721_vm3  ;;  %vm856_vm13 = vcmp.gt.f32.partialorder %v10496_v37, %v4658_v0  ;;  %vm10729_vm3 = vcmp.ne.f32.partialorder %v10716_v19, %v10716_v19 }
 0x223   :  { %v10724_v47 = vsel %vm5623_vm6, 4294967295, %v10723_v47  ;;  %vm5633_vm15 = vmor %vm864_vm1, %vm10726_vm4  ;;  %vm9986_vm4 = vcmp.ne.f32.partialorder %v10736_v60, %v10736_v60 }
 0x224   :  { %vm1181_vm10 = vmand %vm1117_vm2, %vm5579_vm7  ;;  %vm10733_vm2 = vnez %v10682_v40  ;;  %v10739_v40 = vmov 0  ;;  %v5813_v28 = vpop.permute.xlu0 %807 }
 0x225   :  { %vm5645_vm6 = vmxor %vm10729_vm3, %vm10173_vm12  ;;  %vm866_vm3 = vcmp.gt.f32.partialorder %v4459_v12, %v4714_v57 }
 0x226   :  { %v10731_v8 = vsel %vm5645_vm6, 4294967295, %v10730_v8  ;;  %vm1213_vm0 = vmor %vm1085_vm9, %vm1181_vm10  ;;  %vm10737_vm9 = vcmp.gt.f32.partialorder %v5506_v49, %v10495_v5  ;;  %vm10768_vm6 = vcmp.ne.f32.partialorder %v10761_v16, %v10761_v16 }
 0x227   :  { %vm5661_vm1 = vmor %vm856_vm13, %vm10733_vm2  ;;  %v1245_v55 = vsel %vm1213_vm0, %v812_v6, %v4091_v7  ;;  %vm1087_vm13 = vcmp.gt.f32.partialorder %v5539_v54, %v4348_v62  ;;  %vm10738_vm2 = vnez %v10688_v39  ;;  %v10820_v6 = vld [vmem:[#allocation12_spill] sm:$0xff] }
 0x228   :  { %v10735_v10 = vsel %vm5661_vm1, 4294967295, %v10734_v10  ;;  %vm1205_vm10 = vmor %vm10737_vm9, %vm5614_vm5  ;;  %vm10741_vm1 = vnez %v10691_v1  ;;  %v1277_v39 = vsel %vm10605_vm11, %v1245_v55, %v4091_v7  ;;  %vm10744_vm5 = vcmp.ne.f32.partialorder %v4348_v62, %v4348_v62  ;;  %v5705_v1 = vpop.permute.xlu1 %821 }
 0x229   :  { %vm5679_vm7 = vmor %vm866_vm3, %vm10738_vm2  ;;  %v1237_v14 = vsel %vm1205_vm10, %v5506_v49, %v10495_v5  ;;  %vm10745_vm3 = vnez %v10699_v61  ;;  %vm10747_vm9 = vcmp.ne.f32.partialorder %v10732_v48, %v10732_v48  ;;  %v10748_v7 = vmov 0  ;;  %v10751_v61 = vld [vmem:[#allocation9_spill] sm:$0xff] }
 0x22a   :  { %v10740_v40 = vsel %vm5679_vm7, 4294967295, %v10739_v40  ;;  %vm5688_vm0 = vmand %vm9986_vm4, %vm10741_vm1  ;;  %v1045_v3 = vsel %vm10745_vm3, %v4646_v17, %v10495_v5  ;;  %v5725_v49 = vsel %vm10657_vm8, %v1053_v31, %v1277_v39  ;;  %v1269_v17 = vsel %vm10605_vm11, %v1237_v14, %v10495_v5 }
 0x22b   :  { %v10743_v13 = vsel %vm5688_vm0, 4294967295, %v10742_v13  ;;  %vm1151_vm1 = vmxor %vm10744_vm5, %vm10173_vm12  ;;  %vm10750_vm2 = vcmp.ne.f32.partialorder %v5539_v54, %v5539_v54  ;;  %vm9987_vm3 = vcmp.ne.f32.partialorder %v10751_v61, %v10751_v61  ;;  %v5737_v56 = vsel %vm10657_vm8, %v1045_v3, %v1269_v17  ;;  %1355 = vrot.lane.b32.xlu1 %v5725_v49, %s2668_s13  ;;  %v10794_v3 = vld [vmem:[#allocation20_spill] sm:$0xff]  ;;  %v824_v17 = vpop.permute.xlu2 %823 }
 0x22c   :  { %vm5717_vm10 = vmxor %vm10747_vm9, %vm10173_vm12  ;;  %v10754_v5 = vmov 0  ;;  %vm10757_vm4 = vcmp.ne.f32.partialorder %v10746_v32, %v10746_v32  ;;  %1339 = vrot.lane.b32.xlu2 %v5737_v56, %s2668_s13  ;;  %v1056_v55 = vsel %vm5633_vm15, %v4728_v4, %v4253_v41  ;;  %vm10784_vm15 = vcmp.ne.f32.partialorder %v4459_v12, %v4459_v12 }
 0x22d   :  { %v10749_v7 = vsel %vm5717_vm10, 4294967295, %v10748_v7  ;;  %vm1183_vm5 = vmand %vm10750_vm2, %vm1151_vm1  ;;  %vm10753_vm10 = vnez %v10703_v15  ;;  %v10758_v15 = vmov 0  ;;  %v10792_v14 = vmov 0 }
 0x22e   :  { %vm1215_vm9 = vmor %vm1087_vm13, %vm1183_vm5  ;;  %vm10756_vm13 = vcmp.ne.f32.partialorder %v4253_v41, %v4253_v41  ;;  %vm10767_vm5 = vnez %v10715_v52 }
 0x22f   :  { %vm5751_vm1 = vmand %vm9987_vm3, %vm10753_vm10  ;;  %v1247_v45 = vsel %vm1215_vm9, %v5539_v54, %v4348_v62  ;;  %vm1088_vm9 = vcmp.gt.f32.partialorder %v818_v43, %v4253_v41 }
 0x230   :  { %v10755_v5 = vsel %vm5751_vm1, 4294967295, %v10754_v5  ;;  %vm1152_vm2 = vmxor %vm10756_vm13, %vm10173_vm12  ;;  %v1279_v54 = vsel %vm10605_vm11, %v1247_v45, %v4348_v62  ;;  %vm1120_vm13 = vcmp.ne.f32.partialorder %v818_v43, %v818_v43  ;;  %vm10764_vm1 = vcmp.gt.f32.partialorder %v4396_v53, %v4739_v63  ;;  %v10804_v45 = vld [vmem:[#allocation30_spill] sm:$0xff] }
 0x231   :  { %vm5767_vm10 = vmxor %vm10757_vm4, %vm10173_vm12  ;;  %vm10760_vm4 = vcmp.ne.f32.partialorder %v10496_v37, %v10496_v37  ;;  %v5811_v24 = vsel %vm10657_vm8, %v1055_v26, %v1279_v54  ;;  %v10821_v62 = vmov 0 }
 0x232   :  { %v10759_v15 = vsel %vm5767_vm10, 4294967295, %v10758_v15  ;;  %vm1144_vm3 = vmxor %vm10760_vm4, %vm10173_vm12  ;;  %vm10763_vm10 = vnez %v10709_v21  ;;  %1359 = vrot.lane.b32.xlu0 %v5811_v24, %s2668_s13 }
 0x233   :  { %vm5794_vm0 = vmor %vm10764_vm1, %vm10763_vm10  ;;  %vm859_vm1 = vcmp.gt.f32.partialorder %v3428_v2, %v4670_v30 }
 0x234   :  { %vm1184_vm7 = vmand %vm1120_vm13, %vm1152_vm2  ;;  %vm10771_vm2 = vcmp.ne.f32.partialorder %v10752_v59, %v10752_v59  ;;  %vm10775_vm13 = vnez %v10724_v47  ;;  %v10782_v47 = vmov 0 }
 0x235   :  { %vm5805_vm11 = vmand %vm10768_vm6, %vm10767_vm5  ;;  %vm940_vm6 = vcmp.ne.f32.partialorder %v4964_v20, %v4964_v20 }
 0x236   :  { %vm1216_vm14 = vmor %vm1088_vm9, %vm1184_vm7  ;;  %vm10774_vm7 = vcmp.ne.f32.partialorder %v5657_v29, %v5657_v29 }
 0x237   :  { %vm5821_vm10 = vmxor %vm10771_vm2, %vm10173_vm12  ;;  %v1248_v52 = vsel %vm1216_vm14, %v818_v43, %v4253_v41  ;;  %vm9989_vm2 = vcmp.ne.f32.partialorder %v10778_v9, %v10778_v9  ;;  %vm10780_vm14 = vcmp.gt.f32.partialorder %v5657_v29, %v10496_v37 }
 0x238   :  { %vm1176_vm5 = vmand %vm10774_vm7, %vm1144_vm3  ;;  %vm10779_vm3 = vnez %v10562_v34 }
 0x239   :  { %vm5835_vm4 = vmor %vm859_vm1, %vm10775_vm13  ;;  %v1280_v31 = vsel %vm10779_vm3, %v1248_v52, %v4253_v41  ;;  %vm10781_vm13 = vnez %v10731_v8  ;;  %v10786_v8 = vld [vmem:[#allocation23_spill] sm:$0xff]  ;;  %v10813_v52 = vld [vmem:[#allocation25_spill] sm:$0xff] }
 0x23a   :  { %v10777_v11 = vsel %vm5835_vm4, 4294967295, %v10776_v11  ;;  %vm1208_vm7 = vmor %vm10780_vm14, %vm1176_vm5  ;;  %v5866_v41 = vsel %vm10657_vm8, %v1056_v55, %v1280_v31  ;;  %vm10785_vm14 = vnez %v10735_v10  ;;  %vm10805_vm4 = vnez %v10755_v5 }
 0x23b   :  { %vm5858_vm9 = vmand %vm9989_vm2, %vm10781_vm13  ;;  %v1240_v4 = vsel %vm1208_vm7, %v5657_v29, %v10496_v37  ;;  %v1048_v38 = vsel %vm10785_vm14, %v4658_v0, %v10496_v37  ;;  %vm869_vm2 = vcmp.gt.f32.partialorder %v10736_v60, %v4724_v46  ;;  %v10787_v29 = vmov 0  ;;  %v5896_v0 = vpop.permute.xlu1 %827  ;;  %1361 = vrot.lane.b32.xlu1 %v5866_v41, %s2668_s13 }
 0x23c   :  { %v10783_v47 = vsel %vm5858_vm9, 4294967295, %v10782_v47  ;;  %vm1154_vm5 = vmxor %vm10784_vm15, %vm10173_vm12  ;;  %v1272_v39 = vsel %vm10779_vm3, %v1240_v4, %v10496_v37  ;;  %vm10789_vm15 = vcmp.ne.f32.partialorder %v5705_v1, %v5705_v1  ;;  %vm10790_vm13 = vnez %v10740_v40 }
 0x23d   :  { %vm5886_vm7 = vmxor %vm940_vm6, %vm10173_vm12  ;;  %v1058_v10 = vsel %vm10790_vm13, %v4714_v57, %v4459_v12  ;;  %vm10791_vm6 = vnez %v10743_v13  ;;  %v5912_v37 = vsel %vm10657_vm8, %v1048_v38, %v1272_v39  ;;  %vm10796_vm13 = vnez %v10749_v7  ;;  %v830_v39 = vpop.permute.xlu2 %829 }
 0x23e   :  { %v10788_v29 = vsel %vm5886_vm7, 4294967295, %v10787_v29  ;;  %vm1186_vm14 = vmand %vm10789_vm15, %vm1154_vm5  ;;  %vm9990_vm7 = vcmp.ne.f32.partialorder %v10794_v3, %v10794_v3  ;;  %vm10795_vm5 = vcmp.gt.f32.partialorder %v5705_v1, %v4459_v12  ;;  %v10797_v57 = vmov 0  ;;  %1345 = vrot.lane.b32.xlu2 %v5912_v37, %s2668_s13 }
 0x23f   :  { %vm5904_vm1 = vmor %vm869_vm2, %vm10791_vm6  ;;  %v10801_v13 = vmov 0  ;;  %vm10809_vm9 = vnez %v10759_v15  ;;  %v1059_v15 = vsel %vm5794_vm0, %v4739_v63, %v4396_v53  ;;  %v10815_v55 = vmov 0 }
 0x240   :  { %v10793_v14 = vsel %vm5904_vm1, 4294967295, %v10792_v14  ;;  %vm1218_vm15 = vmor %vm10795_vm5, %vm1186_vm14  ;;  %vm10799_vm14 = vcmp.ne.f32.partialorder %v4396_v53, %v4396_v53  ;;  %vm1091_vm5 = vcmp.gt.f32.partialorder %v824_v17, %v4396_v53  ;;  %vm870_vm1 = vcmp.gt.f32.partialorder %v10751_v61, %v4759_v35 }
 0x241   :  { %vm5922_vm2 = vmand %vm9990_vm7, %vm10796_vm13  ;;  %v1250_v40 = vsel %vm1218_vm15, %v5705_v1, %v4459_v12  ;;  %vm1123_vm13 = vcmp.ne.f32.partialorder %v824_v17, %v824_v17  ;;  %vm10800_vm7 = vcmp.ne.f32.partialorder %v10786_v8, %v10786_v8  ;;  %v10803_v1 = vld [vmem:[#allocation19_spill] sm:$0xff]  ;;  %v10818_v63 = vmov 0 }
 0x242   :  { %v10798_v57 = vsel %vm5922_vm2, 4294967295, %v10797_v57  ;;  %vm1155_vm6 = vmxor %vm10799_vm14, %vm10173_vm12  ;;  %v1282_v7 = vsel %vm10779_vm3, %v1250_v40, %v4459_v12  ;;  %v5968_v12 = vpop.permute.xlu0 %813  ;;  %v10826_v38 = vmov 0 }
 0x243   :  { %vm5941_vm2 = vmxor %vm10800_vm7, %vm10173_vm12  ;;  %vm9991_vm7 = vcmp.ne.f32.partialorder %v10804_v45, %v10804_v45  ;;  %v5964_v54 = vsel %vm10657_vm8, %v1058_v10, %v1282_v7  ;;  %v10837_v7 = vld [vmem:[#allocation8_spill] sm:$0xff] }
 0x244   :  { %v10802_v13 = vsel %vm5941_vm2, 4294967295, %v10801_v13  ;;  %vm1187_vm14 = vmand %vm1123_vm13, %vm1155_vm6  ;;  %10808 = vst [vmem:[#allocation26_spill] sm:$0xff] %v5964_v54  ;;  %vm1083_vm6 = vcmp.gt.f32.partialorder %v5813_v28, %v3428_v2  ;;  %vm862_vm13 = vcmp.gt.f32.partialorder %v10761_v16, %v4682_v50  ;;  %1365 = vrot.lane.b32.xlu0 %v5964_v54, %s2668_s13 }
 0x245   :  { %vm5958_vm2 = vmor %vm870_vm1, %vm10805_vm4  ;;  %vm10812_vm1 = vcmp.ne.f32.partialorder %v3428_v2, %v3428_v2  ;;  %v836_v5 = vpop.permute.xlu2 %835 }
 0x246   :  { %vm1219_vm15 = vmor %vm1091_vm5, %vm1187_vm14  ;;  %vm1125_vm14 = vcmp.ne.f32.partialorder %v5896_v0, %v5896_v0 }
 0x247   :  { %vm5977_vm4 = vmand %vm9991_vm7, %vm10809_vm9  ;;  %v1251_v26 = vsel %vm1219_vm15, %v824_v17, %v4396_v53  ;;  %vm10814_vm9 = vcmp.ne.f32.partialorder %v10803_v1, %v10803_v1  ;;  %vm10817_vm15 = vcmp.ne.f32.partialorder %v5813_v28, %v5813_v28 }
 0x248   :  { %vm1147_vm5 = vmxor %vm10812_vm1, %vm10173_vm12  ;;  %v1283_v31 = vsel %vm10779_vm3, %v1251_v26, %v4396_v53 }
 0x249   :  { %vm5996_vm7 = vmxor %vm10814_vm9, %vm10173_vm12  ;;  %vm9992_vm9 = vcmp.ne.f32.partialorder %v10820_v6, %v10820_v6  ;;  %v6020_v53 = vsel %vm10657_vm8, %v1059_v15, %v1283_v31  ;;  %v10849_v31 = vld [vmem:[#allocation13_spill] sm:$0xff] }
 0x24a   :  { %v10816_v55 = vsel %vm5996_vm7, 4294967295, %v10815_v55  ;;  %vm1179_vm1 = vmand %vm10817_vm15, %vm1147_vm5  ;;  %vm10823_vm15 = vcmp.ne.f32.partialorder %v10736_v60, %v10736_v60  ;;  %1367 = vrot.lane.b32.xlu1 %v6020_v53, %s2668_s13  ;;  %v6102_v40 = vpop.permute.xlu0 %819 }
 0x24b   :  { %vm6010_vm0 = vmor %vm862_vm13, %vm5805_vm11  ;;  %vm1093_vm11 = vcmp.gt.f32.partialorder %v5896_v0, %v10736_v60 }
 0x24c   :  { %v10819_v63 = vsel %vm6010_vm0, 4294967295, %v10818_v63  ;;  %vm1211_vm5 = vmor %vm1083_vm6, %vm1179_vm1  ;;  %vm10824_vm1 = vnez %v10777_v11  ;;  %v10831_v11 = vld [vmem:[#allocation11_spill] sm:$0xff]  ;;  %vm10843_vm0 = vnez %v10802_v13  ;;  %v1062_v13 = vsel %vm5958_vm2, %v4759_v35, %v10751_v61 }
 0x24d   :  { %vm6032_vm13 = vmand %vm9992_vm9, %vm5821_vm10  ;;  %v1243_v4 = vsel %vm1211_vm5, %v5813_v28, %v3428_v2  ;;  %v1051_v21 = vsel %vm10824_vm1, %v4670_v30, %v3428_v2  ;;  %vm10825_vm10 = vcmp.ne.f32.partialorder %v10813_v52, %v10813_v52  ;;  %vm872_vm5 = vcmp.gt.f32.partialorder %v10778_v9, %v10716_v19 }
 0x24e   :  { %v10822_v62 = vsel %vm6032_vm13, 4294967295, %v10821_v62  ;;  %vm1157_vm6 = vmxor %vm10823_vm15, %vm10173_vm12  ;;  %v1275_v28 = vsel %vm10779_vm3, %v1243_v4, %v3428_v2  ;;  %vm10828_vm13 = vnez %v10783_v47  ;;  %v10829_v30 = vmov 0  ;;  %v834_v2 = vpop.permute.xlu1 %833 }
 0x24f   :  { %vm6050_vm9 = vmxor %vm10825_vm10, %vm10173_vm12  ;;  %vm9993_vm10 = vcmp.ne.f32.partialorder %v10831_v11, %v10831_v11  ;;  %v6069_v10 = vsel %vm10657_vm8, %v1051_v21, %v1275_v28  ;;  %v10833_v47 = vmov 0 }
 0x250   :  { %v10827_v38 = vsel %vm6050_vm9, 4294967295, %v10826_v38  ;;  %vm1189_vm15 = vmand %vm1125_vm14, %vm1157_vm6  ;;  %vm1126_vm6 = vcmp.ne.f32.partialorder %v830_v39, %v830_v39  ;;  %1351 = vrot.lane.b32.xlu2 %v6069_v10, %s2668_s13  ;;  %vm10836_vm14 = vnez %v10793_v14 }
 0x251   :  { %vm6061_vm1 = vmor %vm872_vm5, %vm10828_vm13  ;;  %vm10832_vm13 = vnez %v10788_v29  ;;  %v1061_v29 = vsel %vm10836_vm14, %v4724_v46, %v10736_v60  ;;  %vm10842_vm14 = vcmp.gt.f32.partialorder %v830_v39, %v10751_v61 }
 0x252   :  { %v10830_v30 = vsel %vm6061_vm1, 4294967295, %v10829_v30  ;;  %vm1221_vm9 = vmor %vm1093_vm11, %vm1189_vm15  ;;  %vm10835_vm11 = vcmp.ne.f32.partialorder %v10751_v61, %v10751_v61  ;;  %v6215_v28 = vpop.permute.xlu0 %825 }
 0x253   :  { %vm6079_vm5 = vmand %vm9993_vm10, %vm10832_vm13  ;;  %v1253_v17 = vsel %vm1221_vm9, %v5896_v0, %v10736_v60  ;;  %vm873_vm13 = vcmp.gt.f32.partialorder %v10794_v3, %v10732_v48  ;;  %vm1118_vm10 = vcmp.ne.f32.partialorder %v5968_v12, %v5968_v12 }
 0x254   :  { %v10834_v47 = vsel %vm6079_vm5, 4294967295, %v10833_v47  ;;  %vm1158_vm15 = vmxor %vm10835_vm11, %vm10173_vm12  ;;  %v1285_v0 = vsel %vm10779_vm3, %v1253_v17, %v10736_v60  ;;  %vm9994_vm11 = vcmp.ne.f32.partialorder %v10837_v7, %v10837_v7  ;;  %vm10838_vm5 = vnez %v10798_v57 }
 0x255   :  { %vm1190_vm9 = vmand %vm1126_vm6, %vm1158_vm15  ;;  %v6114_v14 = vsel %vm10657_vm8, %v1061_v29, %v1285_v0  ;;  %vm1086_vm15 = vcmp.gt.f32.partialorder %v5968_v12, %v10761_v16  ;;  %v10844_v60 = vmov 0  ;;  %v10868_v17 = vmov 0 }
 0x256   :  { %vm6108_vm1 = vmor %vm873_vm13, %vm10838_vm5  ;;  %10841 = vst [vmem:[#allocation31_spill] sm:$0xff] %v6114_v14  ;;  %vm10846_vm5 = vcmp.ne.f32.partialorder %v10761_v16, %v10761_v16  ;;  %1371 = vrot.lane.b32.xlu0 %v6114_v14, %s2668_s13 }
 0x257   :  { %vm1222_vm6 = vmor %vm10842_vm14, %vm1190_vm9  ;;  %vm865_vm9 = vcmp.gt.f32.partialorder %v10804_v45, %v10746_v32  ;;  %vm1128_vm14 = vcmp.ne.f32.partialorder %v834_v2, %v834_v2 }
 0x258   :  { %vm6125_vm7 = vmand %vm9994_vm11, %vm10843_vm0  ;;  %v1254_v57 = vsel %vm1222_vm6, %v830_v39, %v10751_v61  ;;  %vm1096_vm11 = vcmp.gt.f32.partialorder %v834_v2, %v10778_v9 }
 0x259   :  { %v10845_v60 = vsel %vm6125_vm7, 4294967295, %v10844_v60  ;;  %vm1150_vm13 = vmxor %vm10846_vm5, %vm10173_vm12  ;;  %v1286_v26 = vsel %vm10779_vm3, %v1254_v57, %v10751_v61  ;;  %vm9995_vm5 = vcmp.ne.f32.partialorder %v10849_v31, %v10849_v31  ;;  %vm10851_vm7 = vnez %v10816_v55 }
 0x25a   :  { %vm1182_vm0 = vmand %vm1118_vm10, %vm1150_vm13  ;;  %v6155_v35 = vsel %vm10657_vm8, %v1062_v13, %v1286_v26 }
 0x25b   :  { %vm6147_vm6 = vmor %vm865_vm9, %vm5977_vm4  ;;  %10850 = vst [vmem:[#allocation10_spill] sm:$0xff] %v6155_v35  ;;  %vm10854_vm4 = vcmp.ne.f32.partialorder %v10778_v9, %v10778_v9  ;;  %1373 = vrot.lane.b32.xlu1 %v6155_v35, %s2668_s13 }
 0x25c   :  { %vm1214_vm2 = vmor %vm1086_vm15, %vm1182_vm0  ;;  %vm10855_vm15 = vnez %v10819_v63  ;;  %v10858_v63 = vmov 0 }
 0x25d   :  { %vm6163_vm10 = vmand %vm9995_vm5, %vm10851_vm7  ;;  %v1246_v43 = vsel %vm1214_vm2, %v5968_v12, %v10761_v16  ;;  %v1054_v55 = vsel %vm10855_vm15, %v4682_v50, %v10761_v16  ;;  %vm875_vm7 = vcmp.gt.f32.partialorder %v10820_v6, %v10752_v59  ;;  %v10856_v12 = vld [vmem:[#allocation18_spill] sm:$0xff] }
 0x25e   :  { %vm1160_vm13 = vmxor %vm10854_vm4, %vm10173_vm12  ;;  %v1278_v4 = vsel %vm10779_vm3, %v1246_v43, %v10761_v16  ;;  %vm9996_vm2 = vcmp.ne.f32.partialorder %v10856_v12, %v10856_v12  ;;  %vm10857_vm4 = vnez %v10822_v62  ;;  %v10861_v16 = vmov 0  ;;  %v10863_v62 = vld [vmem:[#allocation24_spill] sm:$0xff] }
 0x25f   :  { %vm1192_vm9 = vmand %vm1128_vm14, %vm1160_vm13  ;;  %v6194_v50 = vsel %vm10657_vm8, %v1054_v55, %v1278_v4  ;;  %vm10860_vm13 = vnez %v10827_v38  ;;  %v840_v38 = vpop.permute.xlu1 %839 }
 0x260   :  { %vm6188_vm5 = vmor %vm875_vm7, %vm10857_vm4  ;;  %1357 = vrot.lane.b32.xlu2 %v6194_v50, %s2668_s13  ;;  %vm10865_vm4 = vnez %v10830_v30  ;;  %vm10867_vm7 = vnez %v10834_v47  ;;  %v1065_v47 = vsel %vm6108_vm1, %v10732_v48, %v10794_v3  ;;  %v842_v48 = vpop.permute.xlu2 %841  ;;  %vm10880_vm1 = vcmp.ne.f32.partialorder %v10820_v6, %v10820_v6 }
 0x261   :  { %v10859_v63 = vsel %vm6188_vm5, 4294967295, %v10858_v63  ;;  %vm1224_vm15 = vmor %vm1096_vm11, %vm1192_vm9  ;;  %vm10864_vm11 = vcmp.ne.f32.partialorder %v10794_v3, %v10794_v3  ;;  %v1064_v39 = vsel %vm10865_vm4, %v10716_v19, %v10778_v9  ;;  %vm10871_vm4 = vcmp.gt.f32.partialorder %v836_v5, %v10794_v3 }
 0x262   :  { %vm6202_vm0 = vmand %vm9996_vm2, %vm10860_vm13  ;;  %v1256_v21 = vsel %vm1224_vm15, %v834_v2, %v10778_v9  ;;  %vm876_vm13 = vcmp.gt.f32.partialorder %v10831_v11, %v4964_v20  ;;  %vm10866_vm15 = vcmp.ne.f32.partialorder %v836_v5, %v836_v5  ;;  %vm1089_vm5 = vcmp.gt.f32.partialorder %v6102_v40, %v10804_v45 }
 0x263   :  { %v10862_v16 = vsel %vm6202_vm0, 4294967295, %v10861_v16  ;;  %vm1161_vm9 = vmxor %vm10864_vm11, %vm10173_vm12  ;;  %v1288_v2 = vsel %vm10779_vm3, %v1256_v21, %v10778_v9  ;;  %vm1121_vm11 = vcmp.ne.f32.partialorder %v6102_v40, %v6102_v40  ;;  %v10873_v9 = vmov 0 }
 0x264   :  { %vm1193_vm2 = vmand %vm10866_vm15, %vm1161_vm9  ;;  %v6237_v19 = vsel %vm10657_vm8, %v1064_v39, %v1288_v2  ;;  %vm10872_vm9 = vcmp.ne.f32.partialorder %v10863_v62, %v10863_v62 }
 0x265   :  { %vm6231_vm14 = vmor %vm876_vm13, %vm10867_vm7  ;;  %10870 = vst [vmem:[#allocation14_spill] sm:$0xff] %v6237_v19  ;;  %1377 = vrot.lane.b32.xlu0 %v6237_v19, %s2668_s13  ;;  %vm868_vm13 = vcmp.gt.f32.partialorder %v10837_v7, %v10786_v8 }
 0x266   :  { %v10869_v17 = vsel %vm6231_vm14, 4294967295, %v10868_v17  ;;  %vm1225_vm0 = vmor %vm10871_vm4, %vm1193_vm2  ;;  %vm10875_vm2 = vcmp.ne.f32.partialorder %v10804_v45, %v10804_v45  ;;  %vm1099_vm14 = vcmp.gt.f32.partialorder %v840_v38, %v10820_v6 }
 0x267   :  { %vm6247_vm15 = vmxor %vm10872_vm9, %vm10173_vm12  ;;  %v1257_v30 = vsel %vm1225_vm0, %v836_v5, %v10794_v3  ;;  %vm1131_vm9 = vcmp.ne.f32.partialorder %v840_v38, %v840_v38  ;;  %vm10876_vm0 = vnez %v10845_v60  ;;  %v846_v61 = vpop.permute.xlu1 %845 }
 0x268   :  { %v10874_v9 = vsel %vm6247_vm15, 4294967295, %v10873_v9  ;;  %vm1153_vm7 = vmxor %vm10875_vm2, %vm10173_vm12  ;;  %v1289_v29 = vsel %vm10779_vm3, %v1257_v30, %v10794_v3  ;;  %v1057_v3 = vsel %vm6147_vm6, %v10746_v32, %v10804_v45  ;;  %v832_v32 = vpop.permute.xlu0 %831  ;;  %v6482_v60 = vpop.permute.xlu2 %1327 }
 0x269   :  { %vm1185_vm4 = vmand %vm1121_vm11, %vm1153_vm7  ;;  %v6275_v57 = vsel %vm10657_vm8, %v1065_v47, %v1289_v29  ;;  %v10903_v47 = vld [vmem:[#allocation27_spill] sm:$0xff] }
 0x26a   :  { %vm6269_vm15 = vmor %vm868_vm13, %vm10876_vm0  ;;  %10879 = vst [vmem:[#allocation9_spill] sm:$0xff] %v6275_v57  ;;  %1379 = vrot.lane.b32.xlu1 %v6275_v57, %s2668_s13  ;;  %vm1132_vm13 = vcmp.ne.f32.partialorder %v842_v48, %v842_v48  ;;  %vm1100_vm0 = vcmp.gt.f32.partialorder %v842_v48, %v10831_v11 }
 0x26b   :  { %vm1217_vm2 = vmor %vm1089_vm5, %vm1185_vm4  ;;  %vm878_vm5 = vcmp.gt.f32.partialorder %v10849_v31, %v10803_v1 }
 0x26c   :  { %v1249_v46 = vsel %vm1217_vm2, %v6102_v40, %v10804_v45  ;;  %vm1163_vm11 = vmxor %vm10880_vm1, %vm10173_vm12  ;;  %vm871_vm2 = vcmp.gt.f32.partialorder %v10856_v12, %v10813_v52 }
 0x26d   :  { %v1281_v40 = vsel %vm10779_vm3, %v1249_v46, %v10804_v45  ;;  %vm1195_vm7 = vmand %vm1131_vm9, %vm1163_vm11  ;;  %vm1124_vm11 = vcmp.ne.f32.partialorder %v6215_v28, %v6215_v28 }
 0x26e   :  { %vm6297_vm4 = vmor %vm878_vm5, %vm6163_vm10  ;;  %v6303_v13 = vsel %vm10657_vm8, %v1057_v3, %v1281_v40  ;;  %vm10884_vm10 = vcmp.ne.f32.partialorder %v10831_v11, %v10831_v11  ;;  %vm10886_vm5 = vnez %v10862_v16 }
 0x26f   :  { %10883 = vst [vmem:[#allocation28_spill] sm:$0xff] %v6303_v13  ;;  %vm1227_vm6 = vmor %vm1099_vm14, %vm1195_vm7  ;;  %1363 = vrot.lane.b32.xlu2 %v6303_v13, %s2668_s13  ;;  %vm10885_vm14 = vnez %v10859_v63 }
 0x270   :  { %v1259_v26 = vsel %vm1227_vm6, %v840_v38, %v10820_v6  ;;  %vm1164_vm9 = vmxor %vm10884_vm10, %vm10173_vm12  ;;  %v1067_v45 = vsel %vm10885_vm14, %v10752_v59, %v10820_v6  ;;  %vm1092_vm10 = vcmp.gt.f32.partialorder %v6215_v28, %v10837_v7  ;;  %v838_v38 = vpop.permute.xlu0 %837 }
 0x271   :  { %v1291_v15 = vsel %vm10779_vm3, %v1259_v26, %v10820_v6  ;;  %vm1196_vm1 = vmand %vm1132_vm13, %vm1164_vm9  ;;  %vm10890_vm13 = vcmp.ne.f32.partialorder %v10837_v7, %v10837_v7  ;;  %v10891_v6 = vld [vmem:[#allocation15_spill] sm:$0xff]  ;;  %v6492_v26 = vpop.permute.xlu1 %1331 }
 0x272   :  { %vm6326_vm7 = vmor %vm871_vm2, %vm10886_vm5  ;;  %v6332_v5 = vsel %vm10657_vm8, %v1067_v45, %v1291_v15  ;;  %vm906_vm2 = vcmp.ne.f32.partialorder %v10891_v6, %v10891_v6  ;;  %vm10893_vm5 = vnez %v10874_v9  ;;  %v10901_v9 = vld [vmem:[#allocation16_spill] sm:$0xff]  ;;  %v6494_v45 = vpop.permute.xlu2 %1333  ;;  %v10906_v15 = vld [vmem:[#allocation34_spill] sm:$0xff] }
 0x273   :  { %10889 = vst [vmem:[#allocation29_spill] sm:$0xff] %v6332_v5  ;;  %vm1228_vm6 = vmor %vm1100_vm0, %vm1196_vm1  ;;  %1383 = vrot.lane.b32.xlu0 %v6332_v5, %s2668_s13  ;;  %vm10892_vm0 = vnez %v10869_v17  ;;  %vm1134_vm1 = vcmp.ne.f32.partialorder %v846_v61, %v846_v61 }
 0x274   :  { %v1260_v59 = vsel %vm1228_vm6, %v842_v48, %v10831_v11  ;;  %vm1156_vm9 = vmxor %vm10890_vm13, %vm10173_vm12  ;;  %v1068_v55 = vsel %vm10892_vm0, %v4964_v20, %v10831_v11  ;;  %vm1102_vm0 = vcmp.gt.f32.partialorder %v846_v61, %v10849_v31 }
 0x275   :  { %v1292_v4 = vsel %vm10779_vm3, %v1260_v59, %v10831_v11  ;;  %vm1188_vm14 = vmand %vm1124_vm11, %vm1156_vm9  ;;  %vm10897_vm11 = vcmp.ne.f32.partialorder %v10849_v31, %v10849_v31  ;;  %v1060_v11 = vsel %vm6269_vm15, %v10786_v8, %v10837_v7  ;;  %vm10899_vm15 = vcmp.ne.f32.partialorder %v10856_v12, %v10856_v12 }
 0x276   :  { %vm6357_vm6 = vmand %vm906_vm2, %vm10893_vm5  ;;  %v6363_v16 = vsel %vm10657_vm8, %v1068_v55, %v1292_v4  ;;  %v1070_v8 = vsel %vm6297_vm4, %v10803_v1, %v10849_v31  ;;  %v1063_v1 = vsel %vm6326_vm7, %v10813_v52, %v10856_v12 }
 0x277   :  { %10896 = vst [vmem:[#allocation17_spill] sm:$0xff] %v6363_v16  ;;  %vm1220_vm13 = vmor %vm1092_vm10, %vm1188_vm14  ;;  %1385 = vrot.lane.b32.xlu1 %v6363_v16, %s2668_s13  ;;  %vm1127_vm14 = vcmp.ne.f32.partialorder %v832_v32, %v832_v32 }
 0x278   :  { %v1252_v20 = vsel %vm1220_vm13, %v6215_v28, %v10837_v7  ;;  %vm1166_vm9 = vmxor %vm10897_vm11, %vm10173_vm12  ;;  %vm1095_vm13 = vcmp.gt.f32.partialorder %v832_v32, %v10856_v12  ;;  %v844_v52 = vpop.permute.xlu0 %843 }
 0x279   :  { %v1284_v21 = vsel %vm10779_vm3, %v1252_v20, %v10837_v7  ;;  %vm1198_vm10 = vmand %vm1134_vm1, %vm1166_vm9  ;;  %v6504_v43 = vpop.permute.xlu1 %1337 }
 0x27a   :  { %v6383_v28 = vsel %vm10657_vm8, %v1060_v11, %v1284_v21  ;;  %vm1230_vm5 = vmor %vm1102_vm0, %vm1198_vm10  ;;  %vm1130_vm0 = vcmp.ne.f32.partialorder %v838_v38, %v838_v38  ;;  %vm1098_vm10 = vcmp.gt.f32.partialorder %v838_v38, %v10891_v6 }
 0x27b   :  { %10898 = vst [vmem:[#allocation23_spill] sm:$0xff] %v6383_v28  ;;  %v1262_v39 = vsel %vm1230_vm5, %v846_v61, %v10849_v31  ;;  %1369 = vrot.lane.b32.xlu2 %v6383_v28, %s2668_s13  ;;  %vm1159_vm11 = vmxor %vm10899_vm15, %vm10173_vm12  ;;  %vm909_vm5 = vcmp.ne.f32.partialorder %v10901_v9, %v10901_v9  ;;  %vm1133_vm15 = vcmp.ne.f32.partialorder %v844_v52, %v844_v52 }
 0x27c   :  { %v1294_v7 = vsel %vm10779_vm3, %v1262_v39, %v10849_v31  ;;  %vm1191_vm1 = vmand %vm1127_vm14, %vm1159_vm11  ;;  %vm941_vm11 = vcmp.ne.f32.partialorder %v10903_v47, %v10903_v47 }
 0x27d   :  { %v6402_v2 = vsel %vm10657_vm8, %v1070_v8, %v1294_v7  ;;  %vm1223_vm9 = vmor %vm1095_vm13, %vm1191_vm1  ;;  %vm874_vm13 = vcmp.gt.f32.partialorder %v10891_v6, %v10863_v62 }
 0x27e   :  { %10900 = vst [vmem:[#allocation20_spill] sm:$0xff] %v6402_v2  ;;  %1389 = vrot.lane.b32.xlu0 %v6402_v2, %s2668_s13  ;;  %v1255_v17 = vsel %vm1223_vm9, %v832_v32, %v10856_v12  ;;  %vm1162_vm4 = vmxor %vm906_vm2, %vm10173_vm12 }
 0x27f   :  { %v1287_v31 = vsel %vm10779_vm3, %v1255_v17, %v10856_v12  ;;  %vm1194_vm14 = vmand %vm1130_vm0, %vm1162_vm4  ;;  %1391 = vrot.lane.b32.xlu1 %v5425_v25, %s2669_s0  ;;  %vm1101_vm0 = vcmp.gt.f32.partialorder %v844_v52, %v10901_v9 }
 0x280   :  { %v6423_v30 = vsel %vm10657_vm8, %v1063_v1, %v1287_v31  ;;  %vm1226_vm2 = vmor %vm1098_vm10, %vm1194_vm14  ;;  %vm877_vm14 = vcmp.gt.f32.partialorder %v10901_v9, %v10903_v47  ;;  %v6488_v32 = vpop.permute.xlu0 %1329 }
 0x281   :  { %10902 = vst [vmem:[#allocation19_spill] sm:$0xff] %v6423_v30  ;;  %vm1034_vm7 = vmor %vm874_vm13, %vm6357_vm6  ;;  %v1258_v12 = vsel %vm1226_vm2, %v838_v38, %v10891_v6  ;;  %v6516_v55 = vpop.permute.xlu1 %1343  ;;  %vm1520_vm13 = vcmp.ne.f32.partialorder %v6488_v32, %v6488_v32 }
 0x282   :  { %vm1165_vm1 = vmxor %vm909_vm5, %vm10173_vm12  ;;  %v1290_v29 = vsel %vm10779_vm3, %v1258_v12, %v10891_v6  ;;  %v1066_v0 = vsel %vm1034_vm7, %v10863_v62, %v10891_v6  ;;  %vm1521_vm7 = vcmp.ne.f32.partialorder %v6492_v26, %v6492_v26 }
 0x283   :  { %1375 = vrot.lane.b32.xlu2 %v6423_v30, %s2668_s13  ;;  %vm1197_vm9 = vmand %vm1133_vm15, %vm1165_vm1  ;;  %v6451_v48 = vsel %vm10657_vm8, %v1066_v0, %v1290_v29  ;;  %vm10012_vm1 = vcmp.ne.f32.partialorder %v5425_v25, %v5425_v25 }
 0x284   :  { %vm973_vm6 = vmxor %vm941_vm11, %vm10173_vm12  ;;  %10904 = vst [vmem:[#allocation30_spill] sm:$0xff] %v6451_v48 }
 0x285   :  { %vm1229_vm10 = vmor %vm1101_vm0, %vm1197_vm9  ;;  %vm10009_vm9 = vcmp.ne.f32.partialorder %v4997_v42, %v4997_v42 }
 0x286   :  { %1395 = vrot.lane.b32.xlu0 %v5071_v18, %s2669_s0  ;;  %vm1005_vm4 = vmand %vm909_vm5, %vm973_vm6  ;;  %v1261_v46 = vsel %vm1229_vm10, %v844_v52, %v10901_v9  ;;  %v6506_v59 = vpop.permute.xlu2 %1339  ;;  %vm1519_vm5 = vcmp.ne.f32.partialorder %v6482_v60, %v6482_v60  ;;  %vm1522_vm10 = vcmp.ne.f32.partialorder %v6494_v45, %v6494_v45 }
 0x287   :  { %1397 = vrot.lane.b32.xlu1 %v5551_v44, %s2669_s0  ;;  %vm1037_vm2 = vmor %vm877_vm14, %vm1005_vm4  ;;  %v1293_v62 = vsel %vm10779_vm3, %v1261_v46, %v10901_v9  ;;  %vm10013_vm14 = vcmp.ne.f32.partialorder %v5071_v18, %v5071_v18 }
 0x288   :  { %v1069_v3 = vsel %vm1037_vm2, %v10903_v47, %v10901_v9  ;;  %v6500_v61 = vpop.permute.xlu0 %1335  ;;  %vm1551_vm15 = vmxor %vm1519_vm5, %vm10173_vm12  ;;  %vm1524_vm2 = vcmp.ne.f32.partialorder %v6504_v43, %v6504_v43 }
 0x289   :  { %v6472_v40 = vsel %vm10657_vm8, %v1069_v3, %v1293_v62  ;;  %vm1552_vm11 = vmxor %vm1520_vm13, %vm10173_vm12  ;;  %vm1523_vm13 = vcmp.ne.f32.partialorder %v6500_v61, %v6500_v61 }
 0x28a   :  { %10905 = vst [vmem:[#allocation25_spill] sm:$0xff] %v6472_v40  ;;  %vm1553_vm0 = vmxor %vm1521_vm7, %vm10173_vm12 }
 0x28b   :  { %1381 = vrot.lane.b32.xlu2 %v6451_v48, %s2668_s13  ;;  %vm6612_vm6 = vmand %vm10012_vm1, %vm1551_vm15  ;;  %vm1457_vm15 = vcmp.gt.f32.partialorder %v5071_v18, %v6492_v26  ;;  %vm10021_vm1 = vcmp.ne.f32.partialorder %v5551_v44, %v5551_v44 }
 0x28c   :  { %vm6621_vm4 = vmand %vm10009_vm9, %vm1552_vm11 }
 0x28d   :  { %v6528_v20 = vpop.permute.xlu1 %1349  ;;  %vm1585_vm5 = vmand %vm10013_vm14, %vm1553_vm0  ;;  %vm1525_vm0 = vcmp.ne.f32.partialorder %v6506_v59, %v6506_v59 }
 0x28e   :  { %1401 = vrot.lane.b32.xlu0 %v5241_v23, %s2669_s0  ;;  %vm1554_vm7 = vmxor %vm1522_vm10, %vm10173_vm12  ;;  %vm1455_vm10 = vcmp.gt.f32.partialorder %v5425_v25, %v6482_v60 }
 0x28f   :  { %1403 = vrot.lane.b32.xlu1 %v5737_v56, %s2669_s0  ;;  %vm1556_vm11 = vmxor %vm1524_vm2, %vm10173_vm12 }
 0x290   :  { %v6512_v6 = vpop.permute.xlu0 %1341  ;;  %vm6642_vm9 = vmor %vm1457_vm15, %vm1585_vm5  ;;  %vm10026_vm5 = vcmp.ne.f32.partialorder %v5241_v23, %v5241_v23  ;;  %vm1527_vm15 = vcmp.ne.f32.partialorder %v6516_v55, %v6516_v55 }
 0x291   :  { %vm1555_vm14 = vmxor %vm1523_vm13, %vm10173_vm12  ;;  %vm1526_vm13 = vcmp.ne.f32.partialorder %v6512_v6, %v6512_v6 }
 0x292   :  { %vm6656_vm2 = vmand %vm10021_vm1, %vm1554_vm7  ;;  %vm10030_vm1 = vcmp.ne.f32.partialorder %v10906_v15, %v10906_v15 }
 0x293   :  { %1387 = vrot.lane.b32.xlu2 %v6472_v40, %s2668_s13  ;;  %vm6666_vm8 = vmor %vm1455_vm10, %vm6612_vm6  ;;  %vm1530_vm6 = vcmp.ne.f32.partialorder %v6528_v20, %v6528_v20 }
 0x294   :  { %vm6675_vm7 = vmand %vm10026_vm5, %vm1556_vm11 }
 0x295   :  { %vm6682_vm3 = vmxor %vm1525_vm0, %vm10173_vm12  ;;  %vm1456_vm0 = vcmp.gt.f32.partialorder %v4997_v42, %v6488_v32 }
 0x296   :  { %1407 = vrot.lane.b32.xlu0 %v5370_v58, %s2669_s0  ;;  %vm6691_vm10 = vmand %vm10030_vm1, %vm1555_vm14 }
 0x297   :  { %1409 = vrot.lane.b32.xlu1 %v5912_v37, %s2669_s0  ;;  %vm1559_vm11 = vmxor %vm1527_vm15, %vm10173_vm12  ;;  %vm10035_vm15 = vcmp.ne.f32.partialorder %v5370_v58, %v5370_v58 }
 0x298   :  { %v6518_v4 = vpop.permute.xlu2 %1345  ;;  %v6524_v63 = vpop.permute.xlu0 %1347  ;;  %vm6701_vm5 = vmxor %vm1526_vm13, %vm10173_vm12 }
 0x299   :  { %vm6709_vm14 = vmor %vm1456_vm0, %vm6621_vm4  ;;  %vm10940_vm0 = vcmp.ne.f32.partialorder %v5071_v18, %v5071_v18 }
 0x29a   :  { %vm6716_vm1 = vmxor %vm1530_vm6, %vm10173_vm12 }
 0x29b   :  { %1393 = vrot.lane.b32.xlu2 %v4997_v42, %s2669_s0  ;;  %vm6726_vm4 = vmand %vm10035_vm15, %vm1559_vm11 }
 0x29c   :  { %vm1745_vm6 = vmxor %vm10940_vm0, %vm10173_vm12  ;;  %vm10045_vm0 = vcmp.ne.f32.partialorder %v5737_v56, %v5737_v56 }
 0x29d   :  { %v6540_v38 = vpop.permute.xlu1 %1355 }
 0x29e   :  { %1413 = vrot.lane.b32.xlu0 %v5547_v33, %s2669_s0 }
 0x29f   :  { %1415 = vrot.lane.b32.xlu1 %v6069_v10, %s2669_s0 }
 0x2a0   :  { %v6536_v21 = vpop.permute.xlu0 %1353 }
 0x2a3   :  { %1399 = vrot.lane.b32.xlu2 %v10906_v15, %s2669_s0 }
 0x2a6   :  { %1419 = vrot.lane.b32.xlu0 %v5725_v49, %s2669_s0 }
 0x2a7   :  { %1421 = vrot.lane.b32.xlu1 %v6194_v50, %s2669_s0 }
 0x2a8   :  { %v6548_v8 = vpop.permute.xlu0 %1359 }
 0x2aa   :  { %v6530_v11 = vpop.permute.xlu2 %1351 }
 0x2ab   :  { %1405 = vrot.lane.b32.xlu2 %v5336_v36, %s2669_s0 }
 0x2ad   :  { %v6552_v7 = vpop.permute.xlu1 %1361 }
 0x2ae   :  { %1425 = vrot.lane.b32.xlu0 %v5866_v41, %s2669_s0 }
 0x2af   :  { %1427 = vrot.lane.b32.xlu1 %v6303_v13, %s2669_s0  ;;  %v10951_v13 = vld [vmem:[#allocation22_spill] sm:$0xff] }
 0x2b3   :  { %1411 = vrot.lane.b32.xlu2 %v5499_v27, %s2669_s0 }
 0x2b6   :  { %1431 = vrot.lane.b32.xlu0 %v6020_v53, %s2669_s0  ;;  %v6560_v1 = vpop.permute.xlu0 %1365 }
 0x2b7   :  { %1433 = vrot.lane.b32.xlu1 %v6383_v28, %s2669_s0 }
 0x2ba   :  { %v6544_v39 = vpop.permute.xlu2 %1357 }
 0x2bb   :  { %1417 = vrot.lane.b32.xlu2 %v5653_v51, %s2669_s0 }
 0x2bc   :  { %v6564_v31 = vpop.permute.xlu1 %1367 }
 0x2be   :  { %1437 = vrot.lane.b32.xlu0 %v6155_v35, %s2669_s0 }
 0x2bf   :  { %1439 = vrot.lane.b32.xlu1 %v6423_v30, %s2669_s0 }
 0x2c3   :  { %1423 = vrot.lane.b32.xlu2 %v5811_v24, %s2669_s0 }
 0x2c6   :  { %1443 = vrot.lane.b32.xlu0 %v6275_v57, %s2669_s0 }
 0x2c7   :  { %1445 = vrot.lane.b32.xlu1 %v6451_v48, %s2669_s0 }
 0x2c8   :  { %v6570_v52 = vpop.permute.xlu0 %1371 }
 0x2c9   :  { %v6556_v17 = vpop.permute.xlu2 %1363  ;;  %10907 = vst [vmem:[#allocation12_spill] sm:$0xff] %v6570_v52 }
 0x2cb   :  { %1429 = vrot.lane.b32.xlu2 %v5964_v54, %s2669_s0 }
 0x2cd   :  { %v6572_v12 = vpop.permute.xlu1 %1373 }
 0x2ce   :  { %1449 = vrot.lane.b32.xlu0 %v6363_v16, %s2669_s0 }
 0x2cf   :  { %1451 = vrot.lane.b32.xlu1 %v6472_v40, %s2669_s0  ;;  %v10938_v40 = vmov 0 }
 0x2d0   :  { %v10939_v40 = vsel %vm6726_vm4, 4294967295, %v10938_v40 }
 0x2d3   :  { %1435 = vrot.lane.b32.xlu2 %v6114_v14, %s2669_s0  ;;  %v10934_v14 = vmov 0 }
 0x2d4   :  { %v10935_v14 = vsel %vm6709_vm14, 4294967295, %v10934_v14  ;;  %vm1460_vm14 = vcmp.gt.f32.partialorder %v5241_v23, %v6504_v43 }
 0x2d5   :  { %v6568_v9 = vpop.permute.xlu2 %1369  ;;  %vm6747_vm15 = vmor %vm1460_vm14, %vm6675_vm7 }
 0x2d6   :  { %vm6764_vm7 = vmand %vm10045_vm0, %vm6682_vm3  ;;  %vm1533_vm3 = vcmp.ne.f32.partialorder %v6540_v38, %v6540_v38 }
 0x2d7   :  { %v6578_v29 = vpop.permute.xlu0 %1377 }
 0x2d8   :  { %10909 = vst [vmem:[#allocation8_spill] sm:$0xff] %v6578_v29  ;;  %v10941_v29 = vmov 0 }
 0x2db   :  { %1441 = vrot.lane.b32.xlu2 %v6237_v19, %s2669_s0  ;;  %v10924_v19 = vmov 0 }
 0x2dc   :  { %v6580_v0 = vpop.permute.xlu1 %1379  ;;  %v10925_v19 = vsel %vm6666_vm8, 4294967295, %v10924_v19  ;;  %vm1528_vm8 = vcmp.ne.f32.partialorder %v6518_v4, %v6518_v4 }
 0x2dd   :  { %v6576_v47 = vpop.permute.xlu2 %1375  ;;  %10910 = vst [vmem:[#allocation13_spill] sm:$0xff] %v6580_v0  ;;  %v1649_v0 = vsel %vm6642_vm9, %v6492_v26, %v5071_v18 }
 0x2de   :  { %10908 = vst [vmem:[#allocation11_spill] sm:$0xff] %v6576_v47 }
 0x2e3   :  { %1447 = vrot.lane.b32.xlu2 %v6332_v5, %s2669_s0 }
 0x2e5   :  { %v6584_v46 = vpop.permute.xlu2 %1381  ;;  %v6586_v62 = vpop.permute.xlu0 %1383 }
 0x2e6   :  { %10911 = vst [vmem:[#allocation18_spill] sm:$0xff] %v6584_v46 }
 0x2e7   :  { %10912 = vst [vmem:[#allocation24_spill] sm:$0xff] %v6586_v62  ;;  %v10930_v62 = vmov 0 }
 0x2e8   :  { %v10931_v62 = vsel %vm6691_vm10, 4294967295, %v10930_v62 }
 0x2e9   :  { %v6588_v3 = vpop.permute.xlu1 %1385 }
 0x2ea   :  { %10913 = vst [vmem:[#allocation15_spill] sm:$0xff] %v6588_v3  ;;  %v10936_v3 = vmov 0 }
 0x2eb   :  { %1453 = vrot.lane.b32.xlu2 %v6402_v2, %s2669_s0  ;;  %v10937_v3 = vsel %vm6716_vm1, 4294967295, %v10936_v3  ;;  %vm6739_vm1 = vmxor %vm1528_vm8, %vm10173_vm12 }
 0x2ec   :  { %v10942_v29 = vsel %vm6739_vm1, 4294967295, %v10941_v29  ;;  %vm1458_vm1 = vcmp.gt.f32.partialorder %v5551_v44, %v6494_v45 }
 0x2ed   :  { %v6598_v22 = vpop.permute.xlu2 %1387 }
 0x2ee   :  { %10914 = vst [vmem:[#allocation16_spill] sm:$0xff] %v6598_v22 }
 0x2f0   :  { %v6605_v34 = vpop.permute.xlu0 %1389 }
 0x2f1   :  { %10915 = vst [vmem:[#allocation27_spill] sm:$0xff] %v6605_v34  ;;  %v6629_v5 = vpop.permute.xlu1 %1391  ;;  %v10922_v34 = vmov 0 }
 0x2f2   :  { %v10923_v34 = vsel %vm6656_vm2, 4294967295, %v10922_v34  ;;  %vm1711_vm11 = vcmp.ne.f32.partialorder %v6629_v5, %v6629_v5 }
 0x2f3   :  { %vm10953_vm0 = vnez %v10923_v34 }
 0x2f4   :  { %vm6797_vm8 = vmor %vm1458_vm1, %vm10953_vm0 }
 0x2f5   :  { %v6640_v48 = vpop.permute.xlu2 %1393 }
 0x2f8   :  { %v1396_v30 = vpop.permute.xlu0 %1395 }
 0x2f9   :  { %v6696_v57 = vpop.permute.xlu1 %1397  ;;  %vm1713_vm2 = vcmp.ne.f32.partialorder %v1396_v30, %v1396_v30  ;;  %vm1681_vm13 = vcmp.gt.f32.partialorder %v1396_v30, %v5071_v18 }
 0x2fa   :  { %vm1777_vm10 = vmand %vm1713_vm2, %vm1745_vm6  ;;  %vm10046_vm2 = vcmp.ne.f32.partialorder %v5336_v36, %v5336_v36 }
 0x2fb   :  { %vm1809_vm4 = vmor %vm1681_vm13, %vm1777_vm10  ;;  %vm10947_vm10 = vcmp.ne.f32.partialorder %v6524_v63, %v6524_v63  ;;  %vm10950_vm13 = vcmp.ne.f32.partialorder %v5425_v25, %v5425_v25 }
 0x2fc   :  { %vm6772_vm14 = vmxor %vm10947_vm10, %vm10173_vm12  ;;  %v1841_v54 = vsel %vm1809_vm4, %v1396_v30, %v5071_v18  ;;  %vm10952_vm10 = vnez %v10951_v13  ;;  %v10954_v30 = vmov 0 }
 0x2fd   :  { %v6734_v28 = vpop.permute.xlu2 %1399  ;;  %vm1743_vm6 = vmxor %vm10950_vm13, %vm10173_vm12  ;;  %v1873_v52 = vsel %vm10952_vm10, %v1841_v54, %v5071_v18  ;;  %v10955_v30 = vsel %vm6797_vm8, 4294967295, %v10954_v30  ;;  %v10956_v18 = vmov 0  ;;  %v10958_v54 = vld [vmem:[#allocation21_spill] sm:$0xff] }
 0x2fe   :  { %vm1775_vm4 = vmand %vm1711_vm11, %vm1743_vm6  ;;  %vm10959_vm11 = vnez %v10958_v54  ;;  %vm10960_vm6 = vcmp.gt.f32.partialorder %v6629_v5, %v5425_v25 }
 0x2ff   :  { %vm6806_vm9 = vmand %vm10046_vm2, %vm6701_vm5  ;;  %v6812_v16 = vsel %vm10959_vm11, %v1649_v0, %v1873_v52  ;;  %vm10961_vm5 = vnez %v10925_v19  ;;  %vm10962_vm2 = vcmp.ne.f32.partialorder %v4997_v42, %v4997_v42  ;;  %v10963_v19 = vmov 0 }
 0x300   :  { %v1402_v2 = vpop.permute.xlu0 %1401  ;;  %v10957_v18 = vsel %vm6806_vm9, 4294967295, %v10956_v18  ;;  %vm1807_vm1 = vmor %vm10960_vm6, %vm1775_vm4  ;;  %v1647_v26 = vsel %vm10961_vm5, %v6482_v60, %v5425_v25  ;;  %1939 = vrot.lane.b32.xlu2 %v6812_v16, %s2668_s13  ;;  %vm1459_vm4 = vcmp.gt.f32.partialorder %v10906_v15, %v6500_v61  ;;  %vm10966_vm9 = vnez %v10931_v62 }
 0x301   :  { %v6819_v34 = vpop.permute.xlu1 %1403  ;;  %v1839_v46 = vsel %vm1807_vm1, %v6629_v5, %v5425_v25  ;;  %vm1744_vm13 = vmxor %vm10962_vm2, %vm10173_vm12  ;;  %vm10965_vm2 = vcmp.ne.f32.partialorder %v6640_v48, %v6640_v48  ;;  %vm1716_vm0 = vcmp.ne.f32.partialorder %v1402_v2, %v1402_v2  ;;  %v10967_v60 = vmov 0 }
 0x302   :  { %vm6841_vm5 = vmxor %vm1533_vm3, %vm10173_vm12  ;;  %v1871_v5 = vsel %vm10952_vm10, %v1839_v46, %v5425_v25  ;;  %vm10047_vm3 = vcmp.ne.f32.partialorder %v5547_v33, %v5547_v33  ;;  %v10971_v0 = vmov 0  ;;  %v11035_v46 = vmov 0 }
 0x303   :  { %v10964_v19 = vsel %vm6841_vm5, 4294967295, %v10963_v19  ;;  %vm1776_vm1 = vmand %vm10965_vm2, %vm1744_vm13  ;;  %v6861_v52 = vsel %vm10959_vm11, %v1647_v26, %v1871_v5  ;;  %vm10969_vm5 = vcmp.gt.f32.partialorder %v6640_v48, %v4997_v42  ;;  %vm10978_vm13 = vnez %v10939_v40 }
 0x304   :  { %vm6853_vm6 = vmor %vm1459_vm4, %vm10966_vm9  ;;  %vm10970_vm4 = vnez %v10937_v3  ;;  %1935 = vrot.lane.b32.xlu0 %v6861_v52, %s2668_s13  ;;  %vm10974_vm9 = vnez %v10935_v14  ;;  %v1652_v5 = vsel %vm6747_vm15, %v6504_v43, %v5241_v23  ;;  %vm10992_vm15 = vcmp.ne.f32.partialorder %v5499_v27, %v5499_v27 }
 0x305   :  { %v10968_v60 = vsel %vm6853_vm6, 4294967295, %v10967_v60  ;;  %vm1808_vm8 = vmor %vm10969_vm5, %vm1776_vm1  ;;  %v6867_v25 = vpop.permute.xlu2 %1405  ;;  %vm10973_vm5 = vcmp.ne.f32.partialorder %v5241_v23, %v5241_v23  ;;  %v1648_v3 = vsel %vm10974_vm9, %v6488_v32, %v4997_v42 }
 0x306   :  { %vm6876_vm2 = vmand %vm10047_vm3, %vm10970_vm4  ;;  %v1840_v62 = vsel %vm1808_vm8, %v6640_v48, %v4997_v42  ;;  %vm1463_vm4 = vcmp.gt.f32.partialorder %v5370_v58, %v6516_v55  ;;  %vm10975_vm8 = vcmp.ne.f32.partialorder %v6530_v11, %v6530_v11  ;;  %v10976_v48 = vmov 0 }
 0x307   :  { %v10972_v0 = vsel %vm6876_vm2, 4294967295, %v10971_v0  ;;  %vm1748_vm1 = vmxor %vm10973_vm5, %vm10173_vm12  ;;  %v1872_v26 = vsel %vm10952_vm10, %v1840_v62, %v4997_v42 }
 0x308   :  { %vm6898_vm3 = vmxor %vm10975_vm8, %vm10173_vm12  ;;  %vm10048_vm8 = vcmp.ne.f32.partialorder %v5912_v37, %v5912_v37  ;;  %v6918_v32 = vsel %vm10959_vm11, %v1648_v3, %v1872_v26  ;;  %v6924_v42 = vpop.permute.xlu0 %1407  ;;  %v10999_v3 = vmov 0 }
 0x309   :  { %v10977_v48 = vsel %vm6898_vm3, 4294967295, %v10976_v48  ;;  %vm1780_vm5 = vmand %vm1716_vm0, %vm1748_vm1  ;;  %vm10981_vm3 = vcmp.gt.f32.partialorder %v1402_v2, %v5241_v23  ;;  %1937 = vrot.lane.b32.xlu1 %v6918_v32, %s2668_s13  ;;  %v7002_v47 = vpop.permute.xlu1 %1409 }
 0x30a   :  { %vm6910_vm2 = vmor %vm1463_vm4, %vm10978_vm13  ;;  %vm1461_vm13 = vcmp.gt.f32.partialorder %v5737_v56, %v6506_v59  ;;  %vm10982_vm4 = vnez %v10942_v29 }
 0x30b   :  { %vm1812_vm6 = vmor %vm10981_vm3, %vm1780_vm5  ;;  %vm10985_vm3 = vcmp.ne.f32.partialorder %v6536_v21, %v6536_v21 }
 0x30c   :  { %vm6935_vm9 = vmand %vm10048_vm8, %vm10982_vm4  ;;  %v1844_v29 = vsel %vm1812_vm6, %v1402_v2, %v5241_v23  ;;  %vm10988_vm4 = vcmp.ne.f32.partialorder %v5551_v44, %v5551_v44  ;;  %vm10989_vm6 = vcmp.ne.f32.partialorder %v6696_v57, %v6696_v57 }
 0x30d   :  { %vm6943_vm5 = vmxor %vm10985_vm3, %vm10173_vm12  ;;  %v1876_v62 = vsel %vm10952_vm10, %v1844_v29, %v5241_v23  ;;  %v10993_v23 = vmov 0  ;;  %v7062_v26 = vpop.permute.xlu2 %1411 }
 0x30e   :  { %vm1746_vm8 = vmxor %vm10988_vm4, %vm10173_vm12  ;;  %v6985_v35 = vsel %vm10959_vm11, %v1652_v5, %v1876_v62  ;;  %v1655_v62 = vsel %vm6910_vm2, %v6516_v55, %v5370_v58  ;;  %vm11029_vm2 = vcmp.ne.f32.partialorder %v5653_v51, %v5653_v51 }
 0x30f   :  { %vm1778_vm0 = vmand %vm10989_vm6, %vm1746_vm8  ;;  %vm10995_vm8 = vcmp.gt.f32.partialorder %v6696_v57, %v5551_v44  ;;  %vm1462_vm6 = vcmp.gt.f32.partialorder %v5336_v36, %v6512_v6  ;;  %1945 = vrot.lane.b32.xlu2 %v6985_v35, %s2668_s13 }
 0x310   :  { %vm6970_vm4 = vmor %vm1461_vm13, %vm6764_vm7 }
 0x311   :  { %vm6979_vm3 = vmand %vm10992_vm15, %vm6772_vm14  ;;  %vm10996_vm14 = vcmp.ne.f32.partialorder %v10906_v15, %v10906_v15  ;;  %v1653_v40 = vsel %vm6970_vm4, %v6506_v59, %v5737_v56  ;;  %v7210_v2 = vpop.permute.xlu1 %1415 }
 0x312   :  { %v10994_v23 = vsel %vm6979_vm3, 4294967295, %v10993_v23  ;;  %vm1810_vm7 = vmor %vm10995_vm8, %vm1778_vm0  ;;  %vm10997_vm0 = vnez %v10955_v30  ;;  %vm10998_vm8 = vnez %v10957_v18 }
 0x313   :  { %v1842_v43 = vsel %vm1810_vm7, %v6696_v57, %v5551_v44  ;;  %vm1747_vm15 = vmxor %vm10996_vm14, %vm10173_vm12  ;;  %v1650_v22 = vsel %vm10997_vm0, %v6494_v45, %v5551_v44  ;;  %vm11001_vm14 = vcmp.ne.f32.partialorder %v6552_v7, %v6552_v7  ;;  %v11002_v57 = vmov 0 }
 0x314   :  { %vm7010_vm13 = vmor %vm1462_vm6, %vm10998_vm8  ;;  %v1874_v45 = vsel %vm10952_vm10, %v1842_v43, %v5551_v44  ;;  %vm11004_vm6 = vcmp.ne.f32.partialorder %v6734_v28, %v6734_v28  ;;  %vm10049_vm7 = vcmp.ne.f32.partialorder %v5725_v49, %v5725_v49  ;;  %v11007_v44 = vmov 0 }
 0x315   :  { %v11000_v3 = vsel %vm7010_vm13, 4294967295, %v10999_v3  ;;  %vm7020_vm1 = vmxor %vm11001_vm14, %vm10173_vm12  ;;  %v7036_v30 = vsel %vm10959_vm11, %v1650_v22, %v1874_v45  ;;  %vm11005_vm14 = vcmp.gt.f32.partialorder %v6734_v28, %v10906_v15  ;;  %v11043_v22 = vmov 0 }
 0x316   :  { %v11003_v57 = vsel %vm7020_vm1, 4294967295, %v11002_v57  ;;  %vm1779_vm0 = vmand %vm11004_vm6, %vm1747_vm15  ;;  %vm11006_vm6 = vnez %v10964_v19  ;;  %1941 = vrot.lane.b32.xlu0 %v7036_v30, %s2668_s13 }
 0x317   :  { %vm1811_vm1 = vmor %vm11005_vm14, %vm1779_vm0  ;;  %vm11009_vm0 = vcmp.ne.f32.partialorder %v5370_v58, %v5370_v58 }
 0x318   :  { %vm7050_vm8 = vmand %vm10049_vm7, %vm11006_vm6  ;;  %v1843_v18 = vsel %vm1811_vm1, %v6734_v28, %v10906_v15  ;;  %vm11010_vm6 = vnez %v10968_v60  ;;  %vm1466_vm7 = vcmp.gt.f32.partialorder %v5547_v33, %v6528_v20  ;;  %vm11011_vm1 = vcmp.ne.f32.partialorder %v6544_v39, %v6544_v39 }
 0x319   :  { %v11008_v44 = vsel %vm7050_vm8, 4294967295, %v11007_v44  ;;  %vm1751_vm14 = vmxor %vm11009_vm0, %vm10173_vm12  ;;  %v1651_v19 = vsel %vm11010_vm6, %v6500_v61, %v10906_v15  ;;  %v11012_v28 = vmov 0  ;;  %v1875_v29 = vsel %vm10952_vm10, %v1843_v18, %v10906_v15  ;;  %v7086_v61 = vpop.permute.xlu0 %1413 }
 0x31a   :  { %vm7074_vm15 = vmxor %vm11011_vm1, %vm10173_vm12  ;;  %vm11014_vm0 = vcmp.ne.f32.partialorder %v6924_v42, %v6924_v42  ;;  %vm11015_vm8 = vnez %v10972_v0  ;;  %v11016_v60 = vmov 0  ;;  %vm10050_vm1 = vcmp.ne.f32.partialorder %v6069_v10, %v6069_v10 }
 0x31b   :  { %v11013_v28 = vsel %vm7074_vm15, 4294967295, %v11012_v28  ;;  %vm1783_vm13 = vmand %vm11014_vm0, %vm1751_vm14  ;;  %v7098_v15 = vsel %vm10959_vm11, %v1651_v19, %v1875_v29  ;;  %vm11018_vm14 = vcmp.gt.f32.partialorder %v6924_v42, %v5370_v58  ;;  %v11051_v18 = vmov 0 }
 0x31c   :  { %vm7090_vm3 = vmor %vm1466_vm7, %vm11015_vm8  ;;  %vm1464_vm7 = vcmp.gt.f32.partialorder %v5912_v37, %v6518_v4  ;;  %1943 = vrot.lane.b32.xlu1 %v7098_v15, %s2668_s13  ;;  %vm1718_vm8 = vcmp.ne.f32.partialorder %v6867_v25, %v6867_v25  ;;  %v11060_v29 = vmov 0 }
 0x31d   :  { %v11017_v60 = vsel %vm7090_vm3, 4294967295, %v11016_v60  ;;  %vm1815_vm0 = vmor %vm11018_vm14, %vm1783_vm13  ;;  %vm11019_vm3 = vnez %v10977_v48  ;;  %vm11022_vm13 = vcmp.ne.f32.partialorder %v6548_v8, %v6548_v8 }
 0x31e   :  { %vm7114_vm15 = vmand %vm10050_vm1, %vm11019_vm3  ;;  %v1847_v48 = vsel %vm1815_vm0, %v6924_v42, %v5370_v58  ;;  %vm11025_vm3 = vcmp.ne.f32.partialorder %v5737_v56, %v5737_v56  ;;  %vm11026_vm0 = vcmp.ne.f32.partialorder %v6819_v34, %v6819_v34  ;;  %v11077_v42 = vmov 0 }
 0x31f   :  { %vm7122_vm14 = vmxor %vm11022_vm13, %vm10173_vm12  ;;  %v1879_v43 = vsel %vm10952_vm10, %v1847_v48, %v5370_v58  ;;  %v11120_v48 = vld [vmem:[#allocation8_spill] sm:$0xff] }
 0x320   :  { %vm1749_vm1 = vmxor %vm11025_vm3, %vm10173_vm12  ;;  %v7165_v55 = vsel %vm10959_vm11, %v1655_v62, %v1879_v43  ;;  %v7398_v43 = vpop.permute.xlu1 %1421 }
 0x321   :  { %vm1781_vm6 = vmand %vm11026_vm0, %vm1749_vm1  ;;  %vm11032_vm1 = vcmp.gt.f32.partialorder %v6819_v34, %v5737_v56  ;;  %vm1465_vm0 = vcmp.gt.f32.partialorder %v5499_v27, %v6524_v63  ;;  %1951 = vrot.lane.b32.xlu2 %v7165_v55, %s2668_s13 }
 0x322   :  { %vm7150_vm3 = vmor %vm1464_vm7, %vm6935_vm9 }
 0x323   :  { %vm7159_vm13 = vmand %vm11029_vm2, %vm6943_vm5  ;;  %vm11033_vm5 = vcmp.ne.f32.partialorder %v5336_v36, %v5336_v36  ;;  %v1656_v5 = vsel %vm7150_vm3, %v6518_v4, %v5912_v37 }
 0x324   :  { %vm1813_vm9 = vmor %vm11032_vm1, %vm1781_vm6  ;;  %vm11034_vm6 = vnez %v10994_v23 }
 0x325   :  { %v1845_v14 = vsel %vm1813_vm9, %v6819_v34, %v5737_v56  ;;  %vm1750_vm2 = vmxor %vm11033_vm5, %vm10173_vm12  ;;  %vm11037_vm5 = vcmp.ne.f32.partialorder %v6564_v31, %v6564_v31  ;;  %v11038_v34 = vmov 0 }
 0x326   :  { %vm7188_vm1 = vmor %vm1465_vm0, %vm11034_vm6  ;;  %v1877_v59 = vsel %vm10952_vm10, %v1845_v14, %v5737_v56  ;;  %vm10051_vm6 = vcmp.ne.f32.partialorder %v5866_v41, %v5866_v41  ;;  %v11080_v14 = vld [vmem:[#allocation12_spill] sm:$0xff] }
 0x327   :  { %v11036_v46 = vsel %vm7188_vm1, 4294967295, %v11035_v46  ;;  %vm7198_vm7 = vmxor %vm11037_vm5, %vm10173_vm12  ;;  %v7216_v23 = vsel %vm10959_vm11, %v1653_v40, %v1877_v59  ;;  %vm11040_vm5 = vcmp.gt.f32.partialorder %v6867_v25, %v5336_v36 }
 0x328   :  { %v11039_v34 = vsel %vm7198_vm7, 4294967295, %v11038_v34  ;;  %vm1782_vm4 = vmand %vm1718_vm8, %vm1750_vm2  ;;  %vm11041_vm8 = vnez %v11000_v3  ;;  %vm11042_vm2 = vnez %v11003_v57  ;;  %1947 = vrot.lane.b32.xlu0 %v7216_v23, %s2668_s13  ;;  %v7266_v57 = vpop.permute.xlu2 %1417 }
 0x329   :  { %vm1814_vm9 = vmor %vm11040_vm5, %vm1782_vm4  ;;  %v1654_v56 = vsel %vm11041_vm8, %v6512_v6, %v5336_v36  ;;  %vm11045_vm4 = vcmp.ne.f32.partialorder %v5547_v33, %v5547_v33  ;;  %v7244_v6 = vpop.permute.xlu0 %1419  ;;  %vm1469_vm8 = vcmp.gt.f32.partialorder %v5725_v49, %v6540_v38 }
 0x32a   :  { %vm7232_vm0 = vmand %vm10051_vm6, %vm11042_vm2  ;;  %v1846_v45 = vsel %vm1814_vm9, %v6867_v25, %v5336_v36  ;;  %vm11046_vm9 = vcmp.ne.f32.partialorder %v6556_v17, %v6556_v17  ;;  %v11047_v25 = vmov 0  ;;  %vm11050_vm2 = vnez %v11008_v44 }
 0x32b   :  { %v11044_v22 = vsel %vm7232_vm0, 4294967295, %v11043_v22  ;;  %vm1754_vm5 = vmxor %vm11045_vm4, %vm10173_vm12  ;;  %v1878_v3 = vsel %vm10952_vm10, %v1846_v45, %v5336_v36  ;;  %vm11049_vm4 = vcmp.ne.f32.partialorder %v7086_v61, %v7086_v61  ;;  %vm11058_vm0 = vnez %v11017_v60 }
 0x32c   :  { %vm7254_vm6 = vmxor %vm11046_vm9, %vm10173_vm12  ;;  %vm10052_vm9 = vcmp.ne.f32.partialorder %v6194_v50, %v6194_v50  ;;  %v7278_v36 = vsel %vm10959_vm11, %v1654_v56, %v1878_v3  ;;  %v11091_v56 = vmov 0  ;;  %v11098_v3 = vld [vmem:[#allocation13_spill] sm:$0xff] }
 0x32d   :  { %v11048_v25 = vsel %vm7254_vm6, 4294967295, %v11047_v25  ;;  %vm1786_vm7 = vmand %vm11049_vm4, %vm1754_vm5  ;;  %vm11053_vm5 = vcmp.gt.f32.partialorder %v7086_v61, %v5547_v33  ;;  %1949 = vrot.lane.b32.xlu1 %v7278_v36, %s2668_s13 }
 0x32e   :  { %vm7270_vm1 = vmor %vm1469_vm8, %vm11050_vm2  ;;  %vm1467_vm8 = vcmp.gt.f32.partialorder %v6069_v10, %v6530_v11 }
 0x32f   :  { %v11052_v18 = vsel %vm7270_vm1, 4294967295, %v11051_v18  ;;  %vm1818_vm4 = vmor %vm11053_vm5, %vm1786_vm7  ;;  %vm11054_vm1 = vnez %v11013_v28  ;;  %vm11057_vm7 = vcmp.ne.f32.partialorder %v5912_v37, %v5912_v37  ;;  %v1658_v28 = vsel %vm11058_vm0, %v6528_v20, %v5547_v33  ;;  %v11115_v20 = vld [vmem:[#allocation10_spill] sm:$0xff] }
 0x330   :  { %vm7294_vm6 = vmand %vm10052_vm9, %vm11054_vm1  ;;  %v1850_v19 = vsel %vm1818_vm4, %v7086_v61, %v5547_v33  ;;  %vm11059_vm1 = vcmp.ne.f32.partialorder %v6560_v1, %v6560_v1  ;;  %vm1721_vm0 = vcmp.ne.f32.partialorder %v7062_v26, %v7062_v26  ;;  %vm11065_vm4 = vcmp.ne.f32.partialorder %v5811_v24, %v5811_v24 }
 0x331   :  { %vm1752_vm5 = vmxor %vm11057_vm7, %vm10173_vm12  ;;  %v1882_v61 = vsel %vm10952_vm10, %v1850_v19, %v5547_v33  ;;  %vm11062_vm7 = vcmp.ne.f32.partialorder %v7002_v47, %v7002_v47 }
 0x332   :  { %vm7314_vm9 = vmxor %vm11059_vm1, %vm10173_vm12  ;;  %v7345_v60 = vsel %vm10959_vm11, %v1658_v28, %v1882_v61  ;;  %v11112_v61 = vmov 0 }
 0x333   :  { %v11061_v29 = vsel %vm7314_vm9, 4294967295, %v11060_v29  ;;  %vm1784_vm2 = vmand %vm11062_vm7, %vm1752_vm5  ;;  %vm11068_vm5 = vcmp.gt.f32.partialorder %v7002_v47, %v5912_v37  ;;  %vm1468_vm7 = vcmp.gt.f32.partialorder %v5653_v51, %v6536_v21  ;;  %1957 = vrot.lane.b32.xlu2 %v7345_v60, %s2668_s13 }
 0x334   :  { %vm7330_vm1 = vmor %vm1467_vm8, %vm7114_vm15  ;;  %vm1689_vm8 = vcmp.gt.f32.partialorder %v7062_v26, %v5499_v27 }
 0x335   :  { %vm7339_vm9 = vmand %vm11065_vm4, %vm7122_vm14  ;;  %vm11069_vm14 = vcmp.ne.f32.partialorder %v5499_v27, %v5499_v27  ;;  %v1659_v28 = vsel %vm7330_vm1, %v6530_v11, %v6069_v10 }
 0x336   :  { %vm1816_vm15 = vmor %vm11068_vm5, %vm1784_vm2 }
 0x337   :  { %v1848_v0 = vsel %vm1816_vm15, %v7002_v47, %v5912_v37  ;;  %vm1753_vm4 = vmxor %vm11069_vm14, %vm10173_vm12  ;;  %vm11072_vm15 = vcmp.ne.f32.partialorder %v6572_v12, %v6572_v12  ;;  %v11073_v47 = vmov 0 }
 0x338   :  { %vm7368_vm2 = vmor %vm1468_vm7, %vm7159_vm13  ;;  %v1880_v4 = vsel %vm10952_vm10, %v1848_v0, %v5912_v37  ;;  %vm10053_vm7 = vcmp.ne.f32.partialorder %v6020_v53, %v6020_v53  ;;  %v11117_v0 = vmov 0 }
 0x339   :  { %vm7378_vm14 = vmxor %vm11072_vm15, %vm10173_vm12  ;;  %v7394_v62 = vsel %vm10959_vm11, %v1656_v5, %v1880_v4 }
 0x33a   :  { %v11074_v47 = vsel %vm7378_vm14, 4294967295, %v11073_v47  ;;  %vm1785_vm13 = vmand %vm1721_vm0, %vm1753_vm4  ;;  %vm11075_vm0 = vnez %v11036_v46  ;;  %vm11076_vm4 = vnez %v11039_v34  ;;  %1953 = vrot.lane.b32.xlu0 %v7394_v62, %s2668_s13  ;;  %v11088_v34 = vld [vmem:[#allocation28_spill] sm:$0xff]  ;;  %v11141_v46 = vld [vmem:[#allocation31_spill] sm:$0xff] }
 0x33b   :  { %vm1817_vm15 = vmor %vm1689_vm8, %vm1785_vm13  ;;  %v1657_v37 = vsel %vm11075_vm0, %v6524_v63, %v5499_v27  ;;  %vm11079_vm8 = vcmp.ne.f32.partialorder %v5725_v49, %v5725_v49  ;;  %v7421_v63 = vpop.permute.xlu0 %1425  ;;  %vm1472_vm0 = vcmp.gt.f32.partialorder %v5866_v41, %v6552_v7 }
 0x33c   :  { %vm7409_vm3 = vmand %vm10053_vm7, %vm11076_vm4  ;;  %v1849_v58 = vsel %vm1817_vm15, %v7062_v26, %v5499_v27  ;;  %vm11081_vm15 = vcmp.ne.f32.partialorder %v6568_v9, %v6568_v9  ;;  %v11082_v26 = vmov 0  ;;  %vm11085_vm4 = vnez %v11044_v22 }
 0x33d   :  { %v11078_v42 = vsel %vm7409_vm3, 4294967295, %v11077_v42  ;;  %vm1757_vm13 = vmxor %vm11079_vm8, %vm10173_vm12  ;;  %v1881_v40 = vsel %vm10952_vm10, %v1849_v58, %v5499_v27  ;;  %vm11084_vm8 = vcmp.ne.f32.partialorder %v7244_v6, %v7244_v6  ;;  %v7460_v27 = vpop.permute.xlu2 %1423  ;;  %v11127_v58 = vld [vmem:[#allocation23_spill] sm:$0xff] }
 0x33e   :  { %vm7431_vm7 = vmxor %vm11081_vm15, %vm10173_vm12  ;;  %vm10054_vm15 = vcmp.ne.f32.partialorder %v11088_v34, %v11088_v34  ;;  %v7453_v59 = vsel %vm10959_vm11, %v1657_v37, %v1881_v40  ;;  %v11125_v37 = vmov 0 }
 0x33f   :  { %v11083_v26 = vsel %vm7431_vm7, 4294967295, %v11082_v26  ;;  %vm1789_vm5 = vmand %vm11084_vm8, %vm1757_vm13  ;;  %vm11089_vm7 = vcmp.gt.f32.partialorder %v7244_v6, %v5725_v49  ;;  %1955 = vrot.lane.b32.xlu1 %v7453_v59, %s2668_s13  ;;  %vm11094_vm8 = vnez %v11052_v18  ;;  %v11102_v18 = vld [vmem:[#allocation26_spill] sm:$0xff] }
 0x340   :  { %vm7445_vm14 = vmor %vm1472_vm0, %vm11085_vm4  ;;  %vm1470_vm0 = vcmp.gt.f32.partialorder %v6194_v50, %v6544_v39  ;;  %vm11090_vm4 = vnez %v11048_v25  ;;  %v1661_v45 = vsel %vm11094_vm8, %v6540_v38, %v5725_v49  ;;  %v11096_v25 = vmov 0  ;;  %v11154_v38 = vld [vmem:[#allocation9_spill] sm:$0xff] }
 0x341   :  { %vm1821_vm13 = vmor %vm11089_vm7, %vm1789_vm5  ;;  %vm11093_vm5 = vcmp.ne.f32.partialorder %v6069_v10, %v6069_v10 }
 0x342   :  { %vm7469_vm3 = vmand %vm10054_vm15, %vm11090_vm4  ;;  %v1853_v22 = vsel %vm1821_vm13, %v7244_v6, %v5725_v49  ;;  %vm11095_vm4 = vcmp.ne.f32.partialorder %v11080_v14, %v11080_v14  ;;  %vm10055_vm13 = vcmp.ne.f32.partialorder %v11102_v18, %v11102_v18 }
 0x343   :  { %v11092_v56 = vsel %vm7469_vm3, 4294967295, %v11091_v56  ;;  %vm1755_vm7 = vmxor %vm11093_vm5, %vm10173_vm12  ;;  %v1885_v6 = vsel %vm10952_vm10, %v1853_v22, %v5725_v49  ;;  %vm11099_vm5 = vcmp.ne.f32.partialorder %v7210_v2, %v7210_v2  ;;  %v7621_v4 = vpop.permute.xlu0 %1431  ;;  %v11157_v49 = vmov 0 }
 0x344   :  { %vm7489_vm15 = vmxor %vm11095_vm4, %vm10173_vm12  ;;  %v7513_v19 = vsel %vm10959_vm11, %v1661_v45, %v1885_v6  ;;  %v11134_v45 = vmov 0 }
 0x345   :  { %v11097_v25 = vsel %vm7489_vm15, 4294967295, %v11096_v25  ;;  %vm1787_vm3 = vmand %vm11099_vm5, %vm1755_vm7  ;;  %vm11103_vm15 = vcmp.gt.f32.partialorder %v7210_v2, %v6069_v10  ;;  %vm1692_vm5 = vcmp.gt.f32.partialorder %v7266_v57, %v5653_v51  ;;  %1963 = vrot.lane.b32.xlu2 %v7513_v19, %s2668_s13  ;;  %v7659_v22 = vpop.permute.xlu2 %1429 }
 0x346   :  { %vm7505_vm4 = vmor %vm1470_vm0, %vm7294_vm6  ;;  %vm1471_vm6 = vcmp.gt.f32.partialorder %v5811_v24, %v6548_v8  ;;  %vm11104_vm0 = vnez %v11061_v29 }
 0x347   :  { %vm1819_vm7 = vmor %vm11103_vm15, %vm1787_vm3  ;;  %vm11107_vm3 = vcmp.ne.f32.partialorder %v5653_v51, %v5653_v51 }
 0x348   :  { %vm7527_vm8 = vmand %vm10055_vm13, %vm11104_vm0  ;;  %v1851_v44 = vsel %vm1819_vm7, %v7210_v2, %v6069_v10  ;;  %v11110_v2 = vld [vmem:[#allocation11_spill] sm:$0xff]  ;;  %vm10056_vm7 = vcmp.ne.f32.partialorder %v11115_v20, %v11115_v20 }
 0x349   :  { %vm1756_vm15 = vmxor %vm11107_vm3, %vm10173_vm12  ;;  %vm11111_vm3 = vcmp.ne.f32.partialorder %v11098_v3, %v11098_v3  ;;  %v1883_v11 = vsel %vm10952_vm10, %v1851_v44, %v6069_v10  ;;  %v1660_v10 = vsel %vm7368_vm2, %v6536_v21, %v5653_v51  ;;  %v7599_v21 = vpop.permute.xlu1 %1427 }
 0x34a   :  { %vm7545_vm0 = vmor %vm1471_vm6, %vm7339_vm9  ;;  %vm11114_vm9 = vcmp.ne.f32.partialorder %v7266_v57, %v7266_v57  ;;  %vm1728_vm6 = vcmp.ne.f32.partialorder %v7421_v63, %v7421_v63  ;;  %v7571_v33 = vsel %vm10959_vm11, %v1659_v28, %v1883_v11  ;;  %v11147_v28 = vld [vmem:[#allocation18_spill] sm:$0xff] }
 0x34b   :  { %vm7555_vm13 = vmxor %vm11111_vm3, %vm10173_vm12  ;;  %1959 = vrot.lane.b32.xlu0 %v7571_v33, %s2668_s13 }
 0x34c   :  { %v11113_v61 = vsel %vm7555_vm13, 4294967295, %v11112_v61  ;;  %vm1788_vm1 = vmand %vm11114_vm9, %vm1756_vm15  ;;  %vm11116_vm15 = vnez %v11074_v47 }
 0x34d   :  { %vm1820_vm3 = vmor %vm1692_vm5, %vm1788_vm1  ;;  %vm11119_vm5 = vcmp.ne.f32.partialorder %v5866_v41, %v5866_v41  ;;  %vm1475_vm1 = vcmp.gt.f32.partialorder %v6020_v53, %v6564_v31 }
 0x34e   :  { %vm7587_vm9 = vmand %vm10056_vm7, %vm11116_vm15  ;;  %v1852_v5 = vsel %vm1820_vm3, %v7266_v57, %v5653_v51  ;;  %vm11121_vm3 = vcmp.ne.f32.partialorder %v11110_v2, %v11110_v2  ;;  %vm11124_vm15 = vnez %v11078_v42  ;;  %v11130_v42 = vmov 0 }
 0x34f   :  { %v11118_v0 = vsel %vm7587_vm9, 4294967295, %v11117_v0  ;;  %vm1760_vm2 = vmxor %vm11119_vm5, %vm10173_vm12  ;;  %v1884_v47 = vsel %vm10952_vm10, %v1852_v5, %v5653_v51 }
 0x350   :  { %vm7609_vm7 = vmxor %vm11121_vm3, %vm10173_vm12  ;;  %vm10057_vm3 = vcmp.ne.f32.partialorder %v11127_v58, %v11127_v58  ;;  %v7633_v51 = vsel %vm10959_vm11, %v1660_v10, %v1884_v47  ;;  %v11165_v47 = vmov 0 }
 0x351   :  { %vm1792_vm5 = vmand %vm1728_vm6, %vm1760_vm2  ;;  %vm11128_vm6 = vcmp.gt.f32.partialorder %v7421_v63, %v5866_v41  ;;  %1961 = vrot.lane.b32.xlu1 %v7633_v51, %s2668_s13 }
 0x352   :  { %vm7625_vm9 = vmor %vm1475_vm1, %vm11124_vm15  ;;  %vm1473_vm1 = vcmp.gt.f32.partialorder %v11088_v34, %v6556_v17  ;;  %vm11129_vm15 = vnez %v11083_v26  ;;  %v1664_v26 = vsel %vm7445_vm14, %v6552_v7, %v5866_v41  ;;  %v11194_v7 = vld [vmem:[#allocation17_spill] sm:$0xff] }
 0x353   :  { %v11126_v37 = vsel %vm7625_vm9, 4294967295, %v11125_v37  ;;  %vm1824_vm2 = vmor %vm11128_vm6, %vm1792_vm5  ;;  %vm11132_vm5 = vcmp.ne.f32.partialorder %v6194_v50, %v6194_v50 }
 0x354   :  { %vm7647_vm9 = vmand %vm10057_vm3, %vm11129_vm15  ;;  %v1856_v40 = vsel %vm1824_vm2, %v7421_v63, %v5866_v41  ;;  %vm11133_vm15 = vcmp.ne.f32.partialorder %v11120_v48, %v11120_v48  ;;  %v11136_v63 = vld [vmem:[#allocation15_spill] sm:$0xff]  ;;  %vm10058_vm2 = vcmp.ne.f32.partialorder %v11141_v46, %v11141_v46 }
 0x355   :  { %v11131_v42 = vsel %vm7647_vm9, 4294967295, %v11130_v42  ;;  %vm1758_vm6 = vmxor %vm11132_vm5, %vm10173_vm12  ;;  %v1888_v6 = vsel %vm10952_vm10, %v1856_v40, %v5866_v41  ;;  %vm11137_vm5 = vcmp.ne.f32.partialorder %v7398_v43, %v7398_v43  ;;  %vm11138_vm9 = vnez %v11092_v56  ;;  %v11167_v40 = vld [vmem:[#allocation19_spill] sm:$0xff] }
 0x356   :  { %vm7669_vm3 = vmxor %vm11133_vm15, %vm10173_vm12  ;;  %v7693_v44 = vsel %vm10959_vm11, %v1664_v26, %v1888_v6  ;;  %v1438_v26 = vpop.permute.xlu0 %1437 }
 0x357   :  { %v11135_v45 = vsel %vm7669_vm3, 4294967295, %v11134_v45  ;;  %vm1790_vm13 = vmand %vm11137_vm5, %vm1758_vm6  ;;  %vm11142_vm3 = vcmp.gt.f32.partialorder %v7398_v43, %v6194_v50  ;;  %1969 = vrot.lane.b32.xlu2 %v7693_v44, %s2668_s13 }
 0x358   :  { %vm7685_vm15 = vmor %vm1473_vm1, %vm11138_vm9  ;;  %vm1474_vm9 = vcmp.gt.f32.partialorder %v11102_v18, %v6560_v1  ;;  %vm11143_vm1 = vnez %v11097_v25  ;;  %v1662_v25 = vsel %vm7505_vm4, %v6544_v39, %v6194_v50  ;;  %vm1731_vm4 = vcmp.ne.f32.partialorder %v7621_v4, %v7621_v4  ;;  %v11206_v39 = vld [vmem:[#allocation30_spill] sm:$0xff] }
 0x359   :  { %vm1822_vm6 = vmor %vm11142_vm3, %vm1790_vm13  ;;  %vm11146_vm13 = vcmp.ne.f32.partialorder %v5811_v24, %v5811_v24 }
 0x35a   :  { %vm7707_vm14 = vmand %vm10058_vm2, %vm11143_vm1  ;;  %v1854_v56 = vsel %vm1822_vm6, %v7398_v43, %v6194_v50  ;;  %vm11148_vm6 = vcmp.ne.f32.partialorder %v11136_v63, %v11136_v63  ;;  %v11149_v43 = vmov 0 }
 0x35b   :  { %vm1759_vm3 = vmxor %vm11146_vm13, %vm10173_vm12  ;;  %v1886_v11 = vsel %vm10952_vm10, %v1854_v56, %v6194_v50  ;;  %vm11151_vm13 = vcmp.ne.f32.partialorder %v7460_v27, %v7460_v27  ;;  %v1663_v50 = vsel %vm7545_vm0, %v6548_v8, %v5811_v24  ;;  %v11160_v8 = vld [vmem:[#allocation24_spill] sm:$0xff] }
 0x35c   :  { %vm7729_vm2 = vmxor %vm11148_vm6, %vm10173_vm12  ;;  %vm10059_vm6 = vcmp.ne.f32.partialorder %v11154_v38, %v11154_v38  ;;  %v7751_v10 = vsel %vm10959_vm11, %v1662_v25, %v1886_v11  ;;  %v11176_v25 = vld [vmem:[#allocation16_spill] sm:$0xff]  ;;  %v11181_v11 = vld [vmem:[#allocation14_spill] sm:$0xff] }
 0x35d   :  { %v11150_v43 = vsel %vm7729_vm2, 4294967295, %v11149_v43  ;;  %vm1791_vm5 = vmand %vm11151_vm13, %vm1759_vm3  ;;  %vm11155_vm2 = vcmp.gt.f32.partialorder %v7460_v27, %v5811_v24  ;;  %1965 = vrot.lane.b32.xlu0 %v7751_v10, %s2668_s13 }
 0x35e   :  { %vm7743_vm1 = vmor %vm1474_vm9, %vm7527_vm8  ;;  %vm11156_vm8 = vnez %v11113_v61  ;;  %v7799_v61 = vpop.permute.xlu1 %1433 }
 0x35f   :  { %vm1823_vm3 = vmor %vm11155_vm2, %vm1791_vm5  ;;  %vm11159_vm2 = vcmp.ne.f32.partialorder %v6020_v53, %v6020_v53  ;;  %vm1478_vm5 = vcmp.gt.f32.partialorder %v11115_v20, %v6572_v12 }
 0x360   :  { %vm7767_vm9 = vmand %vm10059_vm6, %vm11156_vm8  ;;  %v1855_v5 = vsel %vm1823_vm3, %v7460_v27, %v5811_v24  ;;  %vm11161_vm6 = vcmp.ne.f32.partialorder %v11147_v28, %v11147_v28  ;;  %vm11164_vm8 = vnez %v11118_v0  ;;  %v11169_v0 = vmov 0 }
 0x361   :  { %v11158_v49 = vsel %vm7767_vm9, 4294967295, %v11157_v49  ;;  %vm1763_vm0 = vmxor %vm11159_vm2, %vm10173_vm12  ;;  %v1887_v29 = vsel %vm10952_vm10, %v1855_v5, %v5811_v24  ;;  %vm11172_vm2 = vnez %v11126_v37  ;;  %v11179_v37 = vmov 0  ;;  %v11187_v5 = vld [vmem:[#allocation27_spill] sm:$0xff] }
 0x362   :  { %vm7787_vm13 = vmxor %vm11161_vm6, %vm10173_vm12  ;;  %vm10060_vm6 = vcmp.ne.f32.partialorder %v11167_v40, %v11167_v40  ;;  %v7811_v24 = vsel %vm10959_vm11, %v1663_v50, %v1887_v29  ;;  %v1667_v57 = vsel %vm11172_vm2, %v6564_v31, %v6020_v53  ;;  %v7859_v31 = vpop.permute.xlu2 %1435 }
 0x363   :  { %vm1795_vm3 = vmand %vm1731_vm4, %vm1763_vm0  ;;  %vm11168_vm4 = vcmp.gt.f32.partialorder %v7621_v4, %v6020_v53  ;;  %1967 = vrot.lane.b32.xlu1 %v7811_v24, %s2668_s13 }
 0x364   :  { %vm7803_vm9 = vmor %vm1478_vm5, %vm11164_vm8  ;;  %vm1476_vm5 = vcmp.gt.f32.partialorder %v11127_v58, %v6568_v9 }
 0x365   :  { %v11166_v47 = vsel %vm7803_vm9, 4294967295, %v11165_v47  ;;  %vm1827_vm0 = vmor %vm11168_vm4, %vm1795_vm3  ;;  %vm11171_vm3 = vcmp.ne.f32.partialorder %v11088_v34, %v11088_v34 }
 0x366   :  { %vm7825_vm8 = vmand %vm10060_vm6, %vm7609_vm7  ;;  %v1859_v6 = vsel %vm1827_vm0, %v7621_v4, %v6020_v53  ;;  %vm11173_vm7 = vcmp.ne.f32.partialorder %v11160_v8, %v11160_v8  ;;  %vm10061_vm0 = vcmp.ne.f32.partialorder %v11181_v11, %v11181_v11 }
 0x367   :  { %v11170_v0 = vsel %vm7825_vm8, 4294967295, %v11169_v0  ;;  %vm1761_vm4 = vmxor %vm11171_vm3, %vm10173_vm12  ;;  %v1891_v4 = vsel %vm10952_vm10, %v1859_v6, %v6020_v53  ;;  %vm11177_vm3 = vcmp.ne.f32.partialorder %v7599_v21, %v7599_v21 }
 0x368   :  { %vm7845_vm6 = vmxor %vm11173_vm7, %vm10173_vm12  ;;  %vm11178_vm7 = vnez %v11131_v42  ;;  %v7871_v53 = vsel %vm10959_vm11, %v1667_v57, %v1891_v4  ;;  %v11184_v42 = vmov 0 }
 0x369   :  { %vm1793_vm8 = vmand %vm11177_vm3, %vm1761_vm4  ;;  %vm11182_vm4 = vcmp.gt.f32.partialorder %v7599_v21, %v11088_v34  ;;  %1975 = vrot.lane.b32.xlu2 %v7871_v53, %s2668_s13 }
 0x36a   :  { %vm7863_vm9 = vmor %vm1476_vm5, %vm11178_vm7  ;;  %vm1477_vm5 = vcmp.gt.f32.partialorder %v11141_v46, %v11080_v14  ;;  %vm11183_vm7 = vnez %v11135_v45  ;;  %v1665_v45 = vsel %vm7685_vm15, %v6556_v17, %v11088_v34  ;;  %vm1734_vm15 = vcmp.ne.f32.partialorder %v1438_v26, %v1438_v26 }
 0x36b   :  { %v11180_v37 = vsel %vm7863_vm9, 4294967295, %v11179_v37  ;;  %vm1825_vm3 = vmor %vm11182_vm4, %vm1793_vm8  ;;  %vm11186_vm8 = vcmp.ne.f32.partialorder %v11102_v18, %v11102_v18 }
 0x36c   :  { %vm7885_vm9 = vmand %vm10061_vm0, %vm11183_vm7  ;;  %v1857_v50 = vsel %vm1825_vm3, %v7599_v21, %v11088_v34  ;;  %vm11188_vm3 = vcmp.ne.f32.partialorder %v11176_v25, %v11176_v25  ;;  %v11189_v21 = vmov 0 }
 0x36d   :  { %v11185_v42 = vsel %vm7885_vm9, 4294967295, %v11184_v42  ;;  %vm1762_vm4 = vmxor %vm11186_vm8, %vm10173_vm12  ;;  %v1889_v29 = vsel %vm10952_vm10, %v1857_v50, %v11088_v34  ;;  %vm11191_vm8 = vcmp.ne.f32.partialorder %v7659_v22, %v7659_v22  ;;  %v11197_v34 = vmov 0 }
 0x36e   :  { %vm7907_vm0 = vmxor %vm11188_vm3, %vm10173_vm12  ;;  %vm10062_vm3 = vcmp.ne.f32.partialorder %v11194_v7, %v11194_v7  ;;  %v7927_v6 = vsel %vm10959_vm11, %v1665_v45, %v1889_v29  ;;  %v1444_v45 = vpop.permute.xlu0 %1443 }
 0x36f   :  { %v11190_v21 = vsel %vm7907_vm0, 4294967295, %v11189_v21  ;;  %vm1794_vm2 = vmand %vm11191_vm8, %vm1762_vm4  ;;  %vm11195_vm0 = vcmp.gt.f32.partialorder %v7659_v22, %v11102_v18  ;;  %vm1702_vm4 = vcmp.gt.f32.partialorder %v1438_v26, %v11115_v20  ;;  %vm11196_vm8 = vnez %v11150_v43  ;;  %1971 = vrot.lane.b32.xlu0 %v7927_v6, %s2668_s13 }
 0x370   :  { %vm7919_vm7 = vmor %vm1477_vm5, %vm7707_vm14  ;;  %v1666_v43 = vsel %vm7743_vm1, %v6560_v1, %v11102_v18  ;;  %vm1481_vm5 = vcmp.gt.f32.partialorder %v11154_v38, %v11098_v3  ;;  %vm11203_vm1 = vnez %v11158_v49  ;;  %v11204_v1 = vmov 0 }
 0x371   :  { %vm1826_vm9 = vmor %vm11195_vm0, %vm1794_vm2  ;;  %vm11199_vm0 = vcmp.ne.f32.partialorder %v11115_v20, %v11115_v20  ;;  %v11208_v49 = vmov 0 }
 0x372   :  { %vm7938_vm14 = vmand %vm10062_vm3, %vm11196_vm8  ;;  %v1858_v41 = vsel %vm1826_vm9, %v7659_v22, %v11102_v18  ;;  %vm11200_vm9 = vcmp.ne.f32.partialorder %v11187_v5, %v11187_v5  ;;  %v11201_v22 = vmov 0  ;;  %vm1732_vm3 = vcmp.ne.f32.partialorder %v7799_v61, %v7799_v61 }
 0x373   :  { %v11198_v34 = vsel %vm7938_vm14, 4294967295, %v11197_v34  ;;  %vm1766_vm2 = vmxor %vm11199_vm0, %vm10173_vm12  ;;  %v1890_v57 = vsel %vm10952_vm10, %v1858_v41, %v11102_v18  ;;  %v7983_v18 = vpop.permute.xlu1 %1439 }
 0x374   :  { %vm7960_vm8 = vmxor %vm11200_vm9, %vm10173_vm12  ;;  %vm10063_vm9 = vcmp.ne.f32.partialorder %v11206_v39, %v11206_v39  ;;  %v7979_v4 = vsel %vm10959_vm11, %v1666_v43, %v1890_v57  ;;  %v11224_v57 = vld [vmem:[#allocation25_spill] sm:$0xff] }
 0x375   :  { %v11202_v22 = vsel %vm7960_vm8, 4294967295, %v11201_v22  ;;  %vm1798_vm0 = vmand %vm1734_vm15, %vm1766_vm2  ;;  %11207 = vst [vmem:[#allocation34_spill] sm:$0xff] %v7979_v4  ;;  %vm1700_vm15 = vcmp.gt.f32.partialorder %v7799_v61, %v11127_v58  ;;  %1973 = vrot.lane.b32.xlu1 %v7979_v4, %s2668_s13 }
 0x376   :  { %vm7971_vm14 = vmor %vm1481_vm5, %vm11203_vm1  ;;  %vm1733_vm1 = vcmp.ne.f32.partialorder %v7859_v31, %v7859_v31 }
 0x377   :  { %v11205_v1 = vsel %vm7971_vm14, 4294967295, %v11204_v1  ;;  %vm1830_vm8 = vmor %vm1702_vm4, %vm1798_vm0  ;;  %vm11210_vm4 = vcmp.ne.f32.partialorder %v11127_v58, %v11127_v58  ;;  %vm11211_vm0 = vnez %v11166_v47  ;;  %vm11225_vm14 = vnez %v11190_v21  ;;  %v11229_v21 = vld [vmem:[#allocation20_spill] sm:$0xff] }
 0x378   :  { %vm7990_vm2 = vmand %vm10063_vm9, %vm7787_vm13  ;;  %v1862_v50 = vsel %vm1830_vm8, %v1438_v26, %v11115_v20  ;;  %v1670_v27 = vsel %vm11211_vm0, %v6572_v12, %v11115_v20  ;;  %vm1479_vm13 = vcmp.gt.f32.partialorder %v11167_v40, %v11110_v2  ;;  %v11213_v26 = vmov 0  ;;  %v11215_v12 = vld [vmem:[#allocation29_spill] sm:$0xff] }
 0x379   :  { %v11209_v49 = vsel %vm7990_vm2, 4294967295, %v11208_v49  ;;  %vm1764_vm5 = vmxor %vm11210_vm4, %vm10173_vm12  ;;  %v1894_v29 = vsel %vm10952_vm10, %v1862_v50, %v11115_v20  ;;  %vm11212_vm4 = vnez %v11170_v0  ;;  %vm10064_vm0 = vcmp.ne.f32.partialorder %v11215_v12, %v11215_v12  ;;  %v8032_v20 = vpop.permute.xlu2 %1441 }
 0x37a   :  { %vm1796_vm8 = vmand %vm1732_vm3, %vm1764_vm5  ;;  %v8025_v47 = vsel %vm10959_vm11, %v1670_v27, %v1894_v29  ;;  %vm1701_vm5 = vcmp.gt.f32.partialorder %v7859_v31, %v11141_v46  ;;  %v11217_v0 = vmov 0  ;;  %vm1705_vm2 = vcmp.gt.f32.partialorder %v1444_v45, %v11154_v38 }
 0x37b   :  { %vm8017_vm9 = vmor %vm1479_vm13, %vm11212_vm4  ;;  %11216 = vst [vmem:[#allocation22_spill] sm:$0xff] %v8025_v47  ;;  %1981 = vrot.lane.b32.xlu2 %v8025_v47, %s2668_s13  ;;  %vm11220_vm4 = vnez %v11180_v37  ;;  %v11240_v29 = vmov 0 }
 0x37c   :  { %v11214_v26 = vsel %vm8017_vm9, 4294967295, %v11213_v26  ;;  %vm1828_vm3 = vmor %vm1700_vm15, %vm1796_vm8  ;;  %vm11219_vm15 = vcmp.ne.f32.partialorder %v11141_v46, %v11141_v46  ;;  %v1668_v56 = vsel %vm11220_vm4, %v6568_v9, %v11127_v58  ;;  %vm10065_vm9 = vcmp.ne.f32.partialorder %v11224_v57, %v11224_v57 }
 0x37d   :  { %vm8039_vm13 = vmand %vm10064_vm0, %vm7845_vm6  ;;  %v1860_v41 = vsel %vm1828_vm3, %v7799_v61, %v11127_v58  ;;  %vm1480_vm6 = vcmp.gt.f32.partialorder %v11181_v11, %v11120_v48  ;;  %vm1737_vm0 = vcmp.ne.f32.partialorder %v1444_v45, %v1444_v45 }
 0x37e   :  { %v11218_v0 = vsel %vm8039_vm13, 4294967295, %v11217_v0  ;;  %vm1765_vm8 = vmxor %vm11219_vm15, %vm10173_vm12  ;;  %v1892_v61 = vsel %vm10952_vm10, %v1860_v41, %v11127_v58  ;;  %vm11221_vm13 = vnez %v11185_v42  ;;  %v1669_v42 = vsel %vm7919_vm7, %v11080_v14, %v11141_v46 }
 0x37f   :  { %vm1797_vm3 = vmand %vm1733_vm1, %vm1765_vm8  ;;  %v8070_v9 = vsel %vm10959_vm11, %v1668_v56, %v1892_v61 }
 0x380   :  { %vm8062_vm15 = vmor %vm1480_vm6, %vm11221_vm13  ;;  %1977 = vrot.lane.b32.xlu0 %v8070_v9, %s2668_s13  ;;  %vm1735_vm6 = vcmp.ne.f32.partialorder %v7983_v18, %v7983_v18 }
 0x381   :  { %vm1829_vm4 = vmor %vm1701_vm5, %vm1797_vm3  ;;  %vm11228_vm5 = vcmp.ne.f32.partialorder %v11154_v38, %v11154_v38  ;;  %vm10066_vm3 = vcmp.ne.f32.partialorder %v11229_v21, %v11229_v21 }
 0x382   :  { %vm8078_vm1 = vmand %vm10065_vm9, %vm11225_vm14  ;;  %v1861_v37 = vsel %vm1829_vm4, %v7859_v31, %v11141_v46  ;;  %vm1484_vm14 = vcmp.gt.f32.partialorder %v11194_v7, %v11136_v63  ;;  %vm11230_vm4 = vnez %v11198_v34  ;;  %v1446_v34 = vpop.permute.xlu1 %1445 }
 0x383   :  { %vm1769_vm13 = vmxor %vm11228_vm5, %vm10173_vm12  ;;  %v1893_v31 = vsel %vm10952_vm10, %v1861_v37, %v11141_v46  ;;  %v11235_v46 = vmov 0 }
 0x384   :  { %vm1801_vm8 = vmand %vm1737_vm0, %vm1769_vm13  ;;  %v8111_v14 = vsel %vm10959_vm11, %v1669_v42, %v1893_v31  ;;  %vm1703_vm0 = vcmp.gt.f32.partialorder %v7983_v18, %v11167_v40  ;;  %vm11234_vm13 = vnez %v11202_v22 }
 0x385   :  { %vm8105_vm5 = vmor %vm1484_vm14, %vm11230_vm4  ;;  %11233 = vst [vmem:[#allocation21_spill] sm:$0xff] %v8111_v14  ;;  %1979 = vrot.lane.b32.xlu1 %v8111_v14, %s2668_s13  ;;  %vm1482_vm4 = vcmp.gt.f32.partialorder %v11206_v39, %v11147_v28 }
 0x386   :  { %vm1833_vm7 = vmor %vm1705_vm2, %vm1801_vm8  ;;  %vm11237_vm2 = vcmp.ne.f32.partialorder %v11167_v40, %v11167_v40  ;;  %vm11238_vm8 = vnez %v11205_v1  ;;  %v1448_v1 = vpop.permute.xlu2 %1447 }
 0x387   :  { %vm8120_vm9 = vmand %vm10066_vm3, %vm11234_vm13  ;;  %v1865_v17 = vsel %vm1833_vm7, %v1444_v45, %v11154_v38  ;;  %v1673_v22 = vsel %vm11238_vm8, %v11098_v3, %v11154_v38  ;;  %vm1736_vm7 = vcmp.ne.f32.partialorder %v8032_v20, %v8032_v20  ;;  %v1450_v45 = vpop.permute.xlu0 %1449 }
 0x388   :  { %v11236_v46 = vsel %vm8120_vm9, 4294967295, %v11235_v46  ;;  %vm1767_vm14 = vmxor %vm11237_vm2, %vm10173_vm12  ;;  %v1897_v27 = vsel %vm10952_vm10, %v1865_v17, %v11154_v38  ;;  %vm11239_vm2 = vnez %v11209_v49  ;;  %vm1704_vm9 = vcmp.gt.f32.partialorder %v8032_v20, %v11181_v11 }
 0x389   :  { %vm1799_vm13 = vmand %vm1735_vm6, %vm1767_vm14  ;;  %v8150_v3 = vsel %vm10959_vm11, %v1673_v22, %v1897_v27  ;;  %vm11243_vm6 = vcmp.ne.f32.partialorder %v11181_v11, %v11181_v11 }
 0x38a   :  { %vm8144_vm3 = vmor %vm1482_vm4, %vm11239_vm2  ;;  %11242 = vst [vmem:[#allocation12_spill] sm:$0xff] %v8150_v3  ;;  %1987 = vrot.lane.b32.xlu2 %v8150_v3, %s2668_s13  ;;  %vm11244_vm4 = vnez %v11214_v26  ;;  %vm1740_vm2 = vcmp.ne.f32.partialorder %v1450_v45, %v1450_v45  ;;  %v1452_v43 = vpop.permute.xlu1 %1451 }
 0x38b   :  { %v11241_v29 = vsel %vm8144_vm3, 4294967295, %v11240_v29  ;;  %vm1831_vm8 = vmor %vm1703_vm0, %vm1799_vm13  ;;  %v1671_v49 = vsel %vm11244_vm4, %v11110_v2, %v11167_v40  ;;  %vm1483_vm0 = vcmp.gt.f32.partialorder %v11215_v12, %v11160_v8  ;;  %vm1708_vm3 = vcmp.gt.f32.partialorder %v1450_v45, %v11194_v7 }
 0x38c   :  { %v1863_v38 = vsel %vm1831_vm8, %v7983_v18, %v11167_v40  ;;  %vm1768_vm14 = vmxor %vm11243_vm6, %vm10173_vm12  ;;  %vm11245_vm8 = vnez %v11218_v0 }
 0x38d   :  { %v1895_v18 = vsel %vm10952_vm10, %v1863_v38, %v11167_v40  ;;  %vm1800_vm13 = vmand %vm1736_vm7, %vm1768_vm14  ;;  %vm11248_vm7 = vcmp.ne.f32.partialorder %v11194_v7, %v11194_v7  ;;  %v1672_v40 = vsel %vm8062_vm15, %v11120_v48, %v11181_v11 }
 0x38e   :  { %vm8173_vm6 = vmor %vm1483_vm0, %vm11245_vm8  ;;  %v8179_v56 = vsel %vm10959_vm11, %v1671_v49, %v1895_v18  ;;  %v1454_v31 = vpop.permute.xlu2 %1453 }
 0x38f   :  { %vm1832_vm4 = vmor %vm1704_vm9, %vm1800_vm13  ;;  %1983 = vrot.lane.b32.xlu0 %v8179_v56, %s2668_s13  ;;  %vm1485_vm9 = vcmp.gt.f32.partialorder %v11224_v57, %v11176_v25  ;;  %vm1738_vm13 = vcmp.ne.f32.partialorder %v1446_v34, %v1446_v34 }
 0x390   :  { %v1864_v2 = vsel %vm1832_vm4, %v8032_v20, %v11181_v11  ;;  %vm1772_vm14 = vmxor %vm11248_vm7, %vm10173_vm12  ;;  %vm1706_vm4 = vcmp.gt.f32.partialorder %v1446_v34, %v11206_v39  ;;  %vm1486_vm7 = vcmp.gt.f32.partialorder %v11229_v21, %v11187_v5 }
 0x391   :  { %v1896_v26 = vsel %vm10952_vm10, %v1864_v2, %v11181_v11  ;;  %vm1804_vm0 = vmand %vm1740_vm2, %vm1772_vm14  ;;  %vm11252_vm2 = vcmp.ne.f32.partialorder %v11206_v39, %v11206_v39  ;;  %v1676_v11 = vsel %vm8105_vm5, %v11136_v63, %v11194_v7  ;;  %vm1739_vm14 = vcmp.ne.f32.partialorder %v1448_v1, %v1448_v1 }
 0x392   :  { %vm8201_vm8 = vmor %vm1485_vm9, %vm8078_vm1  ;;  %v8207_v0 = vsel %vm10959_vm11, %v1672_v40, %v1896_v26  ;;  %vm11253_vm9 = vnez %v11236_v46  ;;  %vm1707_vm5 = vcmp.gt.f32.partialorder %v1448_v1, %v11215_v12 }
 0x393   :  { %11251 = vst [vmem:[#allocation28_spill] sm:$0xff] %v8207_v0  ;;  %vm1836_vm15 = vmor %vm1708_vm3, %vm1804_vm0  ;;  %1985 = vrot.lane.b32.xlu1 %v8207_v0, %s2668_s13 }
 0x394   :  { %v1868_v48 = vsel %vm1836_vm15, %v1450_v45, %v11194_v7  ;;  %vm1770_vm1 = vmxor %vm11252_vm2, %vm10173_vm12 }
 0x395   :  { %v1900_v61 = vsel %vm10952_vm10, %v1868_v48, %v11194_v7  ;;  %vm1802_vm3 = vmand %vm1738_vm13, %vm1770_vm1  ;;  %vm11257_vm13 = vcmp.ne.f32.partialorder %v11215_v12, %v11215_v12  ;;  %vm11258_vm1 = vnez %v11241_v29 }
 0x396   :  { %vm8228_vm0 = vmor %vm1486_vm7, %vm11253_vm9  ;;  %v8234_v37 = vsel %vm10959_vm11, %v1676_v11, %v1900_v61  ;;  %v1674_v7 = vsel %vm11258_vm1, %v11147_v28, %v11206_v39  ;;  %vm1741_vm7 = vcmp.ne.f32.partialorder %v1452_v43, %v1452_v43  ;;  %vm1709_vm9 = vcmp.gt.f32.partialorder %v1452_v43, %v11224_v57  ;;  %v8296_v45 = vpop.permute.xlu2 %1939 }
 0x397   :  { %11256 = vst [vmem:[#allocation13_spill] sm:$0xff] %v8234_v37  ;;  %vm1834_vm15 = vmor %vm1706_vm4, %vm1802_vm3  ;;  %1993 = vrot.lane.b32.xlu2 %v8234_v37, %s2668_s13  ;;  %v1675_v28 = vsel %vm8173_vm6, %v11160_v8, %v11215_v12  ;;  %vm1710_vm1 = vcmp.gt.f32.partialorder %v1454_v31, %v11229_v21  ;;  %vm11261_vm6 = vcmp.ne.f32.partialorder %v11229_v21, %v11229_v21 }
 0x398   :  { %v1866_v63 = vsel %vm1834_vm15, %v1446_v34, %v11206_v39  ;;  %vm1771_vm2 = vmxor %vm11257_vm13, %vm10173_vm12  ;;  %vm11259_vm15 = vcmp.ne.f32.partialorder %v11224_v57, %v11224_v57  ;;  %v1677_v8 = vsel %vm8201_vm8, %v11176_v25, %v11224_v57  ;;  %v1678_v25 = vsel %vm8228_vm0, %v11187_v5, %v11229_v21  ;;  %v8335_v5 = vpop.permute.xlu0 %1935 }
 0x399   :  { %v1898_v42 = vsel %vm10952_vm10, %v1866_v63, %v11206_v39  ;;  %vm1803_vm4 = vmand %vm1739_vm14, %vm1771_vm2  ;;  %vm2095_vm8 = vcmp.ne.f32.partialorder %v6861_v52, %v6861_v52 }
 0x39a   :  { %v8253_v50 = vsel %vm10959_vm11, %v1674_v7, %v1898_v42  ;;  %vm1835_vm3 = vmor %vm1707_vm5, %vm1803_vm4  ;;  %vm1742_vm5 = vcmp.ne.f32.partialorder %v1454_v31, %v1454_v31 }
 0x39b   :  { %v1867_v46 = vsel %vm1835_vm3, %v1448_v1, %v11215_v12  ;;  %1989 = vrot.lane.b32.xlu0 %v8253_v50, %s2668_s13  ;;  %vm1773_vm13 = vmxor %vm11259_vm15, %vm10173_vm12  ;;  %vm2063_vm15 = vcmp.gt.f32.partialorder %v6861_v52, %v8335_v5 }
 0x39c   :  { %v1899_v39 = vsel %vm10952_vm10, %v1867_v46, %v11215_v12  ;;  %vm1805_vm14 = vmand %vm1741_vm7, %vm1773_vm13 }
 0x39d   :  { %v8272_v17 = vsel %vm10959_vm11, %v1675_v28, %v1899_v39  ;;  %vm1837_vm2 = vmor %vm1709_vm9, %vm1805_vm14 }
 0x39e   :  { %11260 = vst [vmem:[#allocation26_spill] sm:$0xff] %v8272_v17  ;;  %1991 = vrot.lane.b32.xlu1 %v8272_v17, %s2668_s13  ;;  %v1869_v34 = vsel %vm1837_vm2, %v1452_v43, %v11224_v57  ;;  %vm1774_vm4 = vmxor %vm11261_vm6, %vm10173_vm12  ;;  %v8315_v38 = vpop.permute.xlu2 %1945 }
 0x39f   :  { %v1901_v12 = vsel %vm10952_vm10, %v1869_v34, %v11224_v57  ;;  %vm1806_vm7 = vmand %vm1742_vm5, %vm1774_vm4  ;;  %1999 = vrot.lane.b32.xlu2 %v6861_v52, %s2669_s0 }
 0x3a0   :  { %v8291_v22 = vsel %vm10959_vm11, %v1677_v8, %v1901_v12  ;;  %vm1838_vm3 = vmor %vm1710_vm1, %vm1806_vm7  ;;  %v8347_v49 = vpop.permute.xlu0 %1941  ;;  %vm2098_vm7 = vcmp.ne.f32.partialorder %v7036_v30, %v7036_v30 }
 0x3a1   :  { %11262 = vst [vmem:[#allocation11_spill] sm:$0xff] %v8291_v22  ;;  %v1870_v27 = vsel %vm1838_vm3, %v1454_v31, %v11229_v21  ;;  %vm2130_vm9 = vcmp.ne.f32.partialorder %v8347_v49, %v8347_v49  ;;  %vm2351_vm1 = vmxor %vm2095_vm8, %vm10173_vm12 }
 0x3a2   :  { %v1902_v57 = vsel %vm10952_vm10, %v1870_v27, %v11229_v21  ;;  %v8339_v21 = vpop.permute.xlu1 %1937  ;;  %vm2127_vm10 = vcmp.ne.f32.partialorder %v8335_v5, %v8335_v5  ;;  %vm2162_vm5 = vmxor %vm2130_vm9, %vm10173_vm12 }
 0x3a3   :  { %v8307_v29 = vsel %vm10959_vm11, %v1678_v25, %v1902_v57  ;;  %1995 = vrot.lane.b32.xlu0 %v8291_v22, %s2668_s13  ;;  %vm2159_vm11 = vmxor %vm2127_vm10, %vm10173_vm12  ;;  %v11267_v25 = vld [vmem:[#allocation33_spill] sm:$0xff] }
 0x3a4   :  { %11263 = vst [vmem:[#allocation10_spill] sm:$0xff] %v8307_v29  ;;  %vm2191_vm0 = vmand %vm2095_vm8, %vm2159_vm11  ;;  %vm11268_vm10 = vnez %v11267_v25 }
 0x3a5   :  { %vm8428_vm13 = vmor %vm2063_vm15, %vm2191_vm0  ;;  %vm2066_vm0 = vcmp.gt.f32.partialorder %v7036_v30, %v8347_v49 }
 0x3a6   :  { %1997 = vrot.lane.b32.xlu1 %v8307_v29, %s2668_s13  ;;  %v8325_v13 = vpop.permute.xlu2 %1951  ;;  %v2255_v27 = vsel %vm8428_vm13, %v8335_v5, %v6861_v52  ;;  %vm2194_vm3 = vmand %vm2098_vm7, %vm2162_vm5 }
 0x3a7   :  { %2005 = vrot.lane.b32.xlu2 %v7036_v30, %s2669_s0  ;;  %vm8460_vm9 = vmor %vm2066_vm0, %vm2194_vm3 }
 0x3a8   :  { %v8361_v2 = vpop.permute.xlu0 %1947  ;;  %vm2354_vm5 = vmxor %vm2098_vm7, %vm10173_vm12 }
 0x3a9   :  { %vm2133_vm11 = vcmp.ne.f32.partialorder %v8361_v2, %v8361_v2  ;;  %vm2069_vm0 = vcmp.gt.f32.partialorder %v7216_v23, %v8361_v2 }
 0x3aa   :  { %v8353_v18 = vpop.permute.xlu1 %1943  ;;  %vm2165_vm13 = vmxor %vm2133_vm11, %vm10173_vm12 }
 0x3ab   :  { %2001 = vrot.lane.b32.xlu0 %v6918_v32, %s2669_s0 }
 0x3ae   :  { %2003 = vrot.lane.b32.xlu1 %v6812_v16, %s2669_s0  ;;  %v8333_v54 = vpop.permute.xlu2 %1957 }
 0x3af   :  { %2011 = vrot.lane.b32.xlu2 %v7216_v23, %s2669_s0 }
 0x3b0   :  { %v8373_v20 = vpop.permute.xlu0 %1953 }
 0x3b1   :  { %vm2136_vm3 = vcmp.ne.f32.partialorder %v8373_v20, %v8373_v20 }
 0x3b2   :  { %v8365_v40 = vpop.permute.xlu1 %1949 }
 0x3b3   :  { %2007 = vrot.lane.b32.xlu0 %v7098_v15, %s2669_s0 }
 0x3b6   :  { %2009 = vrot.lane.b32.xlu1 %v6985_v35, %s2669_s0  ;;  %v8345_v1 = vpop.permute.xlu2 %1963 }
 0x3b7   :  { %2017 = vrot.lane.b32.xlu2 %v7394_v62, %s2669_s0 }
 0x3ba   :  { %v8377_v48 = vpop.permute.xlu1 %1955 }
 0x3bb   :  { %2013 = vrot.lane.b32.xlu0 %v7278_v36, %s2669_s0 }
 0x3bd   :  { %v8387_v61 = vpop.permute.xlu0 %1959 }
 0x3be   :  { %2015 = vrot.lane.b32.xlu1 %v7165_v55, %s2669_s0  ;;  %v8359_v41 = vpop.permute.xlu2 %1969 }
 0x3bf   :  { %2023 = vrot.lane.b32.xlu2 %v7571_v33, %s2669_s0 }
 0x3c3   :  { %2019 = vrot.lane.b32.xlu0 %v7453_v59, %s2669_s0  ;;  %v8391_v43 = vpop.permute.xlu1 %1961 }
 0x3c6   :  { %2021 = vrot.lane.b32.xlu1 %v7345_v60, %s2669_s0  ;;  %v8371_v26 = vpop.permute.xlu2 %1975 }
 0x3c7   :  { %2029 = vrot.lane.b32.xlu2 %v7751_v10, %s2669_s0 }
 0x3cb   :  { %2025 = vrot.lane.b32.xlu0 %v7633_v51, %s2669_s0 }
 0x3ce   :  { %2027 = vrot.lane.b32.xlu1 %v7513_v19, %s2669_s0 }
 0x3cf   :  { %2035 = vrot.lane.b32.xlu2 %v7927_v6, %s2669_s0  ;;  %v8399_v63 = vpop.permute.xlu0 %1965 }
 0x3d3   :  { %2031 = vrot.lane.b32.xlu0 %v7811_v24, %s2669_s0 }
 0x3d5   :  { %v8385_v11 = vpop.permute.xlu2 %1981  ;;  %v8403_v7 = vpop.permute.xlu1 %1967 }
 0x3d6   :  { %2033 = vrot.lane.b32.xlu1 %v7693_v44, %s2669_s0 }
 0x3d7   :  { %2041 = vrot.lane.b32.xlu2 %v8070_v9, %s2669_s0 }
 0x3db   :  { %2037 = vrot.lane.b32.xlu0 %v7979_v4, %s2669_s0  ;;  %v11307_v4 = vmov 0 }
 0x3de   :  { %2039 = vrot.lane.b32.xlu1 %v7871_v53, %s2669_s0 }
 0x3df   :  { %2047 = vrot.lane.b32.xlu2 %v8179_v56, %s2669_s0 }
 0x3e1   :  { %v8413_v31 = vpop.permute.xlu0 %1971 }
 0x3e3   :  { %2043 = vrot.lane.b32.xlu0 %v8111_v14, %s2669_s0  ;;  %v11300_v14 = vmov 0 }
 0x3e4   :  { %v8397_v58 = vpop.permute.xlu2 %1987 }
 0x3e6   :  { %2045 = vrot.lane.b32.xlu1 %v8025_v47, %s2669_s0  ;;  %v11304_v47 = vmov 0 }
 0x3e7   :  { %2053 = vrot.lane.b32.xlu2 %v8253_v50, %s2669_s0  ;;  %v8418_v46 = vpop.permute.xlu1 %1973 }
 0x3eb   :  { %2049 = vrot.lane.b32.xlu0 %v8207_v0, %s2669_s0 }
 0x3ee   :  { %2051 = vrot.lane.b32.xlu1 %v8150_v3, %s2669_s0 }
 0x3ef   :  { %2059 = vrot.lane.b32.xlu2 %v8291_v22, %s2669_s0 }
 0x3f1   :  { %v8411_v42 = vpop.permute.xlu2 %1993 }
 0x3f2   :  { %11264 = vst [vmem:[#allocation8_spill] sm:$0xff] %v8411_v42  ;;  %v8434_v34 = vpop.permute.xlu0 %1977 }
 0x3f3   :  { %2055 = vrot.lane.b32.xlu0 %v8272_v17, %s2669_s0 }
 0x3f6   :  { %2057 = vrot.lane.b32.xlu1 %v8234_v37, %s2669_s0  ;;  %v11296_v37 = vmov 0 }
 0x3f7   :  { %v8439_v8 = vpop.permute.xlu1 %1979 }
 0x3f9   :  { %v2000_v28 = vpop.permute.xlu2 %1999 }
 0x3fa   :  { %vm2319_vm14 = vcmp.ne.f32.partialorder %v2000_v28, %v2000_v28  ;;  %vm2287_vm2 = vcmp.gt.f32.partialorder %v2000_v28, %v6861_v52 }
 0x3fb   :  { %2061 = vrot.lane.b32.xlu0 %v8307_v29, %s2669_s0  ;;  %vm2383_vm6 = vmand %vm2319_vm14, %vm2351_vm1  ;;  %v11269_v29 = vld [vmem:[#allocation32_spill] sm:$0xff] }
 0x3fc   :  { %vm2415_vm4 = vmor %vm2287_vm2, %vm2383_vm6  ;;  %vm11270_vm8 = vnez %v11269_v29  ;;  %vm2129_vm6 = vcmp.ne.f32.partialorder %v8296_v45, %v8296_v45 }
 0x3fd   :  { %v2447_v12 = vsel %vm2415_vm4, %v2000_v28, %v6861_v52  ;;  %vm2101_vm4 = vcmp.ne.f32.partialorder %v7216_v23, %v7216_v23  ;;  %vm2161_vm11 = vmxor %vm2129_vm6, %vm10173_vm12 }
 0x3fe   :  { %v2479_v57 = vsel %vm11268_vm10, %v2447_v12, %v6861_v52  ;;  %v2258_v12 = vsel %vm8460_vm9, %v8347_v49, %v7036_v30  ;;  %vm2197_vm7 = vmand %vm2101_vm4, %vm2165_vm13  ;;  %vm10071_vm13 = vcmp.ne.f32.partialorder %v6812_v16, %v6812_v16 }
 0x3ff   :  { %v2511_v17 = vsel %vm11270_vm8, %v2255_v27, %v2479_v57  ;;  %vm8496_vm9 = vmor %vm2069_vm0, %vm2197_vm7  ;;  %vm2132_vm7 = vcmp.ne.f32.partialorder %v8315_v38, %v8315_v38 }
 0x400   :  { %2543 = vst [vmem:[#allocation5] sm:$0xff] %v2511_v17  ;;  %vm2357_vm6 = vmxor %vm2101_vm4, %vm10173_vm12  ;;  %vm2131_vm4 = vcmp.ne.f32.partialorder %v8353_v18, %v8353_v18  ;;  %v2261_v0 = vsel %vm8496_vm9, %v8361_v2, %v7216_v23  ;;  %v11283_v2 = vmov 0 }
 0x401   :  { %v2006_v28 = vpop.permute.xlu2 %2005  ;;  %v8464_v39 = vpop.permute.xlu0 %1983 }
 0x402   :  { %vm2322_vm15 = vcmp.ne.f32.partialorder %v2006_v28, %v2006_v28  ;;  %vm2290_vm14 = vcmp.gt.f32.partialorder %v2006_v28, %v7036_v30 }
 0x403   :  { %vm2386_vm2 = vmand %vm2322_vm15, %vm2354_vm5 }
 0x404   :  { %vm2418_vm1 = vmor %vm2290_vm14, %vm2386_vm2 }
 0x405   :  { %v8472_v52 = vpop.permute.xlu1 %1985  ;;  %v2450_v17 = vsel %vm2418_vm1, %v2006_v28, %v7036_v30  ;;  %vm8505_vm14 = vmxor %vm2136_vm3, %vm10173_vm12  ;;  %vm2128_vm1 = vcmp.ne.f32.partialorder %v8339_v21, %v8339_v21 }
 0x406   :  { %11273 = vst [vmem:[#allocation23_spill] sm:$0xff] %v8472_v52  ;;  %v2482_v27 = vsel %vm11268_vm10, %v2450_v17, %v7036_v30  ;;  %vm8513_vm2 = vmand %vm10071_vm13, %vm2161_vm11  ;;  %v11278_v17 = vmov 0  ;;  %vm2135_vm11 = vcmp.ne.f32.partialorder %v8325_v13, %v8325_v13 }
 0x407   :  { %v2514_v28 = vsel %vm11270_vm8, %v2258_v12, %v2482_v27  ;;  %v11279_v17 = vsel %vm8513_vm2, 4294967295, %v11278_v17  ;;  %vm2160_vm13 = vmxor %vm2128_vm1, %vm10173_vm12 }
 0x408   :  { %2546 = vst [vmem:[#allocation5 + $0x18] sm:$0xff] %v2514_v28  ;;  %vm8532_vm2 = vmxor %vm2132_vm7, %vm10173_vm12  ;;  %vm2139_vm7 = vcmp.ne.f32.partialorder %v8387_v61, %v8387_v61 }
 0x409   :  { %v2012_v57 = vpop.permute.xlu2 %2011  ;;  %vm8557_vm9 = vmxor %vm2135_vm11, %vm10173_vm12 }
 0x40a   :  { %vm2325_vm15 = vcmp.ne.f32.partialorder %v2012_v57, %v2012_v57  ;;  %vm2293_vm5 = vcmp.gt.f32.partialorder %v2012_v57, %v7216_v23  ;;  %v11284_v2 = vsel %vm8557_vm9, 4294967295, %v11283_v2 }
 0x40b   :  { %vm2389_vm3 = vmand %vm2325_vm15, %vm2357_vm6  ;;  %vm10077_vm15 = vcmp.ne.f32.partialorder %v7394_v62, %v7394_v62 }
 0x40c   :  { %vm2421_vm0 = vmor %vm2293_vm5, %vm2389_vm3  ;;  %vm10076_vm5 = vcmp.ne.f32.partialorder %v6918_v32, %v6918_v32  ;;  %vm2072_vm3 = vcmp.gt.f32.partialorder %v7394_v62, %v8373_v20 }
 0x40d   :  { %v8500_v5 = vpop.permute.xlu0 %1989  ;;  %v2453_v27 = vsel %vm2421_vm0, %v2012_v57, %v7216_v23  ;;  %vm2200_vm1 = vmand %vm10077_vm15, %vm8505_vm14  ;;  %vm2142_vm15 = vcmp.ne.f32.partialorder %v8399_v63, %v8399_v63 }
 0x40e   :  { %v2485_v57 = vsel %vm11268_vm10, %v2453_v27, %v7216_v23  ;;  %vm8564_vm6 = vmand %vm10076_vm5, %vm2160_vm13  ;;  %v11285_v23 = vmov 0  ;;  %vm10078_vm13 = vcmp.ne.f32.partialorder %v6985_v35, %v6985_v35  ;;  %v11289_v27 = vmov 0 }
 0x40f   :  { %v2517_v49 = vsel %vm11270_vm8, %v2261_v0, %v2485_v57  ;;  %v11286_v23 = vsel %vm8564_vm6, 4294967295, %v11285_v23  ;;  %vm8573_vm14 = vmxor %vm2131_vm4, %vm10173_vm12  ;;  %v11291_v57 = vmov 0  ;;  %vm2138_vm10 = vcmp.ne.f32.partialorder %v8333_v54, %v8333_v54 }
 0x410   :  { %v8525_v12 = vpop.permute.xlu1 %1991  ;;  %2549 = vst [vmem:[#allocation5 + $0x30] sm:$0xff] %v2517_v49  ;;  %vm8581_vm0 = vmor %vm2072_vm3, %vm2200_vm1  ;;  %vm2065_vm1 = vcmp.gt.f32.partialorder %v6812_v16, %v8296_v45  ;;  %vm2134_vm3 = vcmp.ne.f32.partialorder %v8365_v40, %v8365_v40 }
 0x411   :  { %11280 = vst [vmem:[#allocation15_spill] sm:$0xff] %v8525_v12  ;;  %v2018_v28 = vpop.permute.xlu2 %2017  ;;  %v11290_v27 = vsel %vm8581_vm0, 4294967295, %v11289_v27  ;;  %vm8590_vm4 = vmand %vm10078_vm13, %vm8532_vm2  ;;  %vm11294_vm2 = vcmp.ne.f32.partialorder %v7394_v62, %v7394_v62  ;;  %v11302_v12 = vmov 0 }
 0x412   :  { %vm2328_vm11 = vcmp.ne.f32.partialorder %v2018_v28, %v2018_v28  ;;  %v11292_v57 = vsel %vm8590_vm4, 4294967295, %v11291_v57  ;;  %vm2171_vm5 = vmxor %vm2139_vm7, %vm10173_vm12  ;;  %vm11295_vm4 = vnez %v11279_v17  ;;  %vm10090_vm7 = vcmp.ne.f32.partialorder %v7571_v33, %v7571_v33 }
 0x413   :  { %vm2360_vm13 = vmxor %vm11294_vm2, %vm10173_vm12  ;;  %vm2296_vm6 = vcmp.gt.f32.partialorder %v2018_v28, %v7394_v62  ;;  %v11298_v17 = vmov 0 }
 0x414   :  { %vm8609_vm8 = vmor %vm2065_vm1, %vm11295_vm4 }
 0x415   :  { %v8570_v30 = vpop.permute.xlu0 %1995  ;;  %v11297_v37 = vsel %vm8609_vm8, 4294967295, %v11296_v37  ;;  %vm2392_vm9 = vmand %vm2328_vm11, %vm2360_vm13  ;;  %vm10093_vm8 = vcmp.ne.f32.partialorder %v7098_v15, %v7098_v15  ;;  %vm2075_vm13 = vcmp.gt.f32.partialorder %v7571_v33, %v8387_v61  ;;  %vm2145_vm11 = vcmp.ne.f32.partialorder %v8413_v31, %v8413_v31 }
 0x416   :  { %vm2203_vm2 = vmand %vm10090_vm7, %vm2171_vm5  ;;  %vm10095_vm5 = vcmp.ne.f32.partialorder %v7165_v55, %v7165_v55  ;;  %vm11306_vm7 = vnez %v11290_v27  ;;  %v11314_v27 = vmov 0 }
 0x417   :  { %vm8624_vm4 = vmxor %vm2134_vm3, %vm10173_vm12  ;;  %v2264_v0 = vsel %vm11306_vm7, %v8373_v20, %v7394_v62  ;;  %v11311_v20 = vmov 0 }
 0x418   :  { %v8595_v49 = vpop.permute.xlu1 %1997  ;;  %v11299_v17 = vsel %vm8624_vm4, 4294967295, %v11298_v17  ;;  %vm2174_vm1 = vmxor %vm2142_vm15, %vm10173_vm12 }
 0x419   :  { %11293 = vst [vmem:[#allocation31_spill] sm:$0xff] %v8595_v49  ;;  %v8616_v3 = vpop.permute.xlu2 %2023  ;;  %vm2424_vm0 = vmor %vm2296_vm6, %vm2392_vm9  ;;  %vm10094_vm6 = vcmp.ne.f32.partialorder %v7751_v10, %v7751_v10 }
 0x41a   :  { %vm8640_vm3 = vmxor %vm2138_vm10, %vm10173_vm12  ;;  %v2456_v42 = vsel %vm2424_vm0, %v2018_v28, %v7394_v62  ;;  %vm2064_vm10 = vcmp.gt.f32.partialorder %v6918_v32, %v8339_v21  ;;  %vm11309_vm0 = vnez %v11267_v25 }
 0x41b   :  { %v11301_v14 = vsel %vm8640_vm3, 4294967295, %v11300_v14  ;;  %vm8649_vm15 = vmand %vm10093_vm8, %vm8573_vm14  ;;  %v2488_v28 = vsel %vm11309_vm0, %v2456_v42, %v7394_v62  ;;  %v11329_v62 = vmov 0 }
 0x41c   :  { %v11303_v12 = vsel %vm8649_vm15, 4294967295, %v11302_v12  ;;  %vm8653_vm9 = vmor %vm2075_vm13, %vm2203_vm2  ;;  %vm2148_vm2 = vcmp.ne.f32.partialorder %v8434_v34, %v8434_v34  ;;  %vm11310_vm13 = vnez %v11284_v2  ;;  %vm11318_vm15 = vnez %v11269_v29 }
 0x41d   :  { %v8635_v49 = vpop.permute.xlu0 %2001  ;;  %v11305_v47 = vsel %vm8653_vm9, 4294967295, %v11304_v47  ;;  %vm8669_vm14 = vmand %vm10094_vm6, %vm2174_vm1  ;;  %vm11313_vm1 = vnez %v11286_v23  ;;  %v2520_v42 = vsel %vm11318_vm15, %v2264_v0, %v2488_v28  ;;  %vm2331_vm9 = vcmp.ne.f32.partialorder %v8616_v3, %v8616_v3 }
 0x41e   :  { %v11308_v4 = vsel %vm8669_vm14, 4294967295, %v11307_v4  ;;  %vm8683_vm7 = vmand %vm10095_vm5, %vm11310_vm13  ;;  %2552 = vst [vmem:[#allocation5 + $0x48] sm:$0xff] %v2520_v42  ;;  %vm10099_vm15 = vcmp.ne.f32.partialorder %v7927_v6, %v7927_v6 }
 0x41f   :  { %v11312_v20 = vsel %vm8683_vm7, 4294967295, %v11311_v20  ;;  %vm8689_vm8 = vmor %vm2064_vm10, %vm11313_vm1  ;;  %vm11319_vm10 = vcmp.ne.f32.partialorder %v6812_v16, %v6812_v16 }
 0x420   :  { %v11315_v27 = vsel %vm8689_vm8, 4294967295, %v11314_v27  ;;  %vm8697_vm6 = vmxor %vm2145_vm11, %vm10173_vm12  ;;  %v2004_v2 = vpop.permute.xlu1 %2003  ;;  %vm2068_vm8 = vcmp.gt.f32.partialorder %v6985_v35, %v8315_v38  ;;  %vm2137_vm11 = vcmp.ne.f32.partialorder %v8377_v48, %v8377_v48 }
 0x421   :  { %vm2353_vm13 = vmxor %vm11319_vm10, %vm10173_vm12  ;;  %vm2289_vm1 = vcmp.gt.f32.partialorder %v2004_v2, %v6812_v16  ;;  %vm2321_vm5 = vcmp.ne.f32.partialorder %v2004_v2, %v2004_v2  ;;  %vm11322_vm10 = vnez %v11292_v57  ;;  %v8729_v28 = vpop.permute.xlu2 %2029  ;;  %v11325_v57 = vmov 0 }
 0x422   :  { %vm8713_vm7 = vmxor %vm2148_vm2, %vm10173_vm12  ;;  %vm2299_vm2 = vcmp.gt.f32.partialorder %v8616_v3, %v7571_v33 }
 0x423   :  { %vm2385_vm3 = vmand %vm2321_vm5, %vm2353_vm13  ;;  %vm11334_vm5 = vnez %v11269_v29 }
 0x424   :  { %vm8721_vm4 = vmor %vm2068_vm8, %vm11322_vm10 }
 0x425   :  { %vm2417_vm14 = vmor %vm2289_vm1, %vm2385_vm3  ;;  %vm11327_vm3 = vcmp.ne.f32.partialorder %v7571_v33, %v7571_v33  ;;  %vm11328_vm1 = vnez %v11297_v37  ;;  %v8763_v22 = vpop.permute.xlu0 %2007  ;;  %v2260_v23 = vsel %vm8721_vm4, %v8315_v38, %v6985_v35  ;;  %v11369_v38 = vmov 0 }
 0x426   :  { %vm8738_vm8 = vmand %vm10099_vm15, %vm8697_vm6  ;;  %v2449_v42 = vsel %vm2417_vm14, %v2004_v2, %v6812_v16  ;;  %v2257_v52 = vsel %vm11328_vm1, %v8296_v45, %v6812_v16  ;;  %vm2078_vm6 = vcmp.gt.f32.partialorder %v7751_v10, %v8399_v63  ;;  %v11332_v45 = vmov 0 }
 0x427   :  { %v11326_v57 = vsel %vm8738_vm8, 4294967295, %v11325_v57  ;;  %vm2363_vm13 = vmxor %vm11327_vm3, %vm10173_vm12  ;;  %v2481_v2 = vsel %vm11309_vm0, %v2449_v42, %v6812_v16  ;;  %v11336_v16 = vmov 0  ;;  %vm11338_vm1 = vnez %v11299_v17 }
 0x428   :  { %vm8752_vm10 = vmxor %vm2137_vm11, %vm10173_vm12  ;;  %vm11331_vm11 = vnez %v11308_v4  ;;  %v2513_v37 = vsel %vm11334_vm5, %v2257_v52, %v2481_v2  ;;  %v11340_v4 = vmov 0  ;;  %vm11343_vm3 = vnez %v11305_v47  ;;  %v2010_v42 = vpop.permute.xlu1 %2009 }
 0x429   :  { %v11330_v62 = vsel %vm8752_vm10, 4294967295, %v11329_v62  ;;  %vm2395_vm14 = vmand %vm2331_vm9, %vm2363_vm13  ;;  %2545 = vst [vmem:[#allocation5 + $0x10] sm:$0xff] %v2513_v37  ;;  %vm2067_vm13 = vcmp.gt.f32.partialorder %v7098_v15, %v8353_v18  ;;  %v2267_v17 = vsel %vm11343_vm3, %v8387_v61, %v7571_v33  ;;  %vm11349_vm3 = vnez %v11303_v12  ;;  %v8897_v37 = vpop.permute.xlu2 %2035 }
 0x42a   :  { %vm8769_vm15 = vmor %vm2078_vm6, %vm11331_vm11  ;;  %vm11335_vm6 = vcmp.ne.f32.partialorder %v8345_v1, %v8345_v1  ;;  %v11350_v61 = vmov 0  ;;  %vm2324_vm8 = vcmp.ne.f32.partialorder %v2010_v42, %v2010_v42  ;;  %vm2070_vm4 = vcmp.gt.f32.partialorder %v7278_v36, %v8365_v40 }
 0x42b   :  { %v11333_v45 = vsel %vm8769_vm15, 4294967295, %v11332_v45  ;;  %vm2427_vm9 = vmor %vm2299_vm2, %vm2395_vm14  ;;  %vm11339_vm15 = vcmp.ne.f32.partialorder %v7278_v36, %v7278_v36  ;;  %vm11342_vm14 = vcmp.ne.f32.partialorder %v6918_v32, %v6918_v32 }
 0x42c   :  { %vm8786_vm11 = vmxor %vm11335_vm6, %vm10173_vm12  ;;  %v2459_v52 = vsel %vm2427_vm9, %v8616_v3, %v7571_v33 }
 0x42d   :  { %v11337_v16 = vsel %vm8786_vm11, 4294967295, %v11336_v16  ;;  %vm8795_vm2 = vmand %vm11339_vm15, %vm11338_vm1  ;;  %v2491_v3 = vsel %vm11309_vm0, %v2459_v52, %v7571_v33  ;;  %vm11344_vm1 = vcmp.ne.f32.partialorder %v8635_v49, %v8635_v49  ;;  %v8899_v52 = vpop.permute.xlu0 %2013 }
 0x42e   :  { %v11341_v4 = vsel %vm8795_vm2, 4294967295, %v11340_v4  ;;  %vm2352_vm6 = vmxor %vm11342_vm14, %vm10173_vm12  ;;  %vm11345_vm14 = vnez %v11301_v14  ;;  %vm11346_vm2 = vcmp.ne.f32.partialorder %v7345_v60, %v7345_v60  ;;  %v2523_v33 = vsel %vm11334_vm5, %v2267_v17, %v2491_v3 }
 0x42f   :  { %vm2384_vm9 = vmand %vm11344_vm1, %vm2352_vm6  ;;  %vm11352_vm6 = vcmp.gt.f32.partialorder %v8635_v49, %v6918_v32  ;;  %2555 = vst [vmem:[#allocation5 + $0x60] sm:$0xff] %v2523_v33  ;;  %v11366_v17 = vmov 0 }
 0x430   :  { %vm8824_vm11 = vmand %vm11346_vm2, %vm11345_vm14  ;;  %vm2071_vm2 = vcmp.gt.f32.partialorder %v7165_v55, %v8325_v13  ;;  %v2016_v33 = vpop.permute.xlu1 %2015 }
 0x431   :  { %vm8830_vm15 = vmor %vm2067_vm13, %vm11349_vm3  ;;  %vm11353_vm13 = vcmp.ne.f32.partialorder %v6985_v35, %v6985_v35  ;;  %vm11354_vm3 = vnez %v11312_v20 }
 0x432   :  { %v11351_v61 = vsel %vm8830_vm15, 4294967295, %v11350_v61  ;;  %vm2416_vm1 = vmor %vm11352_vm6, %vm2384_vm9  ;;  %vm11357_vm9 = vnez %v11315_v27  ;;  %vm2302_vm6 = vcmp.gt.f32.partialorder %v8729_v28, %v7751_v10 }
 0x433   :  { %v2448_v14 = vsel %vm2416_vm1, %v8635_v49, %v6918_v32  ;;  %vm2356_vm14 = vmxor %vm11353_vm13, %vm10173_vm12  ;;  %v2256_v2 = vsel %vm11357_vm9, %v8339_v21, %v6918_v32  ;;  %vm11358_vm1 = vcmp.ne.f32.partialorder %v8464_v39, %v8464_v39  ;;  %v11359_v49 = vmov 0 }
 0x434   :  { %vm8850_vm15 = vmor %vm2071_vm2, %vm11354_vm3  ;;  %v2480_v20 = vsel %vm11309_vm0, %v2448_v14, %v6918_v32  ;;  %vm2334_vm13 = vcmp.ne.f32.partialorder %v8729_v28, %v8729_v28  ;;  %vm10100_vm3 = vcmp.ne.f32.partialorder %v8070_v9, %v8070_v9  ;;  %vm11361_vm9 = vcmp.gt.f32.partialorder %v2010_v42, %v6985_v35 }
 0x435   :  { %vm8864_vm10 = vmxor %vm11358_vm1, %vm10173_vm12  ;;  %v2512_v21 = vsel %vm11334_vm5, %v2256_v2, %v2480_v20  ;;  %v11398_v2 = vmov 0  ;;  %v11410_v32 = vmov 0 }
 0x436   :  { %v11360_v49 = vsel %vm8864_vm10, 4294967295, %v11359_v49  ;;  %vm2388_vm2 = vmand %vm2324_vm8, %vm2356_vm14  ;;  %2544 = vst [vmem:[#allocation5 + $0x8] sm:$0xff] %v2512_v21  ;;  %vm11364_vm14 = vcmp.ne.f32.partialorder %v7751_v10, %v7751_v10  ;;  %v11405_v21 = vmov 0 }
 0x437   :  { %vm2420_vm1 = vmor %vm11361_vm9, %vm2388_vm2 }
 0x438   :  { %vm8888_vm8 = vmand %vm10100_vm3, %vm8713_vm7  ;;  %v2452_v27 = vsel %vm2420_vm1, %v2010_v42, %v6985_v35  ;;  %vm11365_vm7 = vcmp.ne.f32.partialorder %v8391_v43, %v8391_v43  ;;  %vm2081_vm1 = vcmp.gt.f32.partialorder %v7927_v6, %v8413_v31  ;;  %vm11368_vm3 = vnez %v11326_v57 }
 0x439   :  { %vm2366_vm2 = vmxor %vm11364_vm14, %vm10173_vm12  ;;  %v2484_v3 = vsel %vm11309_vm0, %v2452_v27, %v6985_v35  ;;  %v11372_v35 = vmov 0  ;;  %v11376_v57 = vmov 0  ;;  %v2022_v27 = vpop.permute.xlu1 %2021 }
 0x43a   :  { %vm8909_vm9 = vmxor %vm11365_vm7, %vm10173_vm12  ;;  %v2516_v0 = vsel %vm11334_vm5, %v2260_v23, %v2484_v3  ;;  %vm11374_vm7 = vnez %v11330_v62 }
 0x43b   :  { %v11367_v17 = vsel %vm8909_vm9, 4294967295, %v11366_v17  ;;  %vm2398_vm14 = vmand %vm2334_vm13, %vm2366_vm2  ;;  %2548 = vst [vmem:[#allocation5 + $0x28] sm:$0xff] %v2516_v0  ;;  %vm11379_vm2 = vnez %v11333_v45 }
 0x43c   :  { %vm8927_vm10 = vmor %vm2081_vm1, %vm11368_vm3  ;;  %vm11371_vm3 = vcmp.ne.f32.partialorder %v8359_v41, %v8359_v41  ;;  %v2270_v62 = vsel %vm11379_vm2, %v8399_v63, %v7751_v10  ;;  %vm11385_vm2 = vnez %v11341_v4  ;;  %v11386_v63 = vmov 0 }
 0x43d   :  { %v11370_v38 = vsel %vm8927_vm10, 4294967295, %v11369_v38  ;;  %vm2430_vm9 = vmor %vm2302_vm6, %vm2398_vm14  ;;  %vm11375_vm6 = vcmp.ne.f32.partialorder %v7453_v59, %v7453_v59 }
 0x43e   :  { %vm8946_vm1 = vmxor %vm11371_vm3, %vm10173_vm12  ;;  %v2462_v42 = vsel %vm2430_vm9, %v8729_v28, %v7751_v10  ;;  %vm11378_vm3 = vcmp.ne.f32.partialorder %v7098_v15, %v7098_v15  ;;  %vm11380_vm9 = vcmp.ne.f32.partialorder %v8763_v22, %v8763_v22 }
 0x43f   :  { %v11373_v35 = vsel %vm8946_vm1, 4294967295, %v11372_v35  ;;  %vm8955_vm14 = vmand %vm11375_vm6, %vm11374_vm7  ;;  %v2494_v14 = vsel %vm11309_vm0, %v2462_v42, %v7751_v10  ;;  %vm11382_vm1 = vcmp.ne.f32.partialorder %v7513_v19, %v7513_v19 }
 0x440   :  { %v11377_v57 = vsel %vm8955_vm14, 4294967295, %v11376_v57  ;;  %vm2355_vm13 = vmxor %vm11378_vm3, %vm10173_vm12  ;;  %vm11381_vm3 = vnez %v11337_v16  ;;  %v2526_v10 = vsel %vm11334_vm5, %v2270_v62, %v2494_v14  ;;  %vm2295_vm14 = vcmp.gt.f32.partialorder %v2016_v33, %v7165_v55 }
 0x441   :  { %vm2387_vm6 = vmand %vm11380_vm9, %vm2355_vm13  ;;  %vm11388_vm13 = vcmp.gt.f32.partialorder %v8763_v22, %v7098_v15  ;;  %2558 = vst [vmem:[#allocation5 + $0x78] sm:$0xff] %v2526_v10  ;;  %v11435_v62 = vmov 0  ;;  %v11442_v10 = vmov 0  ;;  %v11447_v16 = vmov 0 }
 0x442   :  { %vm8982_vm10 = vmand %vm11382_vm1, %vm11381_vm3  ;;  %vm2074_vm1 = vcmp.gt.f32.partialorder %v7345_v60, %v8333_v54 }
 0x443   :  { %vm8988_vm7 = vmor %vm2070_vm4, %vm11385_vm2  ;;  %vm11389_vm4 = vcmp.ne.f32.partialorder %v7165_v55, %v7165_v55 }
 0x444   :  { %v11387_v63 = vsel %vm8988_vm7, 4294967295, %v11386_v63  ;;  %vm2419_vm9 = vmor %vm11388_vm13, %vm2387_vm6  ;;  %vm11392_vm6 = vnez %v11351_v61  ;;  %v9038_v61 = vpop.permute.xlu0 %2019 }
 0x445   :  { %v2451_v45 = vsel %vm2419_vm9, %v8763_v22, %v7098_v15  ;;  %vm2359_vm3 = vmxor %vm11389_vm4, %vm10173_vm12  ;;  %v2259_v4 = vsel %vm11392_vm6, %v8353_v18, %v7098_v15  ;;  %vm11393_vm9 = vcmp.ne.f32.partialorder %v8500_v5, %v8500_v5  ;;  %vm10101_vm6 = vcmp.ne.f32.partialorder %v8179_v56, %v8179_v56 }
 0x446   :  { %vm9008_vm2 = vmor %vm2074_vm1, %vm8824_vm11  ;;  %v2483_v47 = vsel %vm11309_vm0, %v2451_v45, %v7098_v15  ;;  %vm11396_vm11 = vcmp.ne.f32.partialorder %v2016_v33, %v2016_v33  ;;  %v2263_v15 = vsel %vm8850_vm15, %v8325_v13, %v7165_v55  ;;  %v11402_v13 = vmov 0 }
 0x447   :  { %vm9022_vm7 = vmxor %vm11393_vm9, %vm10173_vm12  ;;  %v2515_v18 = vsel %vm11334_vm5, %v2259_v4, %v2483_v47  ;;  %vm11401_vm9 = vcmp.ne.f32.partialorder %v8403_v7, %v8403_v7  ;;  %v11451_v22 = vmov 0 }
 0x448   :  { %vm2391_vm1 = vmand %vm11396_vm11, %vm2359_vm3  ;;  %vm11397_vm3 = vnez %v11360_v49  ;;  %2547 = vst [vmem:[#allocation5 + $0x20] sm:$0xff] %v2515_v18  ;;  %v9078_v49 = vpop.permute.xlu2 %2041 }
 0x449   :  { %vm2423_vm13 = vmor %vm2295_vm14, %vm2391_vm1  ;;  %vm11400_vm14 = vcmp.ne.f32.partialorder %v7927_v6, %v7927_v6 }
 0x44a   :  { %vm9049_vm11 = vmand %vm10101_vm6, %vm11397_vm3  ;;  %v2455_v20 = vsel %vm2423_vm13, %v2016_v33, %v7165_v55  ;;  %vm2084_vm3 = vcmp.gt.f32.partialorder %v8070_v9, %v8434_v34  ;;  %vm11404_vm13 = vcmp.ne.f32.partialorder %v8897_v37, %v8897_v37  ;;  %vm11413_vm6 = vcmp.ne.f32.partialorder %v8371_v26, %v8371_v26 }
 0x44b   :  { %v11399_v2 = vsel %vm9049_vm11, 4294967295, %v11398_v2  ;;  %vm2369_vm1 = vmxor %vm11400_vm14, %vm10173_vm12  ;;  %v2487_v12 = vsel %vm11309_vm0, %v2455_v20, %v7165_v55 }
 0x44c   :  { %vm9064_vm4 = vmxor %vm11401_vm9, %vm10173_vm12  ;;  %v2519_v55 = vsel %vm11334_vm5, %v2263_v15, %v2487_v12 }
 0x44d   :  { %v11403_v13 = vsel %vm9064_vm4, 4294967295, %v11402_v13  ;;  %vm2401_vm14 = vmand %vm11404_vm13, %vm2369_vm1  ;;  %vm11407_vm1 = vcmp.gt.f32.partialorder %v8897_v37, %v7927_v6  ;;  %2551 = vst [vmem:[#allocation5 + $0x40] sm:$0xff] %v2519_v55 }
 0x44e   :  { %vm9084_vm15 = vmor %vm2084_vm3, %vm8888_vm8  ;;  %vm2073_vm8 = vcmp.gt.f32.partialorder %v7453_v59, %v8377_v48  ;;  %vm11408_vm3 = vnez %v11367_v17  ;;  %v11414_v17 = vmov 0 }
 0x44f   :  { %v11406_v21 = vsel %vm9084_vm15, 4294967295, %v11405_v21  ;;  %vm2433_vm13 = vmor %vm11407_vm1, %vm2401_vm14  ;;  %vm11409_vm15 = vcmp.ne.f32.partialorder %v7633_v51, %v7633_v51  ;;  %vm11412_vm14 = vcmp.ne.f32.partialorder %v7278_v36, %v7278_v36 }
 0x450   :  { %vm9104_vm4 = vmand %vm11409_vm15, %vm11408_vm3  ;;  %v2465_v23 = vsel %vm2433_vm13, %v8897_v37, %v7927_v6  ;;  %vm11416_vm15 = vnez %v11370_v38  ;;  %vm11417_vm3 = vcmp.ne.f32.partialorder %v8899_v52, %v8899_v52  ;;  %v2048_v45 = vpop.permute.xlu2 %2047 }
 0x451   :  { %v11411_v32 = vsel %vm9104_vm4, 4294967295, %v11410_v32  ;;  %vm2358_vm1 = vmxor %vm11412_vm14, %vm10173_vm12  ;;  %v2273_v3 = vsel %vm11416_vm15, %v8413_v31, %v7927_v6  ;;  %v2497_v37 = vsel %vm11309_vm0, %v2465_v23, %v7927_v6  ;;  %vm11418_vm4 = vnez %v11373_v35  ;;  %v11477_v23 = vld [vmem:[#allocation23_spill] sm:$0xff] }
 0x452   :  { %vm9118_vm9 = vmxor %vm11413_vm6, %vm10173_vm12  ;;  %vm11422_vm15 = vnez %v11377_v57  ;;  %v2529_v6 = vsel %vm11334_vm5, %v2273_v3, %v2497_v37  ;;  %v11427_v35 = vmov 0  ;;  %v11478_v3 = vld [vmem:[#allocation34_spill] sm:$0xff]  ;;  %v11480_v37 = vmov 0 }
 0x453   :  { %v11415_v17 = vsel %vm9118_vm9, 4294967295, %v11414_v17  ;;  %vm2390_vm14 = vmand %vm11417_vm3, %vm2358_vm1  ;;  %vm11419_vm9 = vcmp.ne.f32.partialorder %v7693_v44, %v7693_v44  ;;  %vm11425_vm1 = vcmp.gt.f32.partialorder %v8899_v52, %v7278_v36  ;;  %2561 = vst [vmem:[#allocation5 + $0x90] sm:$0xff] %v2529_v6 }
 0x454   :  { %vm9139_vm11 = vmand %vm11419_vm9, %vm11418_vm4  ;;  %vm2077_vm4 = vcmp.gt.f32.partialorder %v7513_v19, %v8345_v1  ;;  %vm11426_vm9 = vcmp.ne.f32.partialorder %v7345_v60, %v7345_v60 }
 0x455   :  { %vm9145_vm13 = vmor %vm2073_vm8, %vm11422_vm15 }
 0x456   :  { %vm2422_vm3 = vmor %vm11425_vm1, %vm2390_vm14  ;;  %vm11429_vm14 = vnez %v11387_v63  ;;  %v2028_v63 = vpop.permute.xlu1 %2027  ;;  %v2265_v12 = vsel %vm9145_vm13, %v8377_v48, %v7453_v59 }
 0x457   :  { %v2454_v0 = vsel %vm2422_vm3, %v8899_v52, %v7278_v36  ;;  %vm2362_vm8 = vmxor %vm11426_vm9, %vm10173_vm12  ;;  %v2262_v57 = vsel %vm11429_vm14, %v8365_v40, %v7278_v36  ;;  %vm11430_vm3 = vcmp.ne.f32.partialorder %v8570_v30, %v8570_v30  ;;  %v11431_v52 = vmov 0  ;;  %v9189_v40 = vpop.permute.xlu0 %2025 }
 0x458   :  { %vm9165_vm15 = vmor %vm2077_vm4, %vm8982_vm10  ;;  %v2486_v42 = vsel %vm11309_vm0, %v2454_v0, %v7278_v36  ;;  %vm11433_vm10 = vcmp.ne.f32.partialorder %v2022_v27, %v2022_v27  ;;  %vm2340_vm9 = vcmp.ne.f32.partialorder %v9078_v49, %v9078_v49  ;;  %vm10102_vm14 = vcmp.ne.f32.partialorder %v8253_v50, %v8253_v50  ;;  %v2054_v6 = vpop.permute.xlu2 %2053  ;;  %v11487_v0 = vld [vmem:[#allocation8_spill] sm:$0xff] }
 0x459   :  { %v11428_v35 = vsel %vm9165_vm15, 4294967295, %v11427_v35  ;;  %vm9179_vm6 = vmxor %vm11430_vm3, %vm10173_vm12  ;;  %v2518_v33 = vsel %vm11334_vm5, %v2262_v57, %v2486_v42  ;;  %vm11434_vm3 = vcmp.gt.f32.partialorder %v2022_v27, %v7345_v60  ;;  %v2266_v36 = vsel %vm9008_vm2, %v8333_v54, %v7345_v60  ;;  %v11493_v42 = vld [vmem:[#allocation22_spill] sm:$0xff] }
 0x45a   :  { %v11432_v52 = vsel %vm9179_vm6, 4294967295, %v11431_v52  ;;  %vm2394_vm4 = vmand %vm11433_vm10, %vm2362_vm8  ;;  %2550 = vst [vmem:[#allocation5 + $0x38] sm:$0xff] %v2518_v33  ;;  %vm11437_vm10 = vcmp.ne.f32.partialorder %v8070_v9, %v8070_v9  ;;  %v11439_v54 = vmov 0  ;;  %vm2301_vm15 = vcmp.gt.f32.partialorder %v2028_v63, %v7513_v19 }
 0x45b   :  { %vm2426_vm1 = vmor %vm11434_vm3, %vm2394_vm4  ;;  %vm11438_vm3 = vcmp.ne.f32.partialorder %v8418_v46, %v8418_v46 }
 0x45c   :  { %vm9208_vm8 = vmand %vm10102_vm14, %vm9022_vm7  ;;  %v2458_v14 = vsel %vm2426_vm1, %v2022_v27, %v7345_v60  ;;  %vm2087_vm7 = vcmp.gt.f32.partialorder %v8179_v56, %v8464_v39  ;;  %vm11441_vm14 = vnez %v11399_v2 }
 0x45d   :  { %v11436_v62 = vsel %vm9208_vm8, 4294967295, %v11435_v62  ;;  %vm2372_vm4 = vmxor %vm11437_vm10, %vm10173_vm12  ;;  %v2490_v28 = vsel %vm11309_vm0, %v2458_v14, %v7345_v60  ;;  %vm2076_vm10 = vcmp.gt.f32.partialorder %v7633_v51, %v8391_v43 }
 0x45e   :  { %vm9223_vm6 = vmxor %vm11438_vm3, %vm10173_vm12  ;;  %v2522_v60 = vsel %vm11334_vm5, %v2266_v36, %v2490_v28  ;;  %vm11445_vm3 = vnez %v11403_v13  ;;  %v11463_v13 = vmov 0  ;;  %v11505_v28 = vld [vmem:[#allocation15_spill] sm:$0xff] }
 0x45f   :  { %v11440_v54 = vsel %vm9223_vm6, 4294967295, %v11439_v54  ;;  %vm2404_vm1 = vmand %vm2340_vm9, %vm2372_vm4  ;;  %vm11444_vm6 = vcmp.gt.f32.partialorder %v9078_v49, %v8070_v9  ;;  %2554 = vst [vmem:[#allocation5 + $0x58] sm:$0xff] %v2522_v60  ;;  %vm11450_vm4 = vcmp.ne.f32.partialorder %v8385_v11, %v8385_v11  ;;  %v9320_v20 = vpop.permute.xlu0 %2031 }
 0x460   :  { %vm9241_vm2 = vmor %vm2087_vm7, %vm11441_vm14  ;;  %vm11446_vm14 = vcmp.ne.f32.partialorder %v7811_v24, %v7811_v24 }
 0x461   :  { %v11443_v10 = vsel %vm9241_vm2, 4294967295, %v11442_v10  ;;  %vm2436_vm9 = vmor %vm11444_vm6, %vm2404_vm1  ;;  %vm11449_vm6 = vcmp.ne.f32.partialorder %v7453_v59, %v7453_v59 }
 0x462   :  { %vm9259_vm7 = vmand %vm11446_vm14, %vm11445_vm3  ;;  %v2468_v4 = vsel %vm2436_vm9, %v9078_v49, %v8070_v9  ;;  %vm11453_vm9 = vnez %v11406_v21  ;;  %vm11454_vm14 = vcmp.ne.f32.partialorder %v9038_v61, %v9038_v61  ;;  %v11468_v21 = vld [vmem:[#allocation11_spill] sm:$0xff] }
 0x463   :  { %v11448_v16 = vsel %vm9259_vm7, 4294967295, %v11447_v16  ;;  %vm2361_vm1 = vmxor %vm11449_vm6, %vm10173_vm12  ;;  %v2276_v47 = vsel %vm11453_vm9, %v8434_v34, %v8070_v9  ;;  %v2500_v18 = vsel %vm11309_vm0, %v2468_v4, %v8070_v9  ;;  %vm11455_vm7 = vnez %v11411_v32  ;;  %v2034_v32 = vpop.permute.xlu1 %2033  ;;  %v11517_v4 = vld [vmem:[#allocation31_spill] sm:$0xff] }
 0x464   :  { %vm9273_vm2 = vmxor %vm11450_vm4, %vm10173_vm12  ;;  %vm2333_vm4 = vcmp.ne.f32.partialorder %v2028_v63, %v2028_v63  ;;  %v2532_v34 = vsel %vm11334_vm5, %v2276_v47, %v2500_v18  ;;  %vm11458_vm9 = vcmp.gt.f32.partialorder %v9038_v61, %v7453_v59  ;;  %vm10104_vm13 = vcmp.ne.f32.partialorder %v11468_v21, %v11468_v21  ;;  %v11518_v47 = vld [vmem:[#allocation12_spill] sm:$0xff] }
 0x465   :  { %v11452_v22 = vsel %vm9273_vm2, 4294967295, %v11451_v22  ;;  %vm2393_vm6 = vmand %vm11454_vm14, %vm2361_vm1  ;;  %vm10103_vm2 = vcmp.ne.f32.partialorder %v7871_v53, %v7871_v53  ;;  %vm2080_vm1 = vcmp.gt.f32.partialorder %v7693_v44, %v8359_v41  ;;  %vm11459_vm14 = vnez %v11415_v17  ;;  %2564 = vst [vmem:[#allocation5 + $0xa8] sm:$0xff] %v2532_v34 }
 0x466   :  { %vm9293_vm3 = vmor %vm2076_vm10, %vm11455_vm7  ;;  %vm11462_vm7 = vcmp.ne.f32.partialorder %v7513_v19, %v7513_v19 }
 0x467   :  { %vm2425_vm8 = vmor %vm11458_vm9, %vm2393_vm6  ;;  %v2268_v14 = vsel %vm9293_vm3, %v8391_v43, %v7633_v51  ;;  %v11506_v43 = vmov 0 }
 0x468   :  { %vm9310_vm10 = vmand %vm10103_vm2, %vm11459_vm14  ;;  %v2457_v2 = vsel %vm2425_vm8, %v9038_v61, %v7453_v59  ;;  %vm11465_vm14 = vcmp.ne.f32.partialorder %v8439_v8, %v8439_v8  ;;  %v11466_v61 = vmov 0  ;;  %vm11469_vm8 = vnez %v11428_v35 }
 0x469   :  { %vm2365_vm6 = vmxor %vm11462_vm7, %vm10173_vm12  ;;  %v2489_v49 = vsel %vm11309_vm0, %v2457_v2, %v7453_v59  ;;  %v2269_v55 = vsel %vm11469_vm8, %v8345_v1, %v7513_v19  ;;  %v11471_v59 = vmov 0  ;;  %vm11474_vm8 = vcmp.ne.f32.partialorder %v8397_v58, %v8397_v58 }
 0x46a   :  { %vm9324_vm9 = vmor %vm2080_vm1, %vm9139_vm11  ;;  %vm2343_vm1 = vcmp.ne.f32.partialorder %v2048_v45, %v2048_v45  ;;  %v2521_v48 = vsel %vm11334_vm5, %v2265_v12, %v2489_v49  ;;  %v11475_v1 = vmov 0  ;;  %v11489_v35 = vmov 0  ;;  %v2060_v12 = vpop.permute.xlu2 %2059  ;;  %v11534_v49 = vld [vmem:[#allocation28_spill] sm:$0xff] }
 0x46b   :  { %v11464_v13 = vsel %vm9324_vm9, 4294967295, %v11463_v13  ;;  %vm9338_vm7 = vmxor %vm11465_vm14, %vm10173_vm12  ;;  %2553 = vst [vmem:[#allocation5 + $0x50] sm:$0xff] %v2521_v48  ;;  %vm11479_vm14 = vnez %v11436_v62  ;;  %vm2304_vm9 = vcmp.gt.f32.partialorder %v2034_v32, %v7693_v44  ;;  %v11529_v2 = vmov 0 }
 0x46c   :  { %v11467_v61 = vsel %vm9338_vm7, 4294967295, %v11466_v61  ;;  %vm2397_vm11 = vmand %vm2333_vm4, %vm2365_vm6  ;;  %vm11470_vm7 = vnez %v11432_v52 }
 0x46d   :  { %vm2429_vm2 = vmor %vm2301_vm15, %vm2397_vm11  ;;  %vm11473_vm15 = vcmp.ne.f32.partialorder %v8179_v56, %v8179_v56 }
 0x46e   :  { %vm9362_vm4 = vmand %vm10104_vm13, %vm11470_vm7  ;;  %v2461_v27 = vsel %vm2429_vm2, %v2028_v63, %v7513_v19  ;;  %vm2090_vm2 = vcmp.gt.f32.partialorder %v8253_v50, %v8500_v5  ;;  %vm11482_vm7 = vcmp.gt.f32.partialorder %v2048_v45, %v8179_v56  ;;  %vm11483_vm13 = vnez %v11440_v54  ;;  %v11508_v63 = vld [vmem:[#allocation21_spill] sm:$0xff] }
 0x46f   :  { %v11472_v59 = vsel %vm9362_vm4, 4294967295, %v11471_v59  ;;  %vm2375_vm6 = vmxor %vm11473_vm15, %vm10173_vm12  ;;  %v2493_v17 = vsel %vm11309_vm0, %v2461_v27, %v7513_v19  ;;  %v11484_v19 = vmov 0  ;;  %v11503_v54 = vmov 0 }
 0x470   :  { %vm9375_vm11 = vmxor %vm11474_vm8, %vm10173_vm12  ;;  %vm10105_vm8 = vcmp.ne.f32.partialorder %v11478_v3, %v11478_v3  ;;  %v2525_v38 = vsel %vm11334_vm5, %v2269_v55, %v2493_v17 }
 0x471   :  { %v11476_v1 = vsel %vm9375_vm11, 4294967295, %v11475_v1  ;;  %vm2407_vm15 = vmand %vm2343_vm1, %vm2375_vm6  ;;  %vm2079_vm6 = vcmp.gt.f32.partialorder %v7811_v24, %v8403_v7  ;;  %2557 = vst [vmem:[#allocation5 + $0x70] sm:$0xff] %v2525_v38  ;;  %vm11488_vm1 = vcmp.ne.f32.partialorder %v11477_v23, %v11477_v23 }
 0x472   :  { %vm9393_vm11 = vmor %vm2090_vm2, %vm11479_vm14 }
 0x473   :  { %v11481_v37 = vsel %vm9393_vm11, 4294967295, %v11480_v37  ;;  %vm2439_vm4 = vmor %vm11482_vm7, %vm2407_vm15  ;;  %vm11486_vm7 = vcmp.ne.f32.partialorder %v7633_v51, %v7633_v51  ;;  %vm2336_vm15 = vcmp.ne.f32.partialorder %v2034_v32, %v2034_v32 }
 0x474   :  { %vm9410_vm14 = vmand %vm10105_vm8, %vm11483_vm13  ;;  %v2471_v31 = vsel %vm2439_vm4, %v2048_v45, %v8179_v56  ;;  %vm11491_vm4 = vnez %v11443_v10  ;;  %v11511_v45 = vmov 0 }
 0x475   :  { %v11485_v19 = vsel %vm9410_vm14, 4294967295, %v11484_v19  ;;  %vm2364_vm2 = vmxor %vm11486_vm7, %vm10173_vm12  ;;  %v2279_v57 = vsel %vm11491_vm4, %v8464_v39, %v8179_v56  ;;  %v2503_v52 = vsel %vm11309_vm0, %v2471_v31, %v8179_v56  ;;  %vm11492_vm7 = vcmp.ne.f32.partialorder %v9189_v40, %v9189_v40  ;;  %v9453_v56 = vpop.permute.xlu0 %2037  ;;  %v11552_v31 = vld [vmem:[#allocation26_spill] sm:$0xff] }
 0x476   :  { %vm9425_vm13 = vmxor %vm11488_vm1, %vm10173_vm12  ;;  %vm10106_vm1 = vcmp.ne.f32.partialorder %v11493_v42, %v11493_v42  ;;  %vm11494_vm14 = vnez %v11448_v16  ;;  %v2535_v39 = vsel %vm11334_vm5, %v2279_v57, %v2503_v52  ;;  %vm11497_vm4 = vcmp.gt.f32.partialorder %v9189_v40, %v7633_v51 }
 0x477   :  { %v11490_v35 = vsel %vm9425_vm13, 4294967295, %v11489_v35  ;;  %vm2396_vm8 = vmand %vm11492_vm7, %vm2364_vm2  ;;  %vm2083_vm2 = vcmp.gt.f32.partialorder %v7871_v53, %v8371_v26  ;;  %vm11498_vm7 = vnez %v11452_v22  ;;  %2567 = vst [vmem:[#allocation5 + $0xc0] sm:$0xff] %v2535_v39  ;;  %v11560_v39 = vld [vmem:[#allocation10_spill] sm:$0xff] }
 0x478   :  { %vm9443_vm13 = vmor %vm2079_vm6, %vm11494_vm14 }
 0x479   :  { %vm2428_vm11 = vmor %vm11497_vm4, %vm2396_vm8  ;;  %vm11501_vm8 = vcmp.ne.f32.partialorder %v7693_v44, %v7693_v44  ;;  %vm11502_vm4 = vcmp.ne.f32.partialorder %v11487_v0, %v11487_v0 }
 0x47a   :  { %vm9462_vm6 = vmand %vm10106_vm1, %vm11498_vm7  ;;  %v2460_v62 = vsel %vm2428_vm11, %v9189_v40, %v7633_v51  ;;  %vm2346_vm1 = vcmp.ne.f32.partialorder %v2054_v6, %v2054_v6 }
 0x47b   :  { %vm2368_vm14 = vmxor %vm11501_vm8, %vm10173_vm12  ;;  %v2492_v40 = vsel %vm11309_vm0, %v2460_v62, %v7633_v51  ;;  %v2040_v51 = vpop.permute.xlu1 %2039 }
 0x47c   :  { %vm9480_vm7 = vmxor %vm11502_vm4, %vm10173_vm12  ;;  %vm10107_vm4 = vcmp.ne.f32.partialorder %v11508_v63, %v11508_v63  ;;  %v2524_v10 = vsel %vm11334_vm5, %v2268_v14, %v2492_v40 }
 0x47d   :  { %v11504_v54 = vsel %vm9480_vm7, 4294967295, %v11503_v54  ;;  %vm2400_vm8 = vmand %vm2336_vm15, %vm2368_vm14  ;;  %vm11509_vm15 = vnez %v11464_v13  ;;  %2556 = vst [vmem:[#allocation5 + $0x68] sm:$0xff] %v2524_v10  ;;  %vm11519_vm7 = vnez %v11472_v59  ;;  %v2271_v59 = vsel %vm9443_vm13, %v8403_v7, %v7811_v24 }
 0x47e   :  { %vm9492_vm3 = vmor %vm2083_vm2, %vm9310_vm10  ;;  %v2272_v60 = vsel %vm11509_vm15, %v8359_v41, %v7693_v44  ;;  %vm11510_vm10 = vnez %v11467_v61  ;;  %v11515_v41 = vmov 0  ;;  %v9584_v61 = vpop.permute.xlu0 %2043  ;;  %v11571_v10 = vmov 0 }
 0x47f   :  { %v11507_v43 = vsel %vm9492_vm3, 4294967295, %v11506_v43  ;;  %vm2432_vm11 = vmor %vm2304_vm9, %vm2400_vm8  ;;  %vm11513_vm9 = vcmp.ne.f32.partialorder %v8253_v50, %v8253_v50  ;;  %vm11514_vm8 = vcmp.ne.f32.partialorder %v11505_v28, %v11505_v28 }
 0x480   :  { %vm9512_vm2 = vmand %vm10107_vm4, %vm11510_vm10  ;;  %v2464_v16 = vsel %vm2432_vm11, %v2034_v32, %v7693_v44  ;;  %vm2093_vm4 = vcmp.gt.f32.partialorder %v11468_v21, %v8570_v30  ;;  %vm11522_vm10 = vcmp.gt.f32.partialorder %v2054_v6, %v8253_v50 }
 0x481   :  { %v11512_v45 = vsel %vm9512_vm2, 4294967295, %v11511_v45  ;;  %vm2378_vm14 = vmxor %vm11513_vm9, %vm10173_vm12  ;;  %v2496_v22 = vsel %vm11309_vm0, %v2464_v16, %v7693_v44  ;;  %vm2335_vm9 = vcmp.ne.f32.partialorder %v9320_v20, %v9320_v20  ;;  %v11524_v44 = vmov 0 }
 0x482   :  { %vm9525_vm15 = vmxor %vm11514_vm8, %vm10173_vm12  ;;  %vm10108_vm8 = vcmp.ne.f32.partialorder %v11518_v47, %v11518_v47  ;;  %v2528_v15 = vsel %vm11334_vm5, %v2272_v60, %v2496_v22 }
 0x483   :  { %v11516_v41 = vsel %vm9525_vm15, 4294967295, %v11515_v41  ;;  %vm2410_vm11 = vmand %vm2346_vm1, %vm2378_vm14  ;;  %vm11523_vm14 = vnez %v11476_v1  ;;  %2560 = vst [vmem:[#allocation5 + $0x88] sm:$0xff] %v2528_v15  ;;  %vm11531_vm1 = vnez %v11485_v19  ;;  %v11543_v1 = vld [vmem:[#allocation13_spill] sm:$0xff]  ;;  %v11550_v19 = vmov 0 }
 0x484   :  { %vm9543_vm15 = vmor %vm2093_vm4, %vm11519_vm7  ;;  %vm11526_vm7 = vcmp.ne.f32.partialorder %v7811_v24, %v7811_v24 }
 0x485   :  { %vm2442_vm2 = vmor %vm11522_vm10, %vm2410_vm11  ;;  %vm2082_vm10 = vcmp.gt.f32.partialorder %v11478_v3, %v8418_v46  ;;  %vm11527_vm11 = vnez %v11481_v37  ;;  %v2285_v57 = vsel %vm9543_vm15, %v8570_v30, %v11468_v21 }
 0x486   :  { %vm9558_vm3 = vmand %vm10108_vm8, %vm11523_vm14  ;;  %v2474_v34 = vsel %vm2442_vm2, %v2054_v6, %v8253_v50  ;;  %v2282_v9 = vsel %vm11527_vm11, %v8500_v5, %v8253_v50  ;;  %vm11528_vm14 = vcmp.ne.f32.partialorder %v11517_v4, %v11517_v4  ;;  %v11532_v5 = vmov 0 }
 0x487   :  { %v11525_v44 = vsel %vm9558_vm3, 4294967295, %v11524_v44  ;;  %vm2367_vm4 = vmxor %vm11526_vm7, %vm10173_vm12  ;;  %v2506_v13 = vsel %vm11309_vm0, %v2474_v34, %v8253_v50  ;;  %vm11536_vm7 = vnez %v11490_v35  ;;  %v11537_v50 = vmov 0  ;;  %v9687_v35 = vpop.permute.xlu0 %2049 }
 0x488   :  { %vm9577_vm8 = vmxor %vm11528_vm14, %vm10173_vm12  ;;  %vm10109_vm14 = vcmp.ne.f32.partialorder %v11534_v49, %v11534_v49  ;;  %v2538_v48 = vsel %vm11334_vm5, %v2282_v9, %v2506_v13  ;;  %vm11544_vm3 = vnez %v11504_v54 }
 0x489   :  { %v11530_v2 = vsel %vm9577_vm8, 4294967295, %v11529_v2  ;;  %vm2399_vm2 = vmand %vm2335_vm9, %vm2367_vm4  ;;  %vm11535_vm8 = vcmp.gt.f32.partialorder %v9320_v20, %v7811_v24  ;;  %vm2307_vm4 = vcmp.gt.f32.partialorder %v2040_v51, %v7871_v53  ;;  %2570 = vst [vmem:[#allocation5 + $0xd8] sm:$0xff] %v2538_v48 }
 0x48a   :  { %vm9588_vm11 = vmor %vm2082_vm10, %vm11531_vm1  ;;  %vm11539_vm10 = vcmp.ne.f32.partialorder %v7871_v53, %v7871_v53 }
 0x48b   :  { %v11533_v5 = vsel %vm9588_vm11, 4294967295, %v11532_v5  ;;  %vm2431_vm9 = vmor %vm11535_vm8, %vm2399_vm2  ;;  %vm2086_vm2 = vcmp.gt.f32.partialorder %v11493_v42, %v8385_v11  ;;  %vm2317_vm11 = vcmp.gt.f32.partialorder %v2060_v12, %v11468_v21 }
 0x48c   :  { %vm9605_vm1 = vmand %vm10109_vm14, %vm11536_vm7  ;;  %v2463_v55 = vsel %vm2431_vm9, %v9320_v20, %v7811_v24  ;;  %vm11540_vm7 = vcmp.ne.f32.partialorder %v2040_v51, %v2040_v51  ;;  %vm2349_vm9 = vcmp.ne.f32.partialorder %v2060_v12, %v2060_v12  ;;  %v2046_v20 = vpop.permute.xlu1 %2045 }
 0x48d   :  { %v11538_v50 = vsel %vm9605_vm1, 4294967295, %v11537_v50  ;;  %vm2371_vm8 = vmxor %vm11539_vm10, %vm10173_vm12  ;;  %v2495_v27 = vsel %vm11309_vm0, %v2463_v55, %v7811_v24  ;;  %vm10110_vm10 = vcmp.ne.f32.partialorder %v11543_v1, %v11543_v1  ;;  %v11545_v24 = vmov 0 }
 0x48e   :  { %vm2403_vm14 = vmand %vm11540_vm7, %vm2371_vm8  ;;  %v2527_v7 = vsel %vm11334_vm5, %v2271_v59, %v2495_v27  ;;  %vm2338_vm7 = vcmp.ne.f32.partialorder %v9453_v56, %v9453_v56  ;;  %vm2310_vm15 = vcmp.gt.f32.partialorder %v2046_v20, %v11493_v42 }
 0x48f   :  { %vm9627_vm1 = vmor %vm2086_vm2, %vm9462_vm6  ;;  %2559 = vst [vmem:[#allocation5 + $0x80] sm:$0xff] %v2527_v7  ;;  %vm11547_vm6 = vcmp.ne.f32.partialorder %v11468_v21, %v11468_v21 }
 0x490   :  { %vm2435_vm13 = vmor %vm2307_vm4, %vm2403_vm14  ;;  %vm11548_vm14 = vnez %v11507_v43  ;;  %vm2085_vm4 = vcmp.gt.f32.partialorder %v11508_v63, %v8439_v8  ;;  %v2278_v40 = vsel %vm9627_vm1, %v8385_v11, %v11493_v42  ;;  %v2056_v11 = vpop.permute.xlu0 %2055 }
 0x491   :  { %vm9641_vm8 = vmand %vm10110_vm10, %vm11544_vm3  ;;  %v2467_v17 = vsel %vm2435_vm13, %v2040_v51, %v7871_v53  ;;  %v2275_v37 = vsel %vm11548_vm14, %v8371_v26, %v7871_v53  ;;  %vm11549_vm13 = vnez %v11512_v45 }
 0x492   :  { %v11546_v24 = vsel %vm9641_vm8, 4294967295, %v11545_v24  ;;  %vm2381_vm2 = vmxor %vm11547_vm6, %vm10173_vm12  ;;  %v2499_v38 = vsel %vm11309_vm0, %v2467_v17, %v7871_v53  ;;  %vm10111_vm6 = vcmp.ne.f32.partialorder %v11552_v31, %v11552_v31  ;;  %vm2306_vm8 = vcmp.gt.f32.partialorder %v9453_v56, %v11478_v3 }
 0x493   :  { %vm2413_vm3 = vmand %vm2349_vm9, %vm2381_vm2  ;;  %v2531_v26 = vsel %vm11334_vm5, %v2275_v37, %v2499_v38  ;;  %vm11553_vm9 = vnez %v11516_v41  ;;  %v11554_v53 = vmov 0 }
 0x494   :  { %vm9663_vm10 = vmor %vm2085_vm4, %vm11549_vm13  ;;  %2563 = vst [vmem:[#allocation5 + $0xa0] sm:$0xff] %v2531_v26  ;;  %vm11556_vm4 = vcmp.ne.f32.partialorder %v11478_v3, %v11478_v3  ;;  %v2052_v62 = vpop.permute.xlu1 %2051 }
 0x495   :  { %v11551_v19 = vsel %vm9663_vm10, 4294967295, %v11550_v19  ;;  %vm2445_vm14 = vmor %vm2317_vm11, %vm2413_vm3  ;;  %vm2089_vm3 = vcmp.gt.f32.partialorder %v11518_v47, %v8397_v58  ;;  %vm11561_vm10 = vnez %v11530_v2  ;;  %vm2313_vm1 = vcmp.gt.f32.partialorder %v2052_v62, %v11518_v47 }
 0x496   :  { %vm9678_vm2 = vmand %vm10111_vm6, %vm11553_vm9  ;;  %v2477_v6 = vsel %vm2445_vm14, %v2060_v12, %v11468_v21  ;;  %vm2342_vm14 = vcmp.ne.f32.partialorder %v2046_v20, %v2046_v20  ;;  %vm11557_vm9 = vnez %v11525_v44 }
 0x497   :  { %v11555_v53 = vsel %vm9678_vm2, 4294967295, %v11554_v53  ;;  %vm2370_vm11 = vmxor %vm11556_vm4, %vm10173_vm12  ;;  %v2509_v52 = vsel %vm11309_vm0, %v2477_v6, %v11468_v21  ;;  %vm10112_vm4 = vcmp.ne.f32.partialorder %v11560_v39, %v11560_v39 }
 0x498   :  { %vm2402_vm13 = vmand %vm2338_vm7, %vm2370_vm11  ;;  %v2541_v36 = vsel %vm11334_vm5, %v2285_v57, %v2509_v52  ;;  %vm11564_vm11 = vcmp.ne.f32.partialorder %v11493_v42, %v11493_v42  ;;  %v2062_v9 = vpop.permute.xlu0 %2061 }
 0x499   :  { %vm9700_vm6 = vmor %vm2089_vm3, %vm11557_vm9  ;;  %2573 = vst [vmem:[#allocation5 + $0xf0] sm:$0xff] %v2541_v36  ;;  %vm11565_vm3 = vnez %v11533_v5  ;;  %vm11566_vm9 = vnez %v11538_v50 }
 0x49a   :  { %vm2434_vm2 = vmor %vm2306_vm8, %vm2402_vm13  ;;  %v2274_v14 = vsel %vm11565_vm3, %v8418_v46, %v11478_v3  ;;  %v2281_v22 = vsel %vm9700_vm6, %v8397_v58, %v11518_v47 }
 0x49b   :  { %vm9714_vm7 = vmand %vm10112_vm4, %vm11561_vm10  ;;  %v2466_v21 = vsel %vm2434_vm2, %v9453_v56, %v11478_v3  ;;  %vm2088_vm10 = vcmp.gt.f32.partialorder %v11534_v49, %v11477_v23  ;;  %vm2341_vm2 = vcmp.ne.f32.partialorder %v9584_v61, %v9584_v61  ;;  %vm2309_vm4 = vcmp.gt.f32.partialorder %v9584_v61, %v11508_v63 }
 0x49c   :  { %vm2374_vm8 = vmxor %vm11564_vm11, %vm10173_vm12  ;;  %v2498_v54 = vsel %vm11309_vm0, %v2466_v21, %v11478_v3  ;;  %v2058_v41 = vpop.permute.xlu1 %2057 }
 0x49d   :  { %vm2406_vm13 = vmand %vm2342_vm14, %vm2374_vm8  ;;  %v2530_v46 = vsel %vm11334_vm5, %v2274_v14, %v2498_v54  ;;  %vm11569_vm14 = vcmp.ne.f32.partialorder %v11508_v63, %v11508_v63  ;;  %vm2316_vm6 = vcmp.gt.f32.partialorder %v2058_v41, %v11543_v1 }
 0x49e   :  { %vm9737_vm11 = vmor %vm2088_vm10, %vm11566_vm9  ;;  %2562 = vst [vmem:[#allocation5 + $0x98] sm:$0xff] %v2530_v46  ;;  %vm2092_vm10 = vcmp.gt.f32.partialorder %v11543_v1, %v11487_v0  ;;  %vm11570_vm9 = vnez %v11546_v24 }
 0x49f   :  { %vm2438_vm3 = vmor %vm2310_vm15, %vm2406_vm13  ;;  %vm2345_vm13 = vcmp.ne.f32.partialorder %v2052_v62, %v2052_v62 }
 0x4a0   :  { %v2470_v3 = vsel %vm2438_vm3, %v2046_v20, %v11493_v42  ;;  %vm2373_vm8 = vmxor %vm11569_vm14, %vm10173_vm12 }
 0x4a1   :  { %v2502_v43 = vsel %vm11309_vm0, %v2470_v3, %v11493_v42  ;;  %vm2405_vm15 = vmand %vm2341_vm2, %vm2373_vm8  ;;  %vm11573_vm2 = vcmp.ne.f32.partialorder %v11518_v47, %v11518_v47 }
 0x4a2   :  { %vm9761_vm3 = vmor %vm2092_vm10, %vm11570_vm9  ;;  %v2534_v51 = vsel %vm11334_vm5, %v2278_v40, %v2502_v43  ;;  %vm11574_vm10 = vnez %v11551_v19  ;;  %vm2344_vm9 = vcmp.ne.f32.partialorder %v9687_v35, %v9687_v35 }
 0x4a3   :  { %v11572_v10 = vsel %vm9761_vm3, 4294967295, %v11571_v10  ;;  %vm2437_vm14 = vmor %vm2309_vm4, %vm2405_vm15  ;;  %2566 = vst [vmem:[#allocation5 + $0xb8] sm:$0xff] %v2534_v51  ;;  %v2277_v42 = vsel %vm11574_vm10, %v8439_v8, %v11508_v63  ;;  %vm2091_vm4 = vcmp.gt.f32.partialorder %v11552_v31, %v11505_v28  ;;  %vm2312_vm10 = vcmp.gt.f32.partialorder %v9687_v35, %v11534_v49 }
 0x4a4   :  { %v2469_v60 = vsel %vm2437_vm14, %v9584_v61, %v11508_v63  ;;  %vm2377_vm8 = vmxor %vm11573_vm2, %vm10173_vm12  ;;  %vm11575_vm14 = vnez %v11555_v53 }
 0x4a5   :  { %v2501_v45 = vsel %vm11309_vm0, %v2469_v60, %v11508_v63  ;;  %vm2409_vm15 = vmand %vm2345_vm13, %vm2377_vm8  ;;  %vm11578_vm13 = vcmp.ne.f32.partialorder %v11534_v49, %v11534_v49 }
 0x4a6   :  { %vm9787_vm3 = vmor %vm2091_vm4, %vm11575_vm14  ;;  %v2533_v8 = vsel %vm11334_vm5, %v2277_v42, %v2501_v45 }
 0x4a7   :  { %vm2441_vm2 = vmor %vm2313_vm1, %vm2409_vm15  ;;  %2565 = vst [vmem:[#allocation5 + $0xb0] sm:$0xff] %v2533_v8  ;;  %vm2094_vm1 = vcmp.gt.f32.partialorder %v11560_v39, %v11517_v4  ;;  %vm2348_vm15 = vcmp.ne.f32.partialorder %v2058_v41, %v2058_v41 }
 0x4a8   :  { %v2473_v63 = vsel %vm2441_vm2, %v2052_v62, %v11518_v47  ;;  %vm2376_vm8 = vmxor %vm11578_vm13, %vm10173_vm12 }
 0x4a9   :  { %v2505_v18 = vsel %vm11309_vm0, %v2473_v63, %v11518_v47  ;;  %vm2408_vm4 = vmand %vm2344_vm9, %vm2376_vm8  ;;  %vm11581_vm9 = vcmp.ne.f32.partialorder %v11543_v1, %v11543_v1  ;;  %v2280_v47 = vsel %vm9737_vm11, %v11477_v23, %v11534_v49  ;;  %vm11582_vm11 = vcmp.ne.f32.partialorder %v11552_v31, %v11552_v31 }
 0x4aa   :  { %vm9811_vm14 = vmor %vm2094_vm1, %vm9714_vm7  ;;  %v2537_v44 = vsel %vm11334_vm5, %v2281_v22, %v2505_v18  ;;  %vm2315_vm1 = vcmp.gt.f32.partialorder %v2056_v11, %v11552_v31 }
 0x4ab   :  { %vm2440_vm2 = vmor %vm2312_vm10, %vm2408_vm4  ;;  %2569 = vst [vmem:[#allocation5 + $0xd0] sm:$0xff] %v2537_v44  ;;  %vm2347_vm10 = vcmp.ne.f32.partialorder %v2056_v11, %v2056_v11 }
 0x4ac   :  { %v2472_v58 = vsel %vm2440_vm2, %v9687_v35, %v11534_v49  ;;  %vm2380_vm13 = vmxor %vm11581_vm9, %vm10173_vm12 }
 0x4ad   :  { %v2504_v34 = vsel %vm11309_vm0, %v2472_v58, %v11534_v49  ;;  %vm2412_vm7 = vmand %vm2348_vm15, %vm2380_vm13  ;;  %vm11583_vm15 = vnez %v11572_v10  ;;  %vm2318_vm13 = vcmp.gt.f32.partialorder %v2062_v9, %v11560_v39 }
 0x4ae   :  { %v2536_v2 = vsel %vm11334_vm5, %v2280_v47, %v2504_v34  ;;  %vm2444_vm8 = vmor %vm2316_vm6, %vm2412_vm7  ;;  %v2284_v23 = vsel %vm11583_vm15, %v11487_v0, %v11543_v1  ;;  %vm2350_vm6 = vcmp.ne.f32.partialorder %v2062_v9, %v2062_v9  ;;  %vm11584_vm7 = vcmp.ne.f32.partialorder %v11560_v39, %v11560_v39 }
 0x4af   :  { %2568 = vst [vmem:[#allocation5 + $0xc8] sm:$0xff] %v2536_v2  ;;  %v2476_v13 = vsel %vm2444_vm8, %v2058_v41, %v11543_v1  ;;  %vm2379_vm4 = vmxor %vm11582_vm11, %vm10173_vm12  ;;  %v2283_v0 = vsel %vm9787_vm3, %v11505_v28, %v11552_v31  ;;  %v2286_v28 = vsel %vm9811_vm14, %v11517_v4, %v11560_v39 }
 0x4b0   :  { %v2508_v12 = vsel %vm11309_vm0, %v2476_v13, %v11543_v1  ;;  %vm2411_vm2 = vmand %vm2347_vm10, %vm2379_vm4 }
 0x4b1   :  { %v2540_v61 = vsel %vm11334_vm5, %v2284_v23, %v2508_v12  ;;  %vm2443_vm9 = vmor %vm2315_vm1, %vm2411_vm2 }
 0x4b2   :  { %2572 = vst [vmem:[#allocation5 + $0xe8] sm:$0xff] %v2540_v61  ;;  %v2475_v5 = vsel %vm2443_vm9, %v2056_v11, %v11552_v31  ;;  %vm2382_vm8 = vmxor %vm11584_vm7, %vm10173_vm12 }
 0x4b3   :  { %v2507_v49 = vsel %vm11309_vm0, %v2475_v5, %v11552_v31  ;;  %vm2414_vm10 = vmand %vm2350_vm6, %vm2382_vm8 }
 0x4b4   :  { %v2539_v48 = vsel %vm11334_vm5, %v2283_v0, %v2507_v49  ;;  %vm2446_vm12 = vmor %vm2318_vm13, %vm2414_vm10 }
 0x4b5   :  { %2571 = vst [vmem:[#allocation5 + $0xe0] sm:$0xff] %v2539_v48  ;;  %v2478_v50 = vsel %vm2446_vm12, %v2062_v9, %v11560_v39 }
 0x4b6   :  { %v2510_v55 = vsel %vm11309_vm0, %v2478_v50, %v11560_v39 }
 0x4b7   :  { %v2542_v59 = vsel %vm11334_vm5, %v2286_v28, %v2510_v55 }
 0x4b8   :  { %2574 = vst [vmem:[#allocation5 + $0xf8] sm:$0xff] %v2542_v59 }
 0x4b9   :  { %2587 = dma.vmem_to_hbm [thread:$0]  %s2580_s15, 4096, %s2582_s18, [#allocation4], %s2666_s11, %s2666_s11, %s2667_s12  }
 0x4ba   :  { %2663 = dma.done.wait [#allocation4], 4096  }
 0x4bb   :  { %2664 = vsyncadd [#allocation4], 4294963200 }
 0x4bc   :  { %2592 = vsyncpa [#allocation3], 1 }
 0x4bd   :  { %2593 = vsyncpa [#allocation4], 1 }

</bundles_post_ra>
